<compile_context>
chip_gen: v7x
topology: tpu7x:2x2x1
jax: 0.10.0
libtpu: 0.0.40
codegen_flags: <defaults>
</compile_context>

<pallas_src>
import jax
import jax.numpy as jnp
import numpy as np
from jax import lax
from jax.experimental import pallas as pl
from jax.experimental.pallas import tpu as pltpu

# Problem sizes implied by the module's forward (x214: [1, 400, 7, 7]).
N, C, H, W = 1, 400, 7, 7
GROUPS = 25
CG = C // GROUPS                 # 16 channels per group (in and out)
KH = KW = 3
KOFFS = KH * KW                  # 9 kernel offsets
KSZ = KOFFS * CG                 # 144: per-group contraction, index = koff*CG + ci
HW = H * W                       # 49 valid output positions
HP, WP = H + 2, W + 2            # zero-padded image (padding=1)
HWP = HP * WP                    # 81 flattened padded-image positions
LANES = 128                      # lane-dense layout for matmul N / stores
EPS = 1e-5


def _grid_steps():
    # A 2-way split only helps on parts with 2 TensorCores per chip (v7x);
    # on single-TC v5e/v6e it is just an extra serial grid step + padding.
    try:
        kind = jax.devices()[0].device_kind.lower()
        if "v7" in kind:
            return 2
    except Exception:
        pass
    return 1


GRID = _grid_steps()
GROUPS_PAD = ((GROUPS + GRID - 1) // GRID) * GRID    # 25 (GRID=1) or 26 (GRID=2)
GP = GROUPS_PAD // GRID                              # groups resident per step
C_PAD = GROUPS_PAD * CG

# Valid-output-lane mask: lane l = h*WP + w is a real output position iff
# h < H and w < W.  All other lanes hold garbage after the in-kernel shifts
# and must be zeroed before the BN statistics.  Baked in as a constant.
_mask_np = np.zeros((1, 1, LANES), np.float32)
for _h in range(H):
    _mask_np[0, 0, _h * WP:_h * WP + W] = 1.0


def conv_bn_relu_kernel(x_ref, w_ref, mask_ref, gamma_ref, beta_ref,
                        o_ref, slab_ref):
    # x_ref:     (GP, CG, 128)  padded 9x9 image rows flattened, zero past lane 80
    # w_ref:     (GP, CG, 144)  weights, contraction index = koff*CG + ci
    # mask_ref:  (1, 1, 128)    1.0 on valid output lanes
    # gamma/beta:(GP, CG, 1)
    # o_ref:     (GP, CG, 128)
    # slab_ref:  (GP, 144, 128) VMEM scratch: in-kernel im2col patch slab
    x = x_ref[...]

    # Build the im2col slab with 9 static lane rotations (XLU) + contiguous
    # sublane stores.  For kernel offset (kh, kw) the input pixel feeding
    # output lane l (= h*WP + w) is lane l + kh*WP + kw of the flattened
    # padded image; invalid lanes read garbage and are masked below.
    for koff in range(KOFFS):
        kh, kw = koff // KW, koff % KW
        s = kh * WP + kw
        shifted = x if s == 0 else pltpu.roll(x, shift=LANES - s, axis=2)
        slab_ref[:, koff * CG:(koff + 1) * CG, :] = shifted

    # One K=144 matmul per resident group.
    acc = jnp.einsum('gok,gkh->goh', w_ref[...], slab_ref[...],
                     preferred_element_type=jnp.float32)       # (GP, CG, 128)

    # Zero invalid lanes so plain 128-lane sums equal sums over the 49 outputs.
    mask = mask_ref[...]
    acc = acc * mask

    # Training-mode BatchNorm: biased batch stats over (N, H, W); N == 1 so the
    # reduction is over HW.  Two-pass (centered) variance for robustness.
    mean = jnp.sum(acc, axis=-1, keepdims=True) * (1.0 / HW)
    centered = (acc - mean) * mask
    var = jnp.sum(centered * centered, axis=-1, keepdims=True) * (1.0 / HW)
    scale = lax.rsqrt(var + EPS) * gamma_ref[...]

    # ReLU; invalid lanes / padded groups are sliced off in the wrapper.
    o_ref[...] = jnp.maximum(centered * scale + beta_ref[...], 0.0)


def prepare_params(w, gamma, beta):
    """One-time layout prep for the parameters (hoisted out of the call path)."""
    assert w.shape == (C, CG, KH, KW)
    # (O, I/g, kh, kw) -> (g, o, ci, kh, kw) -> (g, o, kh, kw, ci) -> (g, o, 144)
    w5 = w.reshape(GROUPS, CG, CG, KH, KW)
    w_col = jnp.transpose(w5, (0, 1, 3, 4, 2)).reshape(GROUPS, CG, KSZ)
    gamma3 = gamma.reshape(GROUPS, CG, 1).astype(jnp.float32)
    beta3 = beta.reshape(GROUPS, CG, 1).astype(jnp.float32)
    if GROUPS_PAD > GROUPS:
        gpad = ((0, GROUPS_PAD - GROUPS), (0, 0), (0, 0))
        w_col = jnp.pad(w_col, gpad)
        gamma3 = jnp.pad(gamma3, gpad)
        beta3 = jnp.pad(beta3, gpad)
    return w_col.astype(jnp.float32), gamma3, beta3


@jax.jit
def conv_bn_relu(x, w_col, gamma3, beta3):
    assert x.shape == (N, C, H, W)

    # Cheap per-call input prep: spatial zero-pad, flatten to a 128-lane row
    # per channel, pad channels to the (possibly) group-padded count.
    xp = jnp.pad(x[0], ((0, 0), (1, 1), (1, 1)))                 # (C, 9, 9)
    xf = xp.reshape(C, HWP)                                      # (C, 81)
    xf = jnp.pad(xf, ((0, C_PAD - C), (0, LANES - HWP)))         # (C_PAD, 128)
    xg = xf.reshape(GROUPS_PAD, CG, LANES)

    mask = jnp.asarray(_mask_np)                                 # compile-time const

    out = pl.pallas_call(
        conv_bn_relu_kernel,
        out_shape=jax.ShapeDtypeStruct((GROUPS_PAD, CG, LANES), jnp.float32),
        grid_spec=pltpu.PrefetchScalarGridSpec(
            num_scalar_prefetch=0,
            grid=(GRID,),
            in_specs=[
                pl.BlockSpec((GP, CG, LANES), lambda i: (i, 0, 0)),
                pl.BlockSpec((GP, CG, KSZ), lambda i: (i, 0, 0)),
                pl.BlockSpec((1, 1, LANES), lambda i: (0, 0, 0)),
                pl.BlockSpec((GP, CG, 1), lambda i: (i, 0, 0)),
                pl.BlockSpec((GP, CG, 1), lambda i: (i, 0, 0)),
            ],
            out_specs=pl.BlockSpec((GP, CG, LANES), lambda i: (i, 0, 0)),
            scratch_shapes=[pltpu.VMEM((GP, KSZ, LANES), jnp.float32)],
        ),
        compiler_params=pltpu.CompilerParams(
            dimension_semantics=("parallel",)),
    )(xg, w_col, mask, gamma3, beta3)

    # Drop group padding, pick the valid lanes (h*9 + w, h<7, w<7), back to NCHW.
    out = out[:GROUPS].reshape(C, LANES)[:, :HWP].reshape(C, HP, WP)
    return out[:, :H, :W].reshape(N, C, H, W)


def _reference(x, w, gamma, beta):
    # Pure-JAX reference: grouped conv + training-mode BN (biased var) + ReLU.
    y = lax.conv_general_dilated(
        x, w, window_strides=(1, 1), padding=((1, 1), (1, 1)),
        dimension_numbers=("NCHW", "OIHW", "NCHW"),
        feature_group_count=GROUPS)
    mean = jnp.mean(y, axis=(0, 2, 3), keepdims=True)
    var = jnp.mean((y - mean) ** 2, axis=(0, 2, 3), keepdims=True)
    yn = (y - mean) * lax.rsqrt(var + EPS)
    yn = yn * gamma.reshape(1, C, 1, 1) + beta.reshape(1, C, 1, 1)
    return jnp.maximum(yn, 0.0)


if __name__ == "__main__":
    key = jax.random.PRNGKey(0)
    kx, kw, kg, kb = jax.random.split(key, 4)

    # Deterministic synthetic parameters (module __init__ shapes):
    #   conv weight: (400, 16, 3, 3);  BN gamma/beta: (400,)
    x = jax.random.normal(kx, (N, C, H, W), dtype=jnp.float32)
    w = jax.random.normal(kw, (C, CG, KH, KW), dtype=jnp.float32) * 0.1
    gamma = 1.0 + 0.1 * jax.random.normal(kg, (C,), dtype=jnp.float32)
    beta = 0.1 * jax.random.normal(kb, (C,), dtype=jnp.float32)

    # Parameter layout prep done once, outside the per-call path.
    w_col, gamma3, beta3 = prepare_params(w, gamma, beta)
    w_col, gamma3, beta3 = jax.block_until_ready((w_col, gamma3, beta3))

    out = jax.block_until_ready(conv_bn_relu(x, w_col, gamma3, beta3))
    ref = jax.block_until_ready(_reference(x, w, gamma, beta))
    np.testing.assert_allclose(np.asarray(out), np.asarray(ref),
                               rtol=2e-3, atol=2e-3)

    # TODO(synk): BatchNorm running-stat (momentum) buffer updates are a
    # training-time side effect not reflected in the returned tensor.
    print("KERNEL_OK")
</pallas_src>

<mosaic_0001>
module attributes {stable_mosaic.version = 11 : i64} {
  func.func @conv_bn_relu_kernel(%arg0: i32, %arg1: memref<25x16x128xf32, #tpu.memory_space<vmem>>, %arg2: memref<25x16x144xf32, #tpu.memory_space<vmem>>, %arg3: memref<1x1x128xf32, #tpu.memory_space<vmem>>, %arg4: memref<25x16x1xf32, #tpu.memory_space<vmem>>, %arg5: memref<25x16x1xf32, #tpu.memory_space<vmem>>, %arg6: memref<25x16x128xf32, #tpu.memory_space<vmem>>, %arg7: memref<25x144x128xf32, #tpu.memory_space<vmem>>) attributes {dimension_semantics = [#tpu.dimension_semantics<parallel>], iteration_bounds = array<i64: 1>, scalar_prefetch = 0 : i64, scratch_operands = 1 : i64, tpu.core_type = #tpu.core_type<tc>, window_params = [{transform_indices = @transform_0, window_bounds = array<i64: 25, 16, 128>}, {transform_indices = @transform_1, window_bounds = array<i64: 25, 16, 144>}, {pipeline_mode = #tpu.pipeline_mode<synchronous>, transform_indices = @transform_2, window_bounds = array<i64: 1, 1, 128>}, {transform_indices = @transform_3, window_bounds = array<i64: 25, 16, 1>}, {transform_indices = @transform_4, window_bounds = array<i64: 25, 16, 1>}, {transform_indices = @transform_5, window_bounds = array<i64: 25, 16, 128>}]} {
    %c0 = arith.constant 0 : index
    %c0_0 = arith.constant 0 : index
    %c0_1 = arith.constant 0 : index
    %0 = vector.load %arg1[%c0, %c0_0, %c0_1] : memref<25x16x128xf32, #tpu.memory_space<vmem>>, vector<25x16x128xf32>
    %c0_2 = arith.constant 0 : index
    %c0_3 = arith.constant 0 : index
    %c0_4 = arith.constant 0 : index
    %1 = vector.load %arg7[%c0_2, %c0_3, %c0_4] : memref<25x144x128xf32, #tpu.memory_space<vmem>>, vector<25x16x128xf32>
    tpu.vector_store %arg7[%c0_2, %c0_3, %c0_4], %0 {strides = array<i32>} : memref<25x144x128xf32, #tpu.memory_space<vmem>>, vector<25x16x128xf32>,
    %c127_i32 = arith.constant 127 : i32
    %2 = tpu.dynamic_rotate %0 by %c127_i32 dim 2 : vector<25x16x128xf32>, i32 -> vector<25x16x128xf32>
    %c0_5 = arith.constant 0 : index
    %c16 = arith.constant 16 : index
    %c0_6 = arith.constant 0 : index
    %3 = vector.load %arg7[%c0_5, %c16, %c0_6] : memref<25x144x128xf32, #tpu.memory_space<vmem>>, vector<25x16x128xf32>
    tpu.vector_store %arg7[%c0_5, %c16, %c0_6], %2 {strides = array<i32>} : memref<25x144x128xf32, #tpu.memory_space<vmem>>, vector<25x16x128xf32>,
    %c126_i32 = arith.constant 126 : i32
    %4 = tpu.dynamic_rotate %0 by %c126_i32 dim 2 : vector<25x16x128xf32>, i32 -> vector<25x16x128xf32>
    %c0_7 = arith.constant 0 : index
    %c32 = arith.constant 32 : index
    %c0_8 = arith.constant 0 : index
    %5 = vector.load %arg7[%c0_7, %c32, %c0_8] : memref<25x144x128xf32, #tpu.memory_space<vmem>>, vector<25x16x128xf32>
    tpu.vector_store %arg7[%c0_7, %c32, %c0_8], %4 {strides = array<i32>} : memref<25x144x128xf32, #tpu.memory_space<vmem>>, vector<25x16x128xf32>,
    %c119_i32 = arith.constant 119 : i32
    %6 = tpu.dynamic_rotate %0 by %c119_i32 dim 2 : vector<25x16x128xf32>, i32 -> vector<25x16x128xf32>
    %c0_9 = arith.constant 0 : index
    %c48 = arith.constant 48 : index
    %c0_10 = arith.constant 0 : index
    %7 = vector.load %arg7[%c0_9, %c48, %c0_10] : memref<25x144x128xf32, #tpu.memory_space<vmem>>, vector<25x16x128xf32>
    tpu.vector_store %arg7[%c0_9, %c48, %c0_10], %6 {strides = array<i32>} : memref<25x144x128xf32, #tpu.memory_space<vmem>>, vector<25x16x128xf32>,
    %c118_i32 = arith.constant 118 : i32
    %8 = tpu.dynamic_rotate %0 by %c118_i32 dim 2 : vector<25x16x128xf32>, i32 -> vector<25x16x128xf32>
    %c0_11 = arith.constant 0 : index
    %c64 = arith.constant 64 : index
    %c0_12 = arith.constant 0 : index
    %9 = vector.load %arg7[%c0_11, %c64, %c0_12] : memref<25x144x128xf32, #tpu.memory_space<vmem>>, vector<25x16x128xf32>
    tpu.vector_store %arg7[%c0_11, %c64, %c0_12], %8 {strides = array<i32>} : memref<25x144x128xf32, #tpu.memory_space<vmem>>, vector<25x16x128xf32>,
    %c117_i32 = arith.constant 117 : i32
    %10 = tpu.dynamic_rotate %0 by %c117_i32 dim 2 : vector<25x16x128xf32>, i32 -> vector<25x16x128xf32>
    %c0_13 = arith.constant 0 : index
    %c80 = arith.constant 80 : index
    %c0_14 = arith.constant 0 : index
    %11 = vector.load %arg7[%c0_13, %c80, %c0_14] : memref<25x144x128xf32, #tpu.memory_space<vmem>>, vector<25x16x128xf32>
    tpu.vector_store %arg7[%c0_13, %c80, %c0_14], %10 {strides = array<i32>} : memref<25x144x128xf32, #tpu.memory_space<vmem>>, vector<25x16x128xf32>,
    %c110_i32 = arith.constant 110 : i32
    %12 = tpu.dynamic_rotate %0 by %c110_i32 dim 2 : vector<25x16x128xf32>, i32 -> vector<25x16x128xf32>
    %c0_15 = arith.constant 0 : index
    %c96 = arith.constant 96 : index
    %c0_16 = arith.constant 0 : index
    %13 = vector.load %arg7[%c0_15, %c96, %c0_16] : memref<25x144x128xf32, #tpu.memory_space<vmem>>, vector<25x16x128xf32>
    tpu.vector_store %arg7[%c0_15, %c96, %c0_16], %12 {strides = array<i32>} : memref<25x144x128xf32, #tpu.memory_space<vmem>>, vector<25x16x128xf32>,
    %c109_i32 = arith.constant 109 : i32
    %14 = tpu.dynamic_rotate %0 by %c109_i32 dim 2 : vector<25x16x128xf32>, i32 -> vector<25x16x128xf32>
    %c0_17 = arith.constant 0 : index
    %c112 = arith.constant 112 : index
    %c0_18 = arith.constant 0 : index
    %15 = vector.load %arg7[%c0_17, %c112, %c0_18] : memref<25x144x128xf32, #tpu.memory_space<vmem>>, vector<25x16x128xf32>
    tpu.vector_store %arg7[%c0_17, %c112, %c0_18], %14 {strides = array<i32>} : memref<25x144x128xf32, #tpu.memory_space<vmem>>, vector<25x16x128xf32>,
    %c108_i32 = arith.constant 108 : i32
    %16 = tpu.dynamic_rotate %0 by %c108_i32 dim 2 : vector<25x16x128xf32>, i32 -> vector<25x16x128xf32>
    %c0_19 = arith.constant 0 : index
    %c128 = arith.constant 128 : index
    %c0_20 = arith.constant 0 : index
    %17 = vector.load %arg7[%c0_19, %c128, %c0_20] : memref<25x144x128xf32, #tpu.memory_space<vmem>>, vector<25x16x128xf32>
    tpu.vector_store %arg7[%c0_19, %c128, %c0_20], %16 {strides = array<i32>} : memref<25x144x128xf32, #tpu.memory_space<vmem>>, vector<25x16x128xf32>,
    %c0_21 = arith.constant 0 : index
    %c0_22 = arith.constant 0 : index
    %c0_23 = arith.constant 0 : index
    %18 = vector.load %arg2[%c0_21, %c0_22, %c0_23] : memref<25x16x144xf32, #tpu.memory_space<vmem>>, vector<25x16x144xf32>
    %c0_24 = arith.constant 0 : index
    %c0_25 = arith.constant 0 : index
    %c0_26 = arith.constant 0 : index
    %19 = vector.load %arg7[%c0_24, %c0_25, %c0_26] : memref<25x144x128xf32, #tpu.memory_space<vmem>>, vector<25x144x128xf32>
    "tpu.trace_start"() <{level = 10 : i32, message = "gok,gkh->goh"}> : () -> ()
    %cst = arith.constant dense<0.000000e+00> : vector<25x16x128xf32>
    %20 = tpu.matmul %18, %19, %cst {dimension_numbers = #tpu.dot_dimension_numbers<[2], [1], [1], [2], [0, 0, 0, 1, 1, 2], [0], [0]>} : vector<25x16x144xf32>, vector<25x144x128xf32>, vector<25x16x128xf32> -> vector<25x16x128xf32>
    "tpu.trace_stop"() : () -> ()
    %c0_27 = arith.constant 0 : index
    %c0_28 = arith.constant 0 : index
    %c0_29 = arith.constant 0 : index
    %21 = vector.load %arg3[%c0_27, %c0_28, %c0_29] : memref<1x1x128xf32, #tpu.memory_space<vmem>>, vector<1x1x128xf32>
    %22 = vector.broadcast %21 : vector<1x1x128xf32> to vector<25x16x128xf32>
    %23 = arith.mulf %20, %22 : vector<25x16x128xf32>
    %cst_30 = arith.constant dense<0.000000e+00> : vector<25x16xf32>
    %24 = vector.multi_reduction <add>, %23, %cst_30 [2] : vector<25x16x128xf32> to vector<25x16xf32>
    %25 = vector.shape_cast %24 : vector<25x16xf32> to vector<25x16x1xf32>
    %cst_31 = arith.constant 0.0204081628 : f32
    %26 = vector.broadcast %cst_31 : f32 to vector<25x16x1xf32>
    %27 = arith.mulf %25, %26 : vector<25x16x1xf32>
    %28 = vector.broadcast %27 : vector<25x16x1xf32> to vector<25x16x128xf32>
    %29 = arith.subf %23, %28 : vector<25x16x128xf32>
    %30 = vector.broadcast %21 : vector<1x1x128xf32> to vector<25x16x128xf32>
    %31 = arith.mulf %29, %30 : vector<25x16x128xf32>
    %32 = arith.mulf %31, %31 : vector<25x16x128xf32>
    %cst_32 = arith.constant dense<0.000000e+00> : vector<25x16xf32>
    %33 = vector.multi_reduction <add>, %32, %cst_32 [2] : vector<25x16x128xf32> to vector<25x16xf32>
    %34 = vector.shape_cast %33 : vector<25x16xf32> to vector<25x16x1xf32>
    %cst_33 = arith.constant 0.0204081628 : f32
    %35 = vector.broadcast %cst_33 : f32 to vector<25x16x1xf32>
    %36 = arith.mulf %34, %35 : vector<25x16x1xf32>
    %cst_34 = arith.constant 9.99999974E-6 : f32
    %37 = vector.broadcast %cst_34 : f32 to vector<25x16x1xf32>
    %38 = arith.addf %36, %37 : vector<25x16x1xf32>
    %39 = math.rsqrt %38 : vector<25x16x1xf32>
    %c0_35 = arith.constant 0 : index
    %c0_36 = arith.constant 0 : index
    %c0_37 = arith.constant 0 : index
    %40 = vector.load %arg4[%c0_35, %c0_36, %c0_37] : memref<25x16x1xf32, #tpu.memory_space<vmem>>, vector<25x16x1xf32>
    %41 = arith.mulf %39, %40 : vector<25x16x1xf32>
    %42 = vector.broadcast %41 : vector<25x16x1xf32> to vector<25x16x128xf32>
    %43 = arith.mulf %31, %42 : vector<25x16x128xf32>
    %c0_38 = arith.constant 0 : index
    %c0_39 = arith.constant 0 : index
    %c0_40 = arith.constant 0 : index
    %44 = vector.load %arg5[%c0_38, %c0_39, %c0_40] : memref<25x16x1xf32, #tpu.memory_space<vmem>>, vector<25x16x1xf32>
    %45 = vector.broadcast %44 : vector<25x16x1xf32> to vector<25x16x128xf32>
    %46 = arith.addf %43, %45 : vector<25x16x128xf32>
    %cst_41 = arith.constant 0.000000e+00 : f32
    %47 = vector.broadcast %cst_41 : f32 to vector<25x16x128xf32>
    %48 = arith.maximumf %46, %47 : vector<25x16x128xf32>
    %c0_42 = arith.constant 0 : index
    %c0_43 = arith.constant 0 : index
    %c0_44 = arith.constant 0 : index
    %49 = vector.load %arg6[%c0_42, %c0_43, %c0_44] : memref<25x16x128xf32, #tpu.memory_space<vmem>>, vector<25x16x128xf32>
    tpu.vector_store %arg6[%c0_42, %c0_43, %c0_44], %48 {strides = array<i32>} : memref<25x16x128xf32, #tpu.memory_space<vmem>>, vector<25x16x128xf32>,
    return
  }
  func.func @transform_0(%arg0: i32) -> (i32, i32, i32) {
    %c0_i32 = arith.constant 0 : i32
    %c0_i32_0 = arith.constant 0 : i32
    %c0_i32_1 = arith.constant 0 : i32
    return %arg0, %c0_i32, %c0_i32_0 : i32, i32, i32
  }
  func.func @transform_1(%arg0: i32) -> (i32, i32, i32) {
    %c0_i32 = arith.constant 0 : i32
    %c0_i32_0 = arith.constant 0 : i32
    %c0_i32_1 = arith.constant 0 : i32
    return %arg0, %c0_i32, %c0_i32_0 : i32, i32, i32
  }
  func.func @transform_2(%arg0: i32) -> (i32, i32, i32) {
    %c0_i32 = arith.constant 0 : i32
    %c0_i32_0 = arith.constant 0 : i32
    %c0_i32_1 = arith.constant 0 : i32
    %c0_i32_2 = arith.constant 0 : i32
    return %c0_i32, %c0_i32_0, %c0_i32_1 : i32, i32, i32
  }
  func.func @transform_3(%arg0: i32) -> (i32, i32, i32) {
    %c0_i32 = arith.constant 0 : i32
    %c0_i32_0 = arith.constant 0 : i32
    %c0_i32_1 = arith.constant 0 : i32
    return %arg0, %c0_i32, %c0_i32_0 : i32, i32, i32
  }
  func.func @transform_4(%arg0: i32) -> (i32, i32, i32) {
    %c0_i32 = arith.constant 0 : i32
    %c0_i32_0 = arith.constant 0 : i32
    %c0_i32_1 = arith.constant 0 : i32
    return %arg0, %c0_i32, %c0_i32_0 : i32, i32, i32
  }
  func.func @transform_5(%arg0: i32) -> (i32, i32, i32) {
    %c0_i32 = arith.constant 0 : i32
    %c0_i32_0 = arith.constant 0 : i32
    %c0_i32_1 = arith.constant 0 : i32
    return %arg0, %c0_i32, %c0_i32_0 : i32, i32, i32
  }
}

</mosaic_0001>

<bundles_post_ra>
// kernel: conv_bn_relu.1
= control target key start
LH: loop header
LB: loop body
LE: loop exit
PB: predicated region body
PF: predicated region fallthrough
CT: control target
= control target key end

     0   :  { %v10706_v3 = vmov 0.0|0.0   ;;  %s7293_s9 = smov 127   ;;  %s7294_s22 = smov 126   ;;  %vm1870_vm0 = vcmask 130048   ;;  %s10700_s0 = inlined_call_operand.vmem [shape: f32[25,16,128], index: 0, kind: input, shape index: {}]   ;;  %s10701_s1 = inlined_call_operand.vmem [shape: f32[25,16,144], index: 1, kind: input, shape index: {}]   ;;  %s10702_s2 = inlined_call_operand.vmem [shape: f32[1,1,128], index: 2, kind: input, shape index: {}]   ;;  %s10703_s4 = inlined_call_operand.vmem [shape: f32[25,16,1], index: 4, kind: input, shape index: {}]   ;;  %s10704_s3 = inlined_call_operand.vmem [shape: f32[25,16,1], index: 3, kind: input, shape index: {}]   ;;  %s10705_s5 = inlined_call_operand.vmem [shape: f32[25,16,128], index: 5, kind: output, shape index: {}]  }
   0x1   :  { %v24_v0 = vld [vmem:[%s10700_s0 + $0x20] sm:$0xff]  ;;  %v25_v1 = vld [vmem:[%s10700_s0 + $0x28] sm:$0xff]  ;;  %5408 = vmatprep.subr.bf16.mxu0 %v10706_v3  ;;  %5435 = vmatprep.subr.bf16.mxu1 %v10706_v3  ;;  %v26_v6 = vld [vmem:[%s10700_s0 + $0x30] sm:$0xff]  ;;  %s7296_s23 = smov 118   ;;  %s7297_s24 = smov 117  }
   0x2   :  { %v20_v2 = vld [vmem:[%s10700_s0] sm:$0xff]  ;;  %v7343_v4 = vpack.i.bf16 %v25_v1, %v24_v0  ;;  %v21_v5 = vld [vmem:[%s10700_s0 + $0x8] sm:$0xff]  ;;  %v27_v7 = vld [vmem:[%s10700_s0 + $0x38] sm:$0xff]  ;;  %s7298_s25 = smov 110   ;;  %s7299_s28 = smov 109  }
   0x3   :  { %v7354_v8 = vpack.i.bf16 %v21_v5, %v20_v2  ;;  %v22_v9 = vld [vmem:[%s10700_s0 + $0x10] sm:$0xff]  ;;  %v23_v10 = vld [vmem:[%s10700_s0 + $0x18] sm:$0xff]  ;;  %v7364_v11 = vpack.i.bf16 %v27_v7, %v26_v6  ;;  %v28_v15 = vld [vmem:[%s10700_s0 + $0x40] sm:$0xff]  ;;  %v5409_v23 = vpack.c.bf16 %v21_v5, %v20_v2  ;;  %s7300_s6 = smov 108  }
   0x4   :  { %6122 = vrot.lane.b32.xlu1 %v7343_v4, %s7293_s9  ;;  %v7368_v12 = vpack.i.bf16 %v23_v10, %v22_v9  ;;  %v30_v13 = vld [vmem:[%s10700_s0 + $0x50] sm:$0xff]  ;;  %v31_v14 = vld [vmem:[%s10700_s0 + $0x58] sm:$0xff]  ;;  %v29_v16 = vld [vmem:[%s10700_s0 + $0x48] sm:$0xff]  ;;  %v5436_v30 = vpack.c.bf16 %v23_v10, %v22_v9 }
   0x5   :  { %6112 = vrot.lane.b32.xlu0 %v7354_v8, %s7293_s9  ;;  %v7384_v17 = vpack.i.bf16 %v31_v14, %v30_v13  ;;  %v7388_v18 = vpack.i.bf16 %v29_v16, %v28_v15  ;;  %v34_v19 = vld [vmem:[%s10700_s0 + $0x70] sm:$0xff]  ;;  %v35_v20 = vld [vmem:[%s10700_s0 + $0x78] sm:$0xff]  ;;  %v32_v21 = vld [vmem:[%s10700_s0 + $0x60] sm:$0xff]  ;;  %5410 = vmatpush1.bf16.msra.mxu0 %v5409_v23 }
   0x6   :  { %v33_v22 = vld [vmem:[%s10700_s0 + $0x68] sm:$0xff]  ;;  %v7404_v24 = vpack.i.bf16 %v35_v20, %v34_v19  ;;  %v38_v26 = vld [vmem:[%s10700_s0 + $0x90] sm:$0xff]  ;;  %v39_v27 = vld [vmem:[%s10700_s0 + $0x98] sm:$0xff]  ;;  %5411 = vmatprep.subr.bf16.mxu0 %v10706_v3  ;;  %5437 = vmatpush1.bf16.msra.mxu1 %v5436_v30 }
   0x7   :  { %v7408_v25 = vpack.i.bf16 %v33_v22, %v32_v21  ;;  %v36_v28 = vld [vmem:[%s10700_s0 + $0x80] sm:$0xff]  ;;  %v37_v29 = vld [vmem:[%s10700_s0 + $0x88] sm:$0xff]  ;;  %v7425_v31 = vpack.i.bf16 %v39_v27, %v38_v26  ;;  %v42_v33 = vld [vmem:[%s10700_s0 + $0xb0] sm:$0xff]  ;;  %5438 = vmatprep.subr.bf16.mxu1 %v10706_v3 }
   0x8   :  { %6127 = vrot.lane.b32.xlu1 %v7364_v11, %s7293_s9  ;;  %v7429_v32 = vpack.i.bf16 %v37_v29, %v36_v28  ;;  %v43_v34 = vld [vmem:[%s10700_s0 + $0xb8] sm:$0xff]  ;;  %v40_v35 = vld [vmem:[%s10700_s0 + $0xa0] sm:$0xff]  ;;  %v41_v36 = vld [vmem:[%s10700_s0 + $0xa8] sm:$0xff] }
   0x9   :  { %6117 = vrot.lane.b32.xlu0 %v7368_v12, %s7293_s9  ;;  %v7446_v37 = vpack.i.bf16 %v43_v34, %v42_v33  ;;  %v7450_v38 = vpack.i.bf16 %v41_v36, %v40_v35  ;;  %v46_v39 = vld [vmem:[%s10700_s0 + $0xd0] sm:$0xff]  ;;  %v47_v40 = vld [vmem:[%s10700_s0 + $0xd8] sm:$0xff]  ;;  %v44_v41 = vld [vmem:[%s10700_s0 + $0xc0] sm:$0xff] }
   0xa   :  { %v45_v42 = vld [vmem:[%s10700_s0 + $0xc8] sm:$0xff]  ;;  %v7466_v43 = vpack.i.bf16 %v47_v40, %v46_v39  ;;  %v50_v45 = vld [vmem:[%s10700_s0 + $0xf0] sm:$0xff]  ;;  %v51_v46 = vld [vmem:[%s10700_s0 + $0xf8] sm:$0xff] }
   0xb   :  { %v7470_v44 = vpack.i.bf16 %v45_v42, %v44_v41  ;;  %v48_v47 = vld [vmem:[%s10700_s0 + $0xe0] sm:$0xff]  ;;  %v49_v48 = vld [vmem:[%s10700_s0 + $0xe8] sm:$0xff]  ;;  %v7486_v49 = vpack.i.bf16 %v51_v46, %v50_v45  ;;  %v54_v51 = vld [vmem:[%s10700_s0 + $0x110] sm:$0xff] }
   0xc   :  { %6137 = vrot.lane.b32.xlu1 %v7384_v17, %s7293_s9  ;;  %v7490_v50 = vpack.i.bf16 %v49_v48, %v48_v47  ;;  %v55_v52 = vld [vmem:[%s10700_s0 + $0x118] sm:$0xff]  ;;  %v52_v53 = vld [vmem:[%s10700_s0 + $0x100] sm:$0xff]  ;;  %v53_v54 = vld [vmem:[%s10700_s0 + $0x108] sm:$0xff] }
   0xd   :  { %6132 = vrot.lane.b32.xlu0 %v7388_v18, %s7293_s9  ;;  %v7506_v55 = vpack.i.bf16 %v55_v52, %v54_v51  ;;  %v7510_v56 = vpack.i.bf16 %v53_v54, %v52_v53  ;;  %v58_v57 = vld [vmem:[%s10700_s0 + $0x130] sm:$0xff]  ;;  %v59_v58 = vld [vmem:[%s10700_s0 + $0x138] sm:$0xff]  ;;  %v56_v59 = vld [vmem:[%s10700_s0 + $0x120] sm:$0xff] }
   0xe   :  { %v57_v60 = vld [vmem:[%s10700_s0 + $0x128] sm:$0xff]  ;;  %v7526_v61 = vpack.i.bf16 %v59_v58, %v58_v57  ;;  %v62_v63 = vld [vmem:[%s10700_s0 + $0x150] sm:$0xff]  ;;  %v63_v0 = vld [vmem:[%s10700_s0 + $0x158] sm:$0xff] }
   0xf   :  { %v7530_v62 = vpack.i.bf16 %v57_v60, %v56_v59  ;;  %v60_v1 = vld [vmem:[%s10700_s0 + $0x140] sm:$0xff]  ;;  %v61_v2 = vld [vmem:[%s10700_s0 + $0x148] sm:$0xff]  ;;  %v7546_v5 = vpack.i.bf16 %v63_v0, %v62_v63  ;;  %v66_v7 = vld [vmem:[%s10700_s0 + $0x170] sm:$0xff] }
  0x10   :  { %6147 = vrot.lane.b32.xlu1 %v7404_v24, %s7293_s9  ;;  %v7550_v6 = vpack.i.bf16 %v61_v2, %v60_v1  ;;  %v67_v9 = vld [vmem:[%s10700_s0 + $0x178] sm:$0xff]  ;;  %v64_v10 = vld [vmem:[%s10700_s0 + $0x160] sm:$0xff]  ;;  %v65_v13 = vld [vmem:[%s10700_s0 + $0x168] sm:$0xff] }
  0x11   :  { %6142 = vrot.lane.b32.xlu0 %v7408_v25, %s7293_s9  ;;  %v7566_v14 = vpack.i.bf16 %v67_v9, %v66_v7  ;;  %v7570_v15 = vpack.i.bf16 %v65_v13, %v64_v10  ;;  %v68_v16 = vld [vmem:[%s10700_s0 + $0x180] sm:$0xff]  ;;  %v69_v19 = vld [vmem:[%s10700_s0 + $0x188] sm:$0xff] }
  0x12   :  { %v7582_v20 = vpack.i.bf16 %v69_v19, %v68_v16 }
  0x14   :  { %6157 = vrot.lane.b32.xlu1 %v7425_v31, %s7293_s9 }
  0x15   :  { %6152 = vrot.lane.b32.xlu0 %v7429_v32, %s7293_s9 }
  0x18   :  { %6167 = vrot.lane.b32.xlu1 %v7446_v37, %s7293_s9 }
  0x19   :  { %6162 = vrot.lane.b32.xlu0 %v7450_v38, %s7293_s9 }
  0x1c   :  { %6177 = vrot.lane.b32.xlu1 %v7466_v43, %s7293_s9 }
  0x1d   :  { %6172 = vrot.lane.b32.xlu0 %v7470_v44, %s7293_s9 }
  0x20   :  { %6187 = vrot.lane.b32.xlu1 %v7486_v49, %s7293_s9 }
  0x21   :  { %6182 = vrot.lane.b32.xlu0 %v7490_v50, %s7293_s9 }
  0x24   :  { %6197 = vrot.lane.b32.xlu1 %v7506_v55, %s7293_s9 }
  0x25   :  { %6192 = vrot.lane.b32.xlu0 %v7510_v56, %s7293_s9 }
  0x28   :  { %6207 = vrot.lane.b32.xlu1 %v7526_v61, %s7293_s9 }
  0x29   :  { %6202 = vrot.lane.b32.xlu0 %v7530_v62, %s7293_s9 }
  0x2c   :  { %6217 = vrot.lane.b32.xlu1 %v7546_v5, %s7293_s9 }
  0x2d   :  { %6212 = vrot.lane.b32.xlu0 %v7550_v6, %s7293_s9 }
  0x30   :  { %6227 = vrot.lane.b32.xlu1 %v7566_v14, %s7293_s9 }
  0x31   :  { %6222 = vrot.lane.b32.xlu0 %v7570_v15, %s7293_s9 }
  0x34   :  { %6237 = vrot.lane.b32.xlu1 %v7354_v8, %s7294_s22 }
  0x35   :  { %6232 = vrot.lane.b32.xlu0 %v7582_v20, %s7293_s9  ;;  %s7295_s9 = smov 119  }
  0x38   :  { %6247 = vrot.lane.b32.xlu1 %v7343_v4, %s7294_s22 }
  0x39   :  { %6242 = vrot.lane.b32.xlu0 %v7368_v12, %s7294_s22 }
  0x3c   :  { %6257 = vrot.lane.b32.xlu1 %v7388_v18, %s7294_s22 }
  0x3d   :  { %6252 = vrot.lane.b32.xlu0 %v7364_v11, %s7294_s22 }
  0x40   :  { %6267 = vrot.lane.b32.xlu1 %v7408_v25, %s7294_s22 }
  0x41   :  { %6262 = vrot.lane.b32.xlu0 %v7384_v17, %s7294_s22 }
  0x44   :  { %6277 = vrot.lane.b32.xlu1 %v7429_v32, %s7294_s22 }
  0x45   :  { %6272 = vrot.lane.b32.xlu0 %v7404_v24, %s7294_s22 }
  0x48   :  { %6287 = vrot.lane.b32.xlu1 %v7450_v38, %s7294_s22 }
  0x49   :  { %6282 = vrot.lane.b32.xlu0 %v7425_v31, %s7294_s22 }
  0x4c   :  { %6297 = vrot.lane.b32.xlu1 %v7470_v44, %s7294_s22 }
  0x4d   :  { %6292 = vrot.lane.b32.xlu0 %v7446_v37, %s7294_s22 }
  0x50   :  { %6307 = vrot.lane.b32.xlu1 %v7490_v50, %s7294_s22 }
  0x51   :  { %6302 = vrot.lane.b32.xlu0 %v7466_v43, %s7294_s22 }
  0x54   :  { %6317 = vrot.lane.b32.xlu1 %v7510_v56, %s7294_s22 }
  0x55   :  { %6312 = vrot.lane.b32.xlu0 %v7486_v49, %s7294_s22 }
  0x58   :  { %6327 = vrot.lane.b32.xlu1 %v7530_v62, %s7294_s22 }
  0x59   :  { %6322 = vrot.lane.b32.xlu0 %v7506_v55, %s7294_s22 }
  0x5c   :  { %6337 = vrot.lane.b32.xlu1 %v7550_v6, %s7294_s22 }
  0x5d   :  { %6332 = vrot.lane.b32.xlu0 %v7526_v61, %s7294_s22 }
  0x60   :  { %6347 = vrot.lane.b32.xlu1 %v7570_v15, %s7294_s22 }
  0x61   :  { %6342 = vrot.lane.b32.xlu0 %v7546_v5, %s7294_s22 }
  0x64   :  { %6357 = vrot.lane.b32.xlu1 %v7582_v20, %s7294_s22 }
  0x65   :  { %6352 = vrot.lane.b32.xlu0 %v7566_v14, %s7294_s22 }
  0x68   :  { %6367 = vrot.lane.b32.xlu1 %v7368_v12, %s7295_s9 }
  0x69   :  { %6362 = vrot.lane.b32.xlu0 %v7354_v8, %s7295_s9 }
  0x6c   :  { %6377 = vrot.lane.b32.xlu1 %v7364_v11, %s7295_s9 }
  0x6d   :  { %6372 = vrot.lane.b32.xlu0 %v7343_v4, %s7295_s9 }
  0x70   :  { %6387 = vrot.lane.b32.xlu1 %v7384_v17, %s7295_s9 }
  0x71   :  { %6382 = vrot.lane.b32.xlu0 %v7388_v18, %s7295_s9 }
  0x74   :  { %6397 = vrot.lane.b32.xlu1 %v7404_v24, %s7295_s9 }
  0x75   :  { %6392 = vrot.lane.b32.xlu0 %v7408_v25, %s7295_s9 }
  0x76   :  { %v7627_v21 = vpop.permute.xlu1 %6122 }
  0x77   :  { %v6113_v22 = vpop.permute.xlu0 %6112 }
  0x78   :  { %v6115_v23 = vunpack.i.h.bf16 %v6113_v22  ;;  %v6114_v26 = vunpack.i.l.bf16 %v6113_v22  ;;  %6407 = vrot.lane.b32.xlu1 %v7425_v31, %s7295_s9 }
  0x79   :  { %6402 = vrot.lane.b32.xlu0 %v7429_v32, %s7295_s9 }
  0x7a   :  { %v7633_v27 = vpop.permute.xlu1 %6127  ;;  %v5412_v28 = vpack.c.bf16 %v6115_v23, %v6114_v26 }
  0x7b   :  { %v6118_v29 = vpop.permute.xlu0 %6117 }
  0x7c   :  { %v6120_v30 = vunpack.i.h.bf16 %v6118_v29  ;;  %v6119_v33 = vunpack.i.l.bf16 %v6118_v29  ;;  %5413 = vmatpush1.bf16.msra.mxu0 %v5412_v28  ;;  %6417 = vrot.lane.b32.xlu1 %v7446_v37, %s7295_s9 }
  0x7d   :  { %6412 = vrot.lane.b32.xlu0 %v7450_v38, %s7295_s9  ;;  %5414 = vmatprep.subr.bf16.mxu0 %v10706_v3 }
  0x7e   :  { %v7640_v34 = vpop.permute.xlu1 %6137  ;;  %v5439_v35 = vpack.c.bf16 %v6120_v30, %v6119_v33 }
  0x7f   :  { %v7642_v36 = vpop.permute.xlu0 %6132 }
  0x80   :  { %5440 = vmatpush1.bf16.msra.mxu1 %v5439_v35  ;;  %6427 = vrot.lane.b32.xlu1 %v7466_v43, %s7295_s9 }
  0x81   :  { %6422 = vrot.lane.b32.xlu0 %v7470_v44, %s7295_s9  ;;  %5441 = vmatprep.subr.bf16.mxu1 %v10706_v3 }
  0x82   :  { %v7649_v39 = vpop.permute.xlu1 %6147 }
  0x83   :  { %v7651_v40 = vpop.permute.xlu0 %6142 }
  0x84   :  { %6437 = vrot.lane.b32.xlu1 %v7486_v49, %s7295_s9 }
  0x85   :  { %6432 = vrot.lane.b32.xlu0 %v7490_v50, %s7295_s9 }
  0x86   :  { %v7657_v41 = vpop.permute.xlu1 %6157 }
  0x87   :  { %v7659_v42 = vpop.permute.xlu0 %6152 }
  0x88   :  { %6447 = vrot.lane.b32.xlu1 %v7506_v55, %s7295_s9 }
  0x89   :  { %6442 = vrot.lane.b32.xlu0 %v7510_v56, %s7295_s9 }
  0x8a   :  { %v7665_v45 = vpop.permute.xlu1 %6167 }
  0x8b   :  { %v7667_v46 = vpop.permute.xlu0 %6162 }
  0x8c   :  { %6457 = vrot.lane.b32.xlu1 %v7526_v61, %s7295_s9 }
  0x8d   :  { %6452 = vrot.lane.b32.xlu0 %v7530_v62, %s7295_s9 }
  0x8e   :  { %v7673_v47 = vpop.permute.xlu1 %6177 }
  0x8f   :  { %10796 = vst [vmem:[#allocation3_spill] sm:$0xff] %v7673_v47  ;;  %v7675_v48 = vpop.permute.xlu0 %6172 }
  0x90   :  { %10797 = vst [vmem:[#allocation4_spill] sm:$0xff] %v7675_v48  ;;  %6467 = vrot.lane.b32.xlu1 %v7546_v5, %s7295_s9 }
  0x91   :  { %6462 = vrot.lane.b32.xlu0 %v7550_v6, %s7295_s9 }
  0x92   :  { %v7681_v51 = vpop.permute.xlu1 %6187 }
  0x93   :  { %10798 = vst [vmem:[#allocation5_spill] sm:$0xff] %v7681_v51  ;;  %v7683_v52 = vpop.permute.xlu0 %6182 }
  0x94   :  { %10799 = vst [vmem:[#allocation6_spill] sm:$0xff] %v7683_v52  ;;  %6477 = vrot.lane.b32.xlu1 %v7566_v14, %s7295_s9  ;;  %v1325_v52 = vld [vmem:[%s10701_s1 + $0x28] sm:$0xff] }
  0x95   :  { %6472 = vrot.lane.b32.xlu0 %v7570_v15, %s7295_s9  ;;  %5359 = vmatprep.mubr.msk.f32.mxu1 %vm1870_vm0, %v1325_v52 }
  0x96   :  { %v7689_v53 = vpop.permute.xlu1 %6197 }
  0x97   :  { %10800 = vst [vmem:[#allocation7_spill] sm:$0xff] %v7689_v53  ;;  %v7691_v54 = vpop.permute.xlu0 %6192 }
  0x98   :  { %10801 = vst [vmem:[#allocation8_spill] sm:$0xff] %v7691_v54  ;;  %6487 = vrot.lane.b32.xlu1 %v7354_v8, %s7296_s23 }
  0x99   :  { %6482 = vrot.lane.b32.xlu0 %v7582_v20, %s7295_s9 }
  0x9a   :  { %v7697_v57 = vpop.permute.xlu1 %6207 }
  0x9b   :  { %10802 = vst [vmem:[#allocation9_spill] sm:$0xff] %v7697_v57  ;;  %v7699_v58 = vpop.permute.xlu0 %6202 }
  0x9c   :  { %10803 = vst [vmem:[#allocation10_spill] sm:$0xff] %v7699_v58  ;;  %6497 = vrot.lane.b32.xlu1 %v7343_v4, %s7296_s23 }
  0x9d   :  { %6492 = vrot.lane.b32.xlu0 %v7368_v12, %s7296_s23 }
  0x9e   :  { %v7705_v59 = vpop.permute.xlu1 %6217 }
  0x9f   :  { %10804 = vst [vmem:[#allocation11_spill] sm:$0xff] %v7705_v59  ;;  %v7707_v60 = vpop.permute.xlu0 %6212 }
  0xa0   :  { %10805 = vst [vmem:[#allocation12_spill] sm:$0xff] %v7707_v60  ;;  %6507 = vrot.lane.b32.xlu1 %v7388_v18, %s7296_s23 }
  0xa1   :  { %6502 = vrot.lane.b32.xlu0 %v7364_v11, %s7296_s23 }
  0xa2   :  { %v7713_v63 = vpop.permute.xlu1 %6227 }
  0xa3   :  { %10806 = vst [vmem:[#allocation13_spill] sm:$0xff] %v7713_v63  ;;  %v7715_v0 = vpop.permute.xlu0 %6222 }
  0xa4   :  { %10807 = vst [vmem:[#allocation14_spill] sm:$0xff] %v7715_v0  ;;  %6517 = vrot.lane.b32.xlu1 %v7408_v25, %s7296_s23 }
  0xa5   :  { %6512 = vrot.lane.b32.xlu0 %v7384_v17, %s7296_s23 }
  0xa6   :  { %v6238_v1 = vpop.permute.xlu1 %6237 }
  0xa7   :  { %v6240_v2 = vunpack.i.h.bf16 %v6238_v1  ;;  %v6239_v7 = vunpack.i.l.bf16 %v6238_v1  ;;  %v7721_v9 = vpop.permute.xlu0 %6232 }
  0xa8   :  { %10808 = vst [vmem:[#allocation15_spill] sm:$0xff] %v7721_v9  ;;  %6527 = vrot.lane.b32.xlu1 %v7429_v32, %s7296_s23 }
  0xa9   :  { %6522 = vrot.lane.b32.xlu0 %v7404_v24, %s7296_s23  ;;  %v5415_v10 = vpack.c.bf16 %v6240_v2, %v6239_v7 }
  0xaa   :  { %v7727_v13 = vpop.permute.xlu1 %6247 }
  0xab   :  { %v6243_v16 = vpop.permute.xlu0 %6242  ;;  %5416 = vmatpush1.bf16.msra.mxu0 %v5415_v10 }
  0xac   :  { %v6245_v19 = vunpack.i.h.bf16 %v6243_v16  ;;  %v6244_v22 = vunpack.i.l.bf16 %v6243_v16  ;;  %6537 = vrot.lane.b32.xlu1 %v7450_v38, %s7296_s23  ;;  %5417 = vmatprep.subr.bf16.mxu0 %v10706_v3 }
  0xad   :  { %6532 = vrot.lane.b32.xlu0 %v7425_v31, %s7296_s23 }
  0xae   :  { %v7734_v23 = vpop.permute.xlu1 %6257  ;;  %v5442_v26 = vpack.c.bf16 %v6245_v19, %v6244_v22 }
  0xaf   :  { %v7736_v28 = vpop.permute.xlu0 %6252 }
  0xb0   :  { %5443 = vmatpush1.bf16.msra.mxu1 %v5442_v26  ;;  %6547 = vrot.lane.b32.xlu1 %v7470_v44, %s7296_s23 }
  0xb1   :  { %6542 = vrot.lane.b32.xlu0 %v7446_v37, %s7296_s23  ;;  %5444 = vmatprep.subr.bf16.mxu1 %v10706_v3 }
  0xb2   :  { %v7743_v29 = vpop.permute.xlu1 %6267 }
  0xb3   :  { %v7745_v30 = vpop.permute.xlu0 %6262 }
  0xb4   :  { %6557 = vrot.lane.b32.xlu1 %v7490_v50, %s7296_s23 }
  0xb5   :  { %6552 = vrot.lane.b32.xlu0 %v7466_v43, %s7296_s23 }
  0xb6   :  { %v7751_v33 = vpop.permute.xlu1 %6277 }
  0xb7   :  { %v7753_v35 = vpop.permute.xlu0 %6272 }
  0xb8   :  { %6567 = vrot.lane.b32.xlu1 %v7510_v56, %s7296_s23 }
  0xb9   :  { %6562 = vrot.lane.b32.xlu0 %v7486_v49, %s7296_s23 }
  0xba   :  { %v7759_v1 = vpop.permute.xlu1 %6287 }
  0xbb   :  { %v7761_v2 = vpop.permute.xlu0 %6282 }
  0xbc   :  { %6577 = vrot.lane.b32.xlu1 %v7530_v62, %s7296_s23 }
  0xbd   :  { %6572 = vrot.lane.b32.xlu0 %v7506_v55, %s7296_s23 }
  0xbe   :  { %v7767_v7 = vpop.permute.xlu1 %6297 }
  0xbf   :  { %10809 = vst [vmem:[#allocation16_spill] sm:$0xff] %v7767_v7  ;;  %v7769_v10 = vpop.permute.xlu0 %6292 }
  0xc0   :  { %6587 = vrot.lane.b32.xlu1 %v7550_v6, %s7296_s23 }
  0xc1   :  { %6582 = vrot.lane.b32.xlu0 %v7526_v61, %s7296_s23 }
  0xc2   :  { %v7775_v16 = vpop.permute.xlu1 %6307 }
  0xc3   :  { %10810 = vst [vmem:[#allocation17_spill] sm:$0xff] %v7775_v16  ;;  %v7777_v19 = vpop.permute.xlu0 %6302 }
  0xc4   :  { %10811 = vst [vmem:[#allocation18_spill] sm:$0xff] %v7777_v19  ;;  %6597 = vrot.lane.b32.xlu1 %v7570_v15, %s7296_s23 }
  0xc5   :  { %6592 = vrot.lane.b32.xlu0 %v7546_v5, %s7296_s23 }
  0xc6   :  { %v7783_v22 = vpop.permute.xlu1 %6317 }
  0xc7   :  { %10812 = vst [vmem:[#allocation19_spill] sm:$0xff] %v7783_v22  ;;  %v7785_v26 = vpop.permute.xlu0 %6312 }
  0xc8   :  { %10813 = vst [vmem:[#allocation20_spill] sm:$0xff] %v7785_v26  ;;  %6607 = vrot.lane.b32.xlu1 %v7582_v20, %s7296_s23  ;;  %v1321_v26 = vld [vmem:[%s10701_s1 + $0x8] sm:$0xff] }
  0xc9   :  { %6602 = vrot.lane.b32.xlu0 %v7566_v14, %s7296_s23  ;;  %5357 = vmatprep.mubr.msk.f32.mxu0 %vm1870_vm0, %v1321_v26 }
  0xca   :  { %v7791_v3 = vpop.permute.xlu1 %6327 }
  0xcb   :  { %10814 = vst [vmem:[#allocation21_spill] sm:$0xff] %v7791_v3  ;;  %v7793_v9 = vpop.permute.xlu0 %6322 }
  0xcc   :  { %10815 = vst [vmem:[#allocation22_spill] sm:$0xff] %v7793_v9  ;;  %6617 = vrot.lane.b32.xlu1 %v7368_v12, %s7297_s24 }
  0xcd   :  { %6612 = vrot.lane.b32.xlu0 %v7354_v8, %s7297_s24 }
  0xce   :  { %v7799_v63 = vpop.permute.xlu1 %6337 }
  0xcf   :  { %10816 = vst [vmem:[#allocation23_spill] sm:$0xff] %v7799_v63  ;;  %v7801_v0 = vpop.permute.xlu0 %6332 }
  0xd0   :  { %10817 = vst [vmem:[#allocation24_spill] sm:$0xff] %v7801_v0  ;;  %6627 = vrot.lane.b32.xlu1 %v7364_v11, %s7297_s24 }
  0xd1   :  { %6622 = vrot.lane.b32.xlu0 %v7343_v4, %s7297_s24 }
  0xd2   :  { %v7807_v59 = vpop.permute.xlu1 %6347 }
  0xd3   :  { %10818 = vst [vmem:[#allocation25_spill] sm:$0xff] %v7807_v59  ;;  %v7809_v60 = vpop.permute.xlu0 %6342 }
  0xd4   :  { %10819 = vst [vmem:[#allocation26_spill] sm:$0xff] %v7809_v60  ;;  %6637 = vrot.lane.b32.xlu1 %v7384_v17, %s7297_s24 }
  0xd5   :  { %6632 = vrot.lane.b32.xlu0 %v7388_v18, %s7297_s24 }
  0xd6   :  { %v7815_v57 = vpop.permute.xlu1 %6357 }
  0xd7   :  { %10820 = vst [vmem:[#allocation27_spill] sm:$0xff] %v7815_v57  ;;  %v7817_v63 = vpop.permute.xlu0 %6352 }
  0xd8   :  { %10821 = vst [vmem:[#allocation28_spill] sm:$0xff] %v7817_v63  ;;  %6647 = vrot.lane.b32.xlu1 %v7404_v24, %s7297_s24 }
  0xd9   :  { %6642 = vrot.lane.b32.xlu0 %v7408_v25, %s7297_s24 }
  0xda   :  { %v6368_v0 = vpop.permute.xlu1 %6367 }
  0xdb   :  { %v6370_v59 = vunpack.i.h.bf16 %v6368_v0  ;;  %v6369_v3 = vunpack.i.l.bf16 %v6368_v0  ;;  %v6363_v60 = vpop.permute.xlu0 %6362 }
  0xdc   :  { %v6365_v58 = vunpack.i.h.bf16 %v6363_v60  ;;  %v6364_v9 = vunpack.i.l.bf16 %v6363_v60  ;;  %6657 = vrot.lane.b32.xlu1 %v7425_v31, %s7297_s24  ;;  %v10822_v60 = vmov 0.0|0.0  }
  0xdd   :  { %6652 = vrot.lane.b32.xlu0 %v7429_v32, %s7297_s24  ;;  %v5445_v57 = vpack.c.bf16 %v6370_v59, %v6369_v3 }
  0xde   :  { %v7827_v63 = vpop.permute.xlu1 %6377  ;;  %v5418_v53 = vpack.c.bf16 %v6365_v58, %v6364_v9 }
  0xdf   :  { %v7829_v22 = vpop.permute.xlu0 %6372  ;;  %5446 = vmatpush1.bf16.msra.mxu1 %v5445_v57 }
  0xe0   :  { %5419 = vmatpush1.bf16.msra.mxu0 %v5418_v53  ;;  %6667 = vrot.lane.b32.xlu1 %v7446_v37, %s7297_s24 }
  0xe1   :  { %6662 = vrot.lane.b32.xlu0 %v7450_v38, %s7297_s24  ;;  %5420 = vmatprep.subr.bf16.mxu0 %v10822_v60 }
  0xe2   :  { %v7836_v0 = vpop.permute.xlu1 %6387  ;;  %5447 = vmatprep.subr.bf16.mxu1 %v10822_v60 }
  0xe3   :  { %v7839_v3 = vpop.permute.xlu0 %6382 }
  0xe4   :  { %6677 = vrot.lane.b32.xlu1 %v7466_v43, %s7297_s24 }
  0xe5   :  { %6672 = vrot.lane.b32.xlu0 %v7470_v44, %s7297_s24 }
  0xe6   :  { %v7845_v53 = vpop.permute.xlu1 %6397 }
  0xe7   :  { %v7847_v57 = vpop.permute.xlu0 %6392 }
  0xe8   :  { %6687 = vrot.lane.b32.xlu1 %v7486_v49, %s7297_s24 }
  0xe9   :  { %6682 = vrot.lane.b32.xlu0 %v7490_v50, %s7297_s24 }
  0xea   :  { %v7853_v58 = vpop.permute.xlu1 %6407 }
  0xeb   :  { %v7855_v59 = vpop.permute.xlu0 %6402 }
  0xec   :  { %6697 = vrot.lane.b32.xlu1 %v7506_v55, %s7297_s24 }
  0xed   :  { %6692 = vrot.lane.b32.xlu0 %v7510_v56, %s7297_s24 }
  0xee   :  { %v7861_v9 = vpop.permute.xlu1 %6417 }
  0xef   :  { %10823 = vst [vmem:[#allocation29_spill] sm:$0xff] %v7861_v9  ;;  %v7863_v54 = vpop.permute.xlu0 %6412 }
  0xf0   :  { %6707 = vrot.lane.b32.xlu1 %v7354_v8, %s7298_s25 }
  0xf1   :  { %6702 = vrot.lane.b32.xlu0 %v7530_v62, %s7297_s24 }
  0xf2   :  { %v7872_v51 = vpop.permute.xlu1 %6427 }
  0xf3   :  { %10824 = vst [vmem:[#allocation30_spill] sm:$0xff] %v7872_v51  ;;  %v7875_v16 = vpop.permute.xlu0 %6422 }
  0xf4   :  { %10825 = vst [vmem:[#allocation31_spill] sm:$0xff] %v7875_v16  ;;  %6717 = vrot.lane.b32.xlu1 %v7354_v8, %s7299_s28 }
  0xf5   :  { %6712 = vrot.lane.b32.xlu0 %v7368_v12, %s7298_s25 }
  0xf6   :  { %v7885_v19 = vpop.permute.xlu1 %6437 }
  0xf7   :  { %10826 = vst [vmem:[#allocation32_spill] sm:$0xff] %v7885_v19  ;;  %v7887_v51 = vpop.permute.xlu0 %6432 }
  0xf8   :  { %10827 = vst [vmem:[#allocation33_spill] sm:$0xff] %v7887_v51  ;;  %6727 = vrot.lane.b32.xlu1 %v7354_v8, %s7300_s6 }
  0xf9   :  { %6722 = vrot.lane.b32.xlu0 %v7368_v12, %s7299_s28 }
  0xfa   :  { %v7893_v26 = vpop.permute.xlu1 %6447 }
  0xfb   :  { %10828 = vst [vmem:[#allocation34_spill] sm:$0xff] %v7893_v26  ;;  %v7895_v16 = vpop.permute.xlu0 %6442 }
  0xfc   :  { %10829 = vst [vmem:[#allocation35_spill] sm:$0xff] %v7895_v16  ;;  %6737 = vrot.lane.b32.xlu1 %v7526_v61, %s7297_s24 }
  0xfd   :  { %6732 = vrot.lane.b32.xlu0 %v7368_v12, %s7300_s6 }
  0xfe   :  { %v7901_v52 = vpop.permute.xlu1 %6457 }
  0xff   :  { %10830 = vst [vmem:[#allocation36_spill] sm:$0xff] %v7901_v52  ;;  %v7903_v19 = vpop.permute.xlu0 %6452 }
 0x100   :  { %10831 = vst [vmem:[#allocation37_spill] sm:$0xff] %v7903_v19  ;;  %6747 = vrot.lane.b32.xlu1 %v7546_v5, %s7297_s24 }
 0x101   :  { %6742 = vrot.lane.b32.xlu0 %v7550_v6, %s7297_s24 }
 0x102   :  { %v7909_v8 = vpop.permute.xlu1 %6467 }
 0x103   :  { %10832 = vst [vmem:[#allocation38_spill] sm:$0xff] %v7909_v8  ;;  %v7911_v26 = vpop.permute.xlu0 %6462 }
 0x104   :  { %10833 = vst [vmem:[#allocation39_spill] sm:$0xff] %v7911_v26  ;;  %6757 = vrot.lane.b32.xlu1 %v7364_v11, %s7298_s25 }
 0x105   :  { %6752 = vrot.lane.b32.xlu0 %v7343_v4, %s7298_s25 }
 0x106   :  { %v7917_v12 = vpop.permute.xlu1 %6477 }
 0x107   :  { %10834 = vst [vmem:[#allocation40_spill] sm:$0xff] %v7917_v12  ;;  %v7919_v52 = vpop.permute.xlu0 %6472 }
 0x108   :  { %10835 = vst [vmem:[#allocation41_spill] sm:$0xff] %v7919_v52  ;;  %6767 = vrot.lane.b32.xlu1 %v7364_v11, %s7299_s28 }
 0x109   :  { %6762 = vrot.lane.b32.xlu0 %v7343_v4, %s7299_s28 }
 0x10a   :  { %v6488_v19 = vpop.permute.xlu1 %6487 }
 0x10b   :  { %v6490_v8 = vunpack.i.h.bf16 %v6488_v19  ;;  %v6489_v16 = vunpack.i.l.bf16 %v6488_v19  ;;  %v7925_v26 = vpop.permute.xlu0 %6482 }
 0x10c   :  { %10836 = vst [vmem:[#allocation42_spill] sm:$0xff] %v7925_v26  ;;  %6777 = vrot.lane.b32.xlu1 %v7364_v11, %s7300_s6 }
 0x10d   :  { %v5421_v51 = vpack.c.bf16 %v6490_v8, %v6489_v16  ;;  %6772 = vrot.lane.b32.xlu0 %v7343_v4, %s7300_s6 }
 0x10e   :  { %v7931_v12 = vpop.permute.xlu1 %6497 }
 0x10f   :  { %v6493_v52 = vpop.permute.xlu0 %6492  ;;  %5422 = vmatpush1.bf16.msra.mxu0 %v5421_v51 }
 0x110   :  { %v6495_v47 = vunpack.i.h.bf16 %v6493_v52  ;;  %v6494_v7 = vunpack.i.l.bf16 %v6493_v52  ;;  %6787 = vrot.lane.b32.xlu1 %v7566_v14, %s7297_s24  ;;  %5423 = vmatprep.subr.bf16.mxu0 %v10822_v60 }
 0x111   :  { %6782 = vrot.lane.b32.xlu0 %v7570_v15, %s7297_s24 }
 0x112   :  { %v7938_v19 = vpop.permute.xlu1 %6507  ;;  %v5448_v11 = vpack.c.bf16 %v6495_v47, %v6494_v7 }
 0x113   :  { %v7940_v16 = vpop.permute.xlu0 %6502 }
 0x114   :  { %5449 = vmatpush1.bf16.msra.mxu1 %v5448_v11  ;;  %6797 = vrot.lane.b32.xlu1 %v7388_v18, %s7298_s25 }
 0x115   :  { %6792 = vrot.lane.b32.xlu0 %v7582_v20, %s7297_s24  ;;  %5450 = vmatprep.subr.bf16.mxu1 %v10822_v60 }
 0x116   :  { %v7947_v4 = vpop.permute.xlu1 %6517 }
 0x117   :  { %v7949_v51 = vpop.permute.xlu0 %6512 }
 0x118   :  { %6807 = vrot.lane.b32.xlu1 %v7388_v18, %s7299_s28 }
 0x119   :  { %6802 = vrot.lane.b32.xlu0 %v7384_v17, %s7298_s25 }
 0x11a   :  { %v7955_v47 = vpop.permute.xlu1 %6527 }
 0x11b   :  { %v7957_v7 = vpop.permute.xlu0 %6522 }
 0x11c   :  { %6817 = vrot.lane.b32.xlu1 %v7388_v18, %s7300_s6 }
 0x11d   :  { %6812 = vrot.lane.b32.xlu0 %v7384_v17, %s7299_s28 }
 0x11e   :  { %v7963_v52 = vpop.permute.xlu1 %6537 }
 0x11f   :  { %10837 = vst [vmem:[#allocation43_spill] sm:$0xff] %v7963_v52  ;;  %v7965_v8 = vpop.permute.xlu0 %6532  ;;  %v6130_v52 = vunpack.i.h.bf16 %v7633_v27 }
 0x120   :  { %6827 = vrot.lane.b32.xlu1 %v7408_v25, %s7298_s25 }
 0x121   :  { %6822 = vrot.lane.b32.xlu0 %v7384_v17, %s7300_s6 }
 0x122   :  { %v7971_v11 = vpop.permute.xlu1 %6547 }
 0x123   :  { %10838 = vst [vmem:[#allocation44_spill] sm:$0xff] %v7971_v11  ;;  %v7973_v26 = vpop.permute.xlu0 %6542 }
 0x124   :  { %10839 = vst [vmem:[#allocation45_spill] sm:$0xff] %v7973_v26  ;;  %6837 = vrot.lane.b32.xlu1 %v7429_v32, %s7298_s25 }
 0x125   :  { %6832 = vrot.lane.b32.xlu0 %v7404_v24, %s7298_s25 }
 0x126   :  { %v7979_v18 = vpop.permute.xlu1 %6557 }
 0x127   :  { %10840 = vst [vmem:[#allocation46_spill] sm:$0xff] %v7979_v18  ;;  %v7981_v48 = vpop.permute.xlu0 %6552 }
 0x128   :  { %10841 = vst [vmem:[#allocation47_spill] sm:$0xff] %v7981_v48  ;;  %6847 = vrot.lane.b32.xlu1 %v7408_v25, %s7299_s28 }
 0x129   :  { %6842 = vrot.lane.b32.xlu0 %v7425_v31, %s7298_s25 }
 0x12a   :  { %v7987_v17 = vpop.permute.xlu1 %6567 }
 0x12b   :  { %10842 = vst [vmem:[#allocation48_spill] sm:$0xff] %v7987_v17  ;;  %v7989_v11 = vpop.permute.xlu0 %6562 }
 0x12c   :  { %10843 = vst [vmem:[#allocation49_spill] sm:$0xff] %v7989_v11  ;;  %6857 = vrot.lane.b32.xlu1 %v7408_v25, %s7300_s6 }
 0x12d   :  { %6852 = vrot.lane.b32.xlu0 %v7404_v24, %s7299_s28 }
 0x12e   :  { %v7995_v26 = vpop.permute.xlu1 %6577 }
 0x12f   :  { %10844 = vst [vmem:[#allocation50_spill] sm:$0xff] %v7995_v26  ;;  %v7997_v18 = vpop.permute.xlu0 %6572 }
 0x130   :  { %10845 = vst [vmem:[#allocation51_spill] sm:$0xff] %v7997_v18  ;;  %6867 = vrot.lane.b32.xlu1 %v7450_v38, %s7298_s25 }
 0x131   :  { %6862 = vrot.lane.b32.xlu0 %v7404_v24, %s7300_s6 }
 0x132   :  { %v8003_v48 = vpop.permute.xlu1 %6587 }
 0x133   :  { %10846 = vst [vmem:[#allocation52_spill] sm:$0xff] %v8003_v48  ;;  %v8005_v17 = vpop.permute.xlu0 %6582 }
 0x134   :  { %10847 = vst [vmem:[#allocation53_spill] sm:$0xff] %v8005_v17  ;;  %6877 = vrot.lane.b32.xlu1 %v7470_v44, %s7298_s25 }
 0x135   :  { %6872 = vrot.lane.b32.xlu0 %v7446_v37, %s7298_s25 }
 0x136   :  { %v8011_v25 = vpop.permute.xlu1 %6597 }
 0x137   :  { %10848 = vst [vmem:[#allocation54_spill] sm:$0xff] %v8011_v25  ;;  %v8013_v26 = vpop.permute.xlu0 %6592 }
 0x138   :  { %10849 = vst [vmem:[#allocation55_spill] sm:$0xff] %v8013_v26  ;;  %6887 = vrot.lane.b32.xlu1 %v7490_v50, %s7298_s25 }
 0x139   :  { %6882 = vrot.lane.b32.xlu0 %v7466_v43, %s7298_s25 }
 0x13a   :  { %v8019_v24 = vpop.permute.xlu1 %6607 }
 0x13b   :  { %10850 = vst [vmem:[#allocation56_spill] sm:$0xff] %v8019_v24  ;;  %v8021_v48 = vpop.permute.xlu0 %6602 }
 0x13c   :  { %10851 = vst [vmem:[#allocation57_spill] sm:$0xff] %v8021_v48  ;;  %6897 = vrot.lane.b32.xlu1 %v7425_v31, %s7299_s28 }
 0x13d   :  { %6892 = vrot.lane.b32.xlu0 %v7429_v32, %s7299_s28 }
 0x13e   :  { %v6618_v37 = vpop.permute.xlu1 %6617 }
 0x13f   :  { %v6620_v44 = vunpack.i.h.bf16 %v6618_v37  ;;  %v6619_v25 = vunpack.i.l.bf16 %v6618_v37  ;;  %v6613_v26 = vpop.permute.xlu0 %6612 }
 0x140   :  { %v6615_v17 = vunpack.i.h.bf16 %v6613_v26  ;;  %v6614_v18 = vunpack.i.l.bf16 %v6613_v26  ;;  %6907 = vrot.lane.b32.xlu1 %v7425_v31, %s7300_s6 }
 0x141   :  { %v5451_v43 = vpack.c.bf16 %v6620_v44, %v6619_v25  ;;  %6902 = vrot.lane.b32.xlu0 %v7429_v32, %s7300_s6 }
 0x142   :  { %v8031_v50 = vpop.permute.xlu1 %6627  ;;  %v5424_v24 = vpack.c.bf16 %v6615_v17, %v6614_v18 }
 0x143   :  { %v8033_v48 = vpop.permute.xlu0 %6622  ;;  %5452 = vmatpush1.bf16.msra.mxu1 %v5451_v43 }
 0x144   :  { %5425 = vmatpush1.bf16.msra.mxu0 %v5424_v24  ;;  %5453 = vmatprep.subr.bf16.mxu1 %v10822_v60 }
 0x145   :  { %5426 = vmatprep.subr.bf16.mxu0 %v10822_v60  ;;  %6917 = vrot.lane.b32.xlu1 %v7510_v56, %s7298_s25  ;;  %v7213_v56 = vld [vmem:[%s10700_s0 + $0xa0] sm:$0xff] }
 0x146   :  { %v8039_v26 = vpop.permute.xlu1 %6637  ;;  %6912 = vrot.lane.b32.xlu0 %v7486_v49, %s7298_s25  ;;  %v7214_v49 = vld [vmem:[%s10700_s0 + $0xa8] sm:$0xff] }
 0x147   :  { %v8043_v31 = vpop.permute.xlu0 %6632  ;;  %v6946_v17 = vpack.i.bf16 %v7214_v49, %v7213_v56 }
 0x149   :  { %6927 = vrot.lane.b32.xlu1 %v7530_v62, %s7298_s25 }
 0x14a   :  { %v8047_v32 = vpop.permute.xlu1 %6647  ;;  %6922 = vrot.lane.b32.xlu0 %v7506_v55, %s7298_s25  ;;  %v7215_v55 = vld [vmem:[%s10700_s0 + $0xb0] sm:$0xff] }
 0x14b   :  { %v8051_v18 = vpop.permute.xlu0 %6642 }
 0x14d   :  { %6937 = vrot.lane.b32.xlu1 %v7450_v38, %s7299_s28  ;;  %v7216_v38 = vld [vmem:[%s10700_s0 + $0xb8] sm:$0xff] }
 0x14e   :  { %v8061_v62 = vpop.permute.xlu1 %6657  ;;  %6932 = vrot.lane.b32.xlu0 %v7526_v61, %s7298_s25  ;;  %v6941_v25 = vpack.i.bf16 %v7216_v38, %v7215_v55 }
 0x14f   :  { %v8071_v24 = vpop.permute.xlu0 %6652 }
 0x151   :  { %6947 = vrot.lane.b32.xlu1 %v6946_v17, %s7300_s6  ;;  %v7218_v17 = vld [vmem:[%s10700_s0 + $0xd8] sm:$0xff] }
 0x152   :  { %v8074_v37 = vpop.permute.xlu1 %6667  ;;  %6942 = vrot.lane.b32.xlu0 %v6941_v25, %s7299_s28 }
 0x153   :  { %10852 = vst [vmem:[#allocation58_spill] sm:$0xff] %v8074_v37  ;;  %v8077_v44 = vpop.permute.xlu0 %6662  ;;  %v7223_v37 = vld [vmem:[%s10700_s0 + $0xf0] sm:$0xff] }
 0x154   :  { %10853 = vst [vmem:[#allocation59_spill] sm:$0xff] %v8077_v44  ;;  %v6124_v44 = vunpack.i.l.bf16 %v7627_v21 }
 0x155   :  { %6957 = vrot.lane.b32.xlu1 %v7550_v6, %s7298_s25  ;;  %v7217_v6 = vld [vmem:[%s10700_s0 + $0xd0] sm:$0xff] }
 0x156   :  { %v8081_v61 = vpop.permute.xlu1 %6677  ;;  %6952 = vrot.lane.b32.xlu0 %v6941_v25, %s7300_s6  ;;  %v6986_v55 = vpack.i.bf16 %v7218_v17, %v7217_v6 }
 0x157   :  { %10854 = vst [vmem:[#allocation60_spill] sm:$0xff] %v8081_v61  ;;  %v8084_v43 = vpop.permute.xlu0 %6672 }
 0x158   :  { %10855 = vst [vmem:[#allocation61_spill] sm:$0xff] %v8084_v43 }
 0x159   :  { %6967 = vrot.lane.b32.xlu1 %v7570_v15, %s7298_s25 }
 0x15a   :  { %v8088_v56 = vpop.permute.xlu1 %6687  ;;  %6962 = vrot.lane.b32.xlu0 %v7546_v5, %s7298_s25  ;;  %v7219_v5 = vld [vmem:[%s10700_s0 + $0xc0] sm:$0xff] }
 0x15b   :  { %10856 = vst [vmem:[#allocation62_spill] sm:$0xff] %v8088_v56  ;;  %v8092_v49 = vpop.permute.xlu0 %6682 }
 0x15c   :  { %10857 = vst [vmem:[#allocation63_spill] sm:$0xff] %v8092_v49 }
 0x15d   :  { %6977 = vrot.lane.b32.xlu1 %v7582_v20, %s7298_s25  ;;  %v7220_v20 = vld [vmem:[%s10700_s0 + $0xc8] sm:$0xff] }
 0x15e   :  { %v8102_v15 = vpop.permute.xlu1 %6697  ;;  %6972 = vrot.lane.b32.xlu0 %v7566_v14, %s7298_s25  ;;  %v6981_v38 = vpack.i.bf16 %v7220_v20, %v7219_v5  ;;  %v7221_v20 = vld [vmem:[%s10700_s0 + $0xe0] sm:$0xff] }
 0x15f   :  { %10858 = vst [vmem:[#allocation64_spill] sm:$0xff] %v8102_v15  ;;  %v8112_v25 = vpop.permute.xlu0 %6692 }
 0x160   :  { %10859 = vst [vmem:[#allocation65_spill] sm:$0xff] %v8112_v25 }
 0x161   :  { %6987 = vrot.lane.b32.xlu1 %v6986_v55, %s7299_s28 }
 0x162   :  { %v6708_v56 = vpop.permute.xlu1 %6707  ;;  %6982 = vrot.lane.b32.xlu0 %v6981_v38, %s7299_s28 }
 0x163   :  { %v6710_v6 = vunpack.i.h.bf16 %v6708_v56  ;;  %v6709_v17 = vunpack.i.l.bf16 %v6708_v56  ;;  %v8116_v15 = vpop.permute.xlu0 %6702  ;;  %v7222_v56 = vld [vmem:[%s10700_s0 + $0xe8] sm:$0xff] }
 0x164   :  { %10860 = vst [vmem:[#allocation66_spill] sm:$0xff] %v8116_v15  ;;  %v8126_v25 = vpack.i.bf16 %v7222_v56, %v7221_v20 }
 0x165   :  { %v5427_v14 = vpack.c.bf16 %v6710_v6, %v6709_v17  ;;  %6997 = vrot.lane.b32.xlu1 %v6986_v55, %s7300_s6 }
 0x166   :  { %v6718_v11 = vpop.permute.xlu1 %6717  ;;  %6992 = vrot.lane.b32.xlu0 %v6981_v38, %s7300_s6 }
 0x167   :  { %v6720_v49 = vunpack.i.h.bf16 %v6718_v11  ;;  %v6719_v61 = vunpack.i.l.bf16 %v6718_v11  ;;  %v6713_v5 = vpop.permute.xlu0 %6712  ;;  %5428 = vmatpush1.bf16.msra.mxu0 %v5427_v14 }
 0x168   :  { %v6715_v6 = vunpack.i.h.bf16 %v6713_v5  ;;  %v6714_v17 = vunpack.i.l.bf16 %v6713_v5  ;;  %5429 = vmatprep.subr.bf16.mxu0 %v10822_v60  ;;  %v7224_v5 = vld [vmem:[%s10700_s0 + $0xf8] sm:$0xff] }
 0x169   :  { %v5430_v55 = vpack.c.bf16 %v6720_v49, %v6719_v61  ;;  %v8137_v20 = vpack.i.bf16 %v7224_v5, %v7223_v37  ;;  %v7225_v61 = vld [vmem:[%s10700_s0 + $0x100] sm:$0xff]  ;;  %v7226_v49 = vld [vmem:[%s10700_s0 + $0x108] sm:$0xff] }
 0x16a   :  { %v6728_v38 = vpop.permute.xlu1 %6727  ;;  %v5454_v15 = vpack.c.bf16 %v6715_v6, %v6714_v17  ;;  %7002 = vrot.lane.b32.xlu0 %v8126_v25, %s7299_s28  ;;  %v8145_v56 = vpack.i.bf16 %v7226_v49, %v7225_v61  ;;  %v1320_v5 = vld [vmem:[%s10701_s1] sm:$0xff]  ;;  %v7230_v61 = vld [vmem:[%s10700_s0 + $0x118] sm:$0xff] }
 0x16b   :  { %v6730_v11 = vunpack.i.h.bf16 %v6728_v38  ;;  %v6729_v14 = vunpack.i.l.bf16 %v6728_v38  ;;  %v6723_v43 = vpop.permute.xlu0 %6722  ;;  %5431 = vmatpush1.bf16.msra.mxu0 %v5430_v55  ;;  %7007 = vrot.lane.b32.xlu1 %v8137_v20, %s7299_s28 }
 0x16c   :  { %v6725_v6 = vunpack.i.h.bf16 %v6723_v43  ;;  %v6724_v17 = vunpack.i.l.bf16 %v6723_v43  ;;  %5455 = vmatpush1.bf16.msra.mxu1 %v5454_v15  ;;  %5432 = vmatprep.subr.bf16.mxu0 %v10822_v60  ;;  %v7227_v43 = vld [vmem:[%s10700_s0 + $0x20] sm:$0xff]  ;;  %v7228_v15 = vld [vmem:[%s10700_s0 + $0x28] sm:$0xff] }
 0x16d   :  { %5456 = vmatprep.subr.bf16.mxu1 %v10822_v60  ;;  %v5433_v55 = vpack.c.bf16 %v6730_v11, %v6729_v14  ;;  %v5463_v11 = vpack.c.bf16 %v7228_v15, %v7227_v43  ;;  %v7229_v14 = vld [vmem:[%s10700_s0 + $0x110] sm:$0xff] }
 0x16e   :  { %v5457_v37 = vpack.c.bf16 %v6725_v6, %v6724_v17  ;;  %7012 = vrot.lane.b32.xlu0 %v8145_v56, %s7299_s28  ;;  %v8168_v49 = vpack.i.bf16 %v7230_v61, %v7229_v14  ;;  %v7231_v6 = vld [vmem:[%s10700_s0 + $0x120] sm:$0xff]  ;;  %v7232_v17 = vld [vmem:[%s10700_s0 + $0x128] sm:$0xff]  ;;  %v1323_v14 = vld [vmem:[%s10701_s1 + $0x18] sm:$0xff]  ;;  %v6125_v61 = vunpack.i.h.bf16 %v7627_v21  ;;  %v8217_v9 = vpop.permute.xlu1 %6737 }
 0x16f   :  { %v6733_v38 = vpop.permute.xlu0 %6732  ;;  %5434 = vmatpush1.bf16.msra.mxu0 %v5433_v55  ;;  %v8176_v55 = vpack.i.bf16 %v7232_v17, %v7231_v6  ;;  %v7233_v21 = vld [vmem:[%s10700_s0 + $0x130] sm:$0xff] }
 0x170   :  { %v6735_v43 = vunpack.i.h.bf16 %v6733_v38  ;;  %v6734_v15 = vunpack.i.l.bf16 %v6733_v38  ;;  %5458 = vmatpush1.bf16.msra.mxu1 %v5457_v37  ;;  %5462 = vmatprep.subr.bf16.mxu0 %v10822_v60  ;;  %v1322_v37 = vld [vmem:[%s10701_s1 + $0x10] sm:$0xff]  ;;  %v7234_v38 = vld [vmem:[%s10700_s0 + $0x138] sm:$0xff] }
 0x171   :  { %5459 = vmatprep.subr.bf16.mxu1 %v10822_v60  ;;  %7017 = vrot.lane.b32.xlu1 %v8168_v49, %s7299_s28  ;;  %v7235_v17 = vld [vmem:[%s10700_s0 + $0x30] sm:$0xff] }
 0x172   :  { %1942 = vmatmul.mubr.f32.vlgmr.msra.gmra.mrb[0].mxu0 %v1320_v5  ;;  %v5460_v6 = vpack.c.bf16 %v6735_v43, %v6734_v15  ;;  %7022 = vrot.lane.b32.xlu0 %v8176_v55, %s7299_s28  ;;  %v8199_v5 = vpack.i.bf16 %v7234_v38, %v7233_v21  ;;  %v7236_v43 = vld [vmem:[%s10700_s0 + $0x38] sm:$0xff]  ;;  %v6250_v21 = vunpack.i.h.bf16 %v7727_v13 }
 0x173   :  { %5464 = vmatpush1.bf16.msra.mxu0 %v5463_v11  ;;  %5358 = vmatprep.mubr.msk.f32.mxu0 %vm1870_vm0, %v1323_v14  ;;  %v1324_v11 = vld [vmem:[%s10701_s1 + $0x20] sm:$0xff]  ;;  %v5490_v15 = vpack.c.bf16 %v7236_v43, %v7235_v17  ;;  %v5466_v14 = vpack.c.bf16 %v6125_v61, %v6124_v44  ;;  %v1327_v38 = vld [vmem:[%s10701_s1 + $0x38] sm:$0xff]  ;;  %v6129_v17 = vunpack.i.l.bf16 %v7633_v27  ;;  %v8223_v44 = vpop.permute.xlu0 %6742  ;;  %v1326_v61 = vld [vmem:[%s10701_s1 + $0x30] sm:$0xff]  ;;  %v6374_v43 = vunpack.i.l.bf16 %v7829_v22 }
 0x174   :  { %5461 = vmatpush1.bf16.msra.mxu1 %v5460_v6  ;;  %5465 = vmatprep.subr.bf16.mxu0 %v10822_v60  ;;  %v6249_v6 = vunpack.i.l.bf16 %v7727_v13  ;;  %v1329_v13 = vld [vmem:[%s10701_s1 + $0x48] sm:$0xff] }
 0x175   :  { %5489 = vmatprep.subr.bf16.mxu1 %v10822_v60  ;;  %7027 = vrot.lane.b32.xlu1 %v8199_v5, %s7299_s28 }
 0x176   :  { %1947 = vmatmul.mubr.f32.gmra.mrb[2].mxu0 %v1322_v37  ;;  %7032 = vrot.lane.b32.xlu0 %v8126_v25, %s7300_s6  ;;  %v5469_v27 = vpack.c.bf16 %v6250_v21, %v6249_v6  ;;  %v6375_v37 = vunpack.i.h.bf16 %v7829_v22  ;;  %v5493_v25 = vpack.c.bf16 %v6130_v52, %v6129_v17  ;;  %v8246_v22 = vpop.permute.xlu1 %6747  ;;  %v6499_v6 = vunpack.i.l.bf16 %v7931_v12 }
 0x177   :  { %2023 = vmatmul.mubr.f32.vlgmr.msra.gmra.mrb[0].mxu1 %v1324_v11  ;;  %5467 = vmatpush1.bf16.msra.mxu0 %v5466_v14  ;;  %v6255_v11 = vunpack.i.h.bf16 %v7736_v28  ;;  %v1333_v14 = vld [vmem:[%s10701_s1 + $0x68] sm:$0xff]  ;;  %v6753_v52 = vpop.permute.xlu0 %6752  ;;  %v6379_v17 = vunpack.i.l.bf16 %v7827_v63 }
 0x178   :  { %5491 = vmatpush1.bf16.msra.mxu1 %v5490_v15  ;;  %5360 = vmatprep.mubr.msk.f32.mxu1 %vm1870_vm0, %v1327_v38  ;;  %v6254_v15 = vunpack.i.l.bf16 %v7736_v28  ;;  %v5472_v21 = vpack.c.bf16 %v6375_v37, %v6374_v43  ;;  %v6500_v28 = vunpack.i.h.bf16 %v7931_v12  ;;  %v6505_v43 = vunpack.i.h.bf16 %v7940_v16 }
 0x179   :  { %5468 = vmatprep.subr.bf16.mxu0 %v10822_v60  ;;  %5492 = vmatprep.subr.bf16.mxu1 %v10822_v60 }
 0x17a   :  { %5361 = vmatprep.mubr.msk.f32.mxu0 %vm1870_vm0, %v1329_v13  ;;  %7037 = vrot.lane.b32.xlu1 %v8137_v20, %s7300_s6  ;;  %v5496_v38 = vpack.c.bf16 %v6255_v11, %v6254_v15  ;;  %v6380_v20 = vunpack.i.h.bf16 %v7827_v63  ;;  %v5475_v13 = vpack.c.bf16 %v6500_v28, %v6499_v6  ;;  %v6758_v12 = vpop.permute.xlu1 %6757  ;;  %v6755_v63 = vunpack.i.h.bf16 %v6753_v52 }
 0x17b   :  { %2028 = vmatmul.mubr.f32.gmra.mrb[2].mxu1 %v1326_v61  ;;  %5470 = vmatpush1.bf16.msra.mxu0 %v5469_v27  ;;  %v6625_v61 = vunpack.i.h.bf16 %v8033_v48  ;;  %v6624_v27 = vunpack.i.l.bf16 %v8033_v48  ;;  %v6763_v11 = vpop.permute.xlu0 %6762  ;;  %v6754_v15 = vunpack.i.l.bf16 %v6753_v52  ;;  %v6630_v48 = vunpack.i.h.bf16 %v8031_v50 }
 0x17c   :  { %5494 = vmatpush1.bf16.msra.mxu1 %v5493_v25  ;;  %5471 = vmatprep.subr.bf16.mxu0 %v10822_v60  ;;  %v5499_v37 = vpack.c.bf16 %v6380_v20, %v6379_v17  ;;  %v6504_v25 = vunpack.i.l.bf16 %v7940_v16  ;;  %v6629_v28 = vunpack.i.l.bf16 %v8031_v50  ;;  %v6764_v20 = vunpack.i.l.bf16 %v6763_v11 }
 0x17d   :  { %5495 = vmatprep.subr.bf16.mxu1 %v10822_v60  ;;  %5363 = vmatprep.mubr.msk.f32.mxu1 %vm1870_vm0, %v1333_v14  ;;  %v5478_v14 = vpack.c.bf16 %v6625_v61, %v6624_v27  ;;  %v5481_v6 = vpack.c.bf16 %v6755_v63, %v6754_v15  ;;  %v6760_v17 = vunpack.i.h.bf16 %v6758_v12  ;;  %v7237_v15 = vld [vmem:[%s10700_s0 + $0x150] sm:$0xff] }
 0x17e   :  { %v6768_v16 = vpop.permute.xlu1 %6767  ;;  %v5505_v61 = vpack.c.bf16 %v6630_v48, %v6629_v28  ;;  %v7239_v48 = vld [vmem:[%s10700_s0 + $0x140] sm:$0xff]  ;;  %v7240_v28 = vld [vmem:[%s10700_s0 + $0x148] sm:$0xff] }
 0x17f   :  { %5473 = vmatpush1.bf16.msra.mxu0 %v5472_v21  ;;  %v5502_v21 = vpack.c.bf16 %v6505_v43, %v6504_v25  ;;  %v6773_v52 = vpop.permute.xlu0 %6772  ;;  %v6770_v50 = vunpack.i.h.bf16 %v6768_v16  ;;  %v6769_v63 = vunpack.i.l.bf16 %v6768_v16 }
 0x180   :  { %5497 = vmatpush1.bf16.msra.mxu1 %v5496_v38  ;;  %5474 = vmatprep.subr.bf16.mxu0 %v10822_v60  ;;  %v6765_v38 = vunpack.i.h.bf16 %v6763_v11  ;;  %v6774_v43 = vunpack.i.l.bf16 %v6773_v52 }
 0x181   :  { %5498 = vmatprep.subr.bf16.mxu1 %v10822_v60 }
 0x182   :  { %v5484_v27 = vpack.c.bf16 %v6765_v38, %v6764_v20  ;;  %v6778_v11 = vpop.permute.xlu1 %6777  ;;  %v5511_v38 = vpack.c.bf16 %v6770_v50, %v6769_v63  ;;  %v7246_v50 = vld [vmem:[%s10700_s0 + $0x168] sm:$0xff] }
 0x183   :  { %5476 = vmatpush1.bf16.msra.mxu0 %v5475_v13  ;;  %v6759_v13 = vunpack.i.l.bf16 %v6758_v12  ;;  %v6780_v20 = vunpack.i.h.bf16 %v6778_v11  ;;  %v6779_v16 = vunpack.i.l.bf16 %v6778_v11 }
 0x184   :  { %5500 = vmatpush1.bf16.msra.mxu1 %v5499_v37  ;;  %5477 = vmatprep.subr.bf16.mxu0 %v10822_v60  ;;  %v6775_v37 = vunpack.i.h.bf16 %v6773_v52  ;;  %v7242_v52 = vld [vmem:[%s10700_s0 + $0x48] sm:$0xff] }
 0x185   :  { %5501 = vmatprep.subr.bf16.mxu1 %v10822_v60  ;;  %v5508_v25 = vpack.c.bf16 %v6760_v17, %v6759_v13  ;;  %v1328_v17 = vld [vmem:[%s10701_s1 + $0x40] sm:$0xff]  ;;  %v5514_v11 = vpack.c.bf16 %v6780_v20, %v6779_v16  ;;  %v7249_v16 = vld [vmem:[%s10700_s0 + $0x50] sm:$0xff] }
 0x186   :  { %v5487_v12 = vpack.c.bf16 %v6775_v37, %v6774_v43  ;;  %v7241_v13 = vld [vmem:[%s10700_s0 + $0x40] sm:$0xff]  ;;  %v7244_v37 = vld [vmem:[%s10700_s0 + $0x178] sm:$0xff] }
 0x187   :  { %5479 = vmatpush1.bf16.msra.mxu0 %v5478_v14  ;;  %v7238_v14 = vld [vmem:[%s10700_s0 + $0x158] sm:$0xff]  ;;  %v1332_v20 = vld [vmem:[%s10701_s1 + $0x60] sm:$0xff] }
 0x188   :  { %5503 = vmatpush1.bf16.msra.mxu1 %v5502_v21  ;;  %5480 = vmatprep.subr.bf16.mxu0 %v10822_v60  ;;  %v8275_v21 = vpack.i.bf16 %v7238_v14, %v7237_v15  ;;  %v6135_v15 = vunpack.i.h.bf16 %v7642_v36  ;;  %v6134_v14 = vunpack.i.l.bf16 %v7642_v36  ;;  %v7247_v36 = vld [vmem:[%s10700_s0 + $0x180] sm:$0xff] }
 0x189   :  { %5504 = vmatprep.subr.bf16.mxu1 %v10822_v60 }
 0x18a   :  { %7047 = vrot.lane.b32.xlu1 %v8275_v21, %s7299_s28 }
 0x18b   :  { %5482 = vmatpush1.bf16.msra.mxu0 %v5481_v6  ;;  %v8283_v6 = vpack.i.bf16 %v7240_v28, %v7239_v48  ;;  %v1330_v48 = vld [vmem:[%s10701_s1 + $0x50] sm:$0xff]  ;;  %v7248_v28 = vld [vmem:[%s10700_s0 + $0x188] sm:$0xff] }
 0x18c   :  { %5506 = vmatpush1.bf16.msra.mxu1 %v5505_v61  ;;  %5483 = vmatprep.subr.bf16.mxu0 %v10822_v60  ;;  %v5517_v61 = vpack.c.bf16 %v7242_v52, %v7241_v13  ;;  %v5520_v52 = vpack.c.bf16 %v6135_v15, %v6134_v14  ;;  %v6385_v15 = vunpack.i.h.bf16 %v7839_v3  ;;  %v6384_v14 = vunpack.i.l.bf16 %v7839_v3 }
 0x18d   :  { %5507 = vmatprep.subr.bf16.mxu1 %v10822_v60  ;;  %7042 = vrot.lane.b32.xlu0 %v8283_v6, %s7299_s28 }
 0x18f   :  { %5485 = vmatpush1.bf16.msra.mxu0 %v5484_v27  ;;  %v7243_v27 = vld [vmem:[%s10700_s0 + $0x170] sm:$0xff] }
 0x190   :  { %5509 = vmatpush1.bf16.msra.mxu1 %v5508_v25  ;;  %5486 = vmatprep.subr.bf16.mxu0 %v10822_v60  ;;  %v8306_v43 = vpack.i.bf16 %v7244_v37, %v7243_v27  ;;  %v7245_v25 = vld [vmem:[%s10700_s0 + $0x160] sm:$0xff]  ;;  %v6259_v27 = vunpack.i.l.bf16 %v7734_v23  ;;  %v1335_v37 = vld [vmem:[%s10701_s1 + $0x78] sm:$0xff] }
 0x191   :  { %5510 = vmatprep.subr.bf16.mxu1 %v10822_v60  ;;  %v8314_v63 = vpack.i.bf16 %v7246_v50, %v7245_v25  ;;  %v8355_v25 = vpop.permute.xlu0 %6782  ;;  %v6140_v50 = vunpack.i.h.bf16 %v7640_v34 }
 0x192   :  { %7057 = vrot.lane.b32.xlu1 %v8306_v43, %s7299_s28 }
 0x193   :  { %5488 = vmatpush1.bf16.msra.mxu0 %v5487_v12  ;;  %v1331_v12 = vld [vmem:[%s10701_s1 + $0x58] sm:$0xff]  ;;  %7052 = vrot.lane.b32.xlu0 %v8314_v63, %s7299_s28 }
 0x194   :  { %5512 = vmatpush1.bf16.msra.mxu1 %v5511_v38  ;;  %5516 = vmatprep.subr.bf16.mxu0 %v10822_v60  ;;  %v8337_v38 = vpack.i.bf16 %v7248_v28, %v7247_v36  ;;  %v6265_v36 = vunpack.i.h.bf16 %v7745_v30  ;;  %v6264_v28 = vunpack.i.l.bf16 %v7745_v30  ;;  %v6510_v30 = vunpack.i.h.bf16 %v7938_v19 }
 0x195   :  { %5513 = vmatprep.subr.bf16.mxu1 %v10822_v60  ;;  %v8384_v3 = vpop.permute.xlu0 %6792 }
 0x196   :  { %2104 = vmatmul.mubr.f32.vlgmr.msra.gmra.mrb[4].mxu0 %v1328_v17  ;;  %v7250_v17 = vld [vmem:[%s10700_s0 + $0x58] sm:$0xff]  ;;  %7067 = vrot.lane.b32.xlu1 %v8145_v56, %s7300_s6  ;;  %v1334_v56 = vld [vmem:[%s10701_s1 + $0x70] sm:$0xff] }
 0x197   :  { %5518 = vmatpush1.bf16.msra.mxu0 %v5517_v61  ;;  %5362 = vmatprep.mubr.msk.f32.mxu0 %vm1870_vm0, %v1331_v12  ;;  %v5544_v13 = vpack.c.bf16 %v7250_v17, %v7249_v16  ;;  %v6260_v61 = vunpack.i.h.bf16 %v7734_v23  ;;  %v8361_v12 = vpop.permute.xlu1 %6787  ;;  %v1337_v23 = vld [vmem:[%s10701_s1 + $0x88] sm:$0xff]  ;;  %v5526_v17 = vpack.c.bf16 %v6385_v15, %v6384_v14  ;;  %v6640_v15 = vunpack.i.h.bf16 %v8039_v26 }
 0x198   :  { %5515 = vmatpush1.bf16.msra.mxu1 %v5514_v11  ;;  %5519 = vmatprep.subr.bf16.mxu0 %v10822_v60  ;;  %v6139_v11 = vunpack.i.l.bf16 %v7640_v34 }
 0x199   :  { %5543 = vmatprep.subr.bf16.mxu1 %v10822_v60  ;;  %7062 = vrot.lane.b32.xlu0 %v8337_v38, %s7299_s28  ;;  %v5523_v34 = vpack.c.bf16 %v6260_v61, %v6259_v27  ;;  %v6389_v61 = vunpack.i.l.bf16 %v7836_v0  ;;  %v6635_v27 = vunpack.i.h.bf16 %v8043_v31 }
 0x19a   :  { %2109 = vmatmul.mubr.f32.gmra.mrb[6].mxu0 %v1330_v48  ;;  %v5547_v48 = vpack.c.bf16 %v6140_v50, %v6139_v11  ;;  %7077 = vrot.lane.b32.xlu1 %v8176_v55, %s7300_s6  ;;  %v6390_v55 = vunpack.i.h.bf16 %v7836_v0  ;;  %v6803_v50 = vpop.permute.xlu0 %6802  ;;  %v6515_v0 = vunpack.i.h.bf16 %v7949_v51 }
 0x19b   :  { %2185 = vmatmul.mubr.f32.vlgmr.msra.gmra.mrb[4].mxu1 %v1332_v20  ;;  %5521 = vmatpush1.bf16.msra.mxu0 %v5520_v52  ;;  %v1341_v20 = vld [vmem:[%s10701_s1 + $0xa8] sm:$0xff]  ;;  %v6798_v16 = vpop.permute.xlu1 %6797  ;;  %v5550_v52 = vpack.c.bf16 %v6265_v36, %v6264_v28  ;;  %v6805_v36 = vunpack.i.h.bf16 %v6803_v50  ;;  %v6804_v28 = vunpack.i.l.bf16 %v6803_v50 }
 0x19c   :  { %5545 = vmatpush1.bf16.msra.mxu1 %v5544_v13  ;;  %5364 = vmatprep.mubr.msk.f32.mxu1 %vm1870_vm0, %v1335_v37  ;;  %v6509_v13 = vunpack.i.l.bf16 %v7938_v19  ;;  %v6634_v37 = vunpack.i.l.bf16 %v8043_v31  ;;  %v5553_v11 = vpack.c.bf16 %v6390_v55, %v6389_v61  ;;  %v7252_v50 = vld [vmem:[%s10700_s0 + $0x68] sm:$0xff] }
 0x19d   :  { %5522 = vmatprep.subr.bf16.mxu0 %v10822_v60  ;;  %5546 = vmatprep.subr.bf16.mxu1 %v10822_v60 }
 0x19e   :  { %5365 = vmatprep.mubr.msk.f32.mxu0 %vm1870_vm0, %v1337_v23  ;;  %7072 = vrot.lane.b32.xlu0 %v8168_v49, %s7300_s6  ;;  %v5529_v19 = vpack.c.bf16 %v6510_v30, %v6509_v13  ;;  %v6514_v49 = vunpack.i.l.bf16 %v7949_v51  ;;  %v5532_v31 = vpack.c.bf16 %v6635_v27, %v6634_v37  ;;  %v6639_v51 = vunpack.i.l.bf16 %v8039_v26  ;;  %v7251_v37 = vld [vmem:[%s10700_s0 + $0x60] sm:$0xff] }
 0x19f   :  { %2190 = vmatmul.mubr.f32.gmra.mrb[6].mxu1 %v1334_v56  ;;  %5524 = vmatpush1.bf16.msra.mxu0 %v5523_v34  ;;  %v6808_v23 = vpop.permute.xlu1 %6807  ;;  %v6799_v56 = vunpack.i.l.bf16 %v6798_v16 }
 0x1a0   :  { %5548 = vmatpush1.bf16.msra.mxu1 %v5547_v48  ;;  %5525 = vmatprep.subr.bf16.mxu0 %v10822_v60  ;;  %v5556_v34 = vpack.c.bf16 %v6515_v0, %v6514_v49  ;;  %v6809_v14 = vunpack.i.l.bf16 %v6808_v23  ;;  %v6813_v48 = vpop.permute.xlu0 %6812  ;;  %v5559_v26 = vpack.c.bf16 %v6640_v15, %v6639_v51  ;;  %v1339_v49 = vld [vmem:[%s10701_s1 + $0x98] sm:$0xff] }
 0x1a1   :  { %5549 = vmatprep.subr.bf16.mxu1 %v10822_v60  ;;  %5367 = vmatprep.mubr.msk.f32.mxu1 %vm1870_vm0, %v1341_v20  ;;  %v6815_v30 = vunpack.i.h.bf16 %v6813_v48  ;;  %v6814_v13 = vunpack.i.l.bf16 %v6813_v48  ;;  %v6150_v48 = vunpack.i.h.bf16 %v7649_v39 }
 0x1a2   :  { %7087 = vrot.lane.b32.xlu1 %v8283_v6, %s7300_s6  ;;  %7082 = vrot.lane.b32.xlu0 %v8199_v5, %s7300_s6  ;;  %v6800_v6 = vunpack.i.h.bf16 %v6798_v16 }
 0x1a3   :  { %5527 = vmatpush1.bf16.msra.mxu0 %v5526_v17  ;;  %v6818_v20 = vpop.permute.xlu1 %6817  ;;  %v5562_v17 = vpack.c.bf16 %v6805_v36, %v6804_v28  ;;  %v5565_v61 = vpack.c.bf16 %v6815_v30, %v6814_v13  ;;  %v6149_v36 = vunpack.i.l.bf16 %v7649_v39  ;;  %v6394_v39 = vunpack.i.l.bf16 %v7847_v57  ;;  %v1349_v30 = vld [vmem:[%s10701_s1 + $0xe8] sm:$0xff] }
 0x1a4   :  { %5551 = vmatpush1.bf16.msra.mxu1 %v5550_v52  ;;  %5528 = vmatprep.subr.bf16.mxu0 %v10822_v60  ;;  %v5535_v5 = vpack.c.bf16 %v6800_v6, %v6799_v56  ;;  %v6819_v16 = vunpack.i.l.bf16 %v6818_v20  ;;  %v6823_v52 = vpop.permute.xlu0 %6822  ;;  %v6144_v6 = vunpack.i.l.bf16 %v7651_v40  ;;  %v1338_v56 = vld [vmem:[%s10701_s1 + $0x90] sm:$0xff] }
 0x1a5   :  { %5552 = vmatprep.subr.bf16.mxu1 %v10822_v60  ;;  %v6824_v27 = vunpack.i.l.bf16 %v6823_v52 }
 0x1a6   :  { %7097 = vrot.lane.b32.xlu1 %v8314_v63, %s7300_s6  ;;  %7092 = vrot.lane.b32.xlu0 %v8275_v21, %s7300_s6  ;;  %v6810_v63 = vunpack.i.h.bf16 %v6808_v23  ;;  %v6145_v23 = vunpack.i.h.bf16 %v7651_v40  ;;  %v7253_v40 = vld [vmem:[%s10700_s0 + $0x70] sm:$0xff] }
 0x1a7   :  { %5530 = vmatpush1.bf16.msra.mxu0 %v5529_v19  ;;  %v6825_v19 = vunpack.i.h.bf16 %v6823_v52  ;;  %v6828_v28 = vpop.permute.xlu1 %6827 }
 0x1a8   :  { %5554 = vmatpush1.bf16.msra.mxu1 %v5553_v11  ;;  %5531 = vmatprep.subr.bf16.mxu0 %v10822_v60  ;;  %v5538_v21 = vpack.c.bf16 %v6810_v63, %v6809_v14  ;;  %v5571_v11 = vpack.c.bf16 %v7252_v50, %v7251_v37  ;;  %v5574_v51 = vpack.c.bf16 %v6145_v23, %v6144_v6  ;;  %v6269_v63 = vunpack.i.l.bf16 %v7743_v29  ;;  %v1343_v14 = vld [vmem:[%s10701_s1 + $0xb8] sm:$0xff]  ;;  %v6833_v13 = vpop.permute.xlu0 %6832 }
 0x1a9   :  { %5555 = vmatprep.subr.bf16.mxu1 %v10822_v60  ;;  %v5568_v0 = vpack.c.bf16 %v6825_v19, %v6824_v27  ;;  %v6400_v19 = vunpack.i.h.bf16 %v7845_v53  ;;  %v6399_v27 = vunpack.i.l.bf16 %v7845_v53  ;;  %v6645_v37 = vunpack.i.h.bf16 %v8051_v18 }
 0x1aa   :  { %7107 = vrot.lane.b32.xlu1 %v8337_v38, %s7300_s6  ;;  %7102 = vrot.lane.b32.xlu0 %v8306_v43, %s7300_s6  ;;  %v6820_v38 = vunpack.i.h.bf16 %v6818_v20  ;;  %v1336_v43 = vld [vmem:[%s10701_s1 + $0x80] sm:$0xff]  ;;  %v1345_v20 = vld [vmem:[%s10701_s1 + $0xc8] sm:$0xff]  ;;  %v6644_v50 = vunpack.i.l.bf16 %v8051_v18  ;;  %v6830_v53 = vunpack.i.h.bf16 %v6828_v28  ;;  %v6829_v6 = vunpack.i.l.bf16 %v6828_v28 }
 0x1ab   :  { %5533 = vmatpush1.bf16.msra.mxu0 %v5532_v31  ;;  %v1340_v31 = vld [vmem:[%s10701_s1 + $0xa0] sm:$0xff] }
 0x1ac   :  { %5557 = vmatpush1.bf16.msra.mxu1 %v5556_v34  ;;  %5534 = vmatprep.subr.bf16.mxu0 %v10822_v60  ;;  %v5541_v55 = vpack.c.bf16 %v6820_v38, %v6819_v16  ;;  %v7254_v34 = vld [vmem:[%s10700_s0 + $0x78] sm:$0xff]  ;;  %v5601_v38 = vpack.c.bf16 %v6150_v48, %v6149_v36  ;;  %v6275_v16 = vunpack.i.h.bf16 %v7753_v35 }
 0x1ad   :  { %5558 = vmatprep.subr.bf16.mxu1 %v10822_v60  ;;  %v5598_v15 = vpack.c.bf16 %v7254_v34, %v7253_v40  ;;  %v6649_v40 = vunpack.i.l.bf16 %v8047_v32  ;;  %v5589_v34 = vpack.c.bf16 %v6830_v53, %v6829_v6  ;;  %v6160_v6 = vunpack.i.h.bf16 %v7657_v41 }
 0x1af   :  { %5536 = vmatpush1.bf16.msra.mxu0 %v5535_v5  ;;  %v6270_v5 = vunpack.i.h.bf16 %v7743_v29  ;;  %v1342_v29 = vld [vmem:[%s10701_s1 + $0xb0] sm:$0xff] }
 0x1b0   :  { %5560 = vmatpush1.bf16.msra.mxu1 %v5559_v26  ;;  %5537 = vmatprep.subr.bf16.mxu0 %v10822_v60 }
 0x1b1   :  { %5561 = vmatprep.subr.bf16.mxu1 %v10822_v60  ;;  %v5577_v26 = vpack.c.bf16 %v6270_v5, %v6269_v63  ;;  %v6835_v5 = vunpack.i.h.bf16 %v6833_v13  ;;  %v6834_v63 = vunpack.i.l.bf16 %v6833_v13  ;;  %v7255_v13 = vld [vmem:[%s10700_s0 + $0x80] sm:$0xff] }
 0x1b3   :  { %5539 = vmatpush1.bf16.msra.mxu0 %v5538_v21  ;;  %v6395_v21 = vunpack.i.h.bf16 %v7847_v57  ;;  %v8479_v57 = vpop.permute.xlu1 %6837 }
 0x1b4   :  { %5563 = vmatpush1.bf16.msra.mxu1 %v5562_v17  ;;  %5540 = vmatprep.subr.bf16.mxu0 %v10822_v60  ;;  %v6274_v17 = vunpack.i.l.bf16 %v7753_v35 }
 0x1b5   :  { %5564 = vmatprep.subr.bf16.mxu1 %v10822_v60  ;;  %v5580_v52 = vpack.c.bf16 %v6395_v21, %v6394_v39 }
 0x1b6   :  { %v5604_v35 = vpack.c.bf16 %v6275_v16, %v6274_v17 }
 0x1b7   :  { %5542 = vmatpush1.bf16.msra.mxu0 %v5541_v55  ;;  %v6520_v55 = vunpack.i.h.bf16 %v7947_v4  ;;  %v6848_v23 = vpop.permute.xlu1 %6847 }
 0x1b8   :  { %5566 = vmatpush1.bf16.msra.mxu1 %v5565_v61  ;;  %5570 = vmatprep.subr.bf16.mxu0 %v10822_v60  ;;  %v6519_v61 = vunpack.i.l.bf16 %v7947_v4  ;;  %v8491_v4 = vpop.permute.xlu0 %6842 }
 0x1b9   :  { %5567 = vmatprep.subr.bf16.mxu1 %v10822_v60 }
 0x1ba   :  { %2266 = vmatmul.mubr.f32.vlgmr.msra.gmra.mrb[8].mxu0 %v1336_v43  ;;  %v5583_v43 = vpack.c.bf16 %v6520_v55, %v6519_v61 }
 0x1bb   :  { %5572 = vmatpush1.bf16.msra.mxu0 %v5571_v11  ;;  %5366 = vmatprep.mubr.msk.f32.mxu0 %vm1870_vm0, %v1339_v49  ;;  %v5607_v11 = vpack.c.bf16 %v6400_v19, %v6399_v27  ;;  %v6524_v49 = vunpack.i.l.bf16 %v7957_v7  ;;  %v6155_v19 = vunpack.i.h.bf16 %v7659_v42  ;;  %v6154_v27 = vunpack.i.l.bf16 %v7659_v42  ;;  %v7257_v42 = vld [vmem:[%s10700_s0 + $0x90] sm:$0xff] }
 0x1bc   :  { %5569 = vmatpush1.bf16.msra.mxu1 %v5568_v0  ;;  %5573 = vmatprep.subr.bf16.mxu0 %v10822_v60  ;;  %v6525_v0 = vunpack.i.h.bf16 %v7957_v7  ;;  %v6853_v7 = vpop.permute.xlu0 %6852 }
 0x1bd   :  { %5597 = vmatprep.subr.bf16.mxu1 %v10822_v60 }
 0x1be   :  { %2271 = vmatmul.mubr.f32.gmra.mrb[10].mxu0 %v1338_v56  ;;  %v5586_v56 = vpack.c.bf16 %v6645_v37, %v6644_v50  ;;  %v5610_v18 = vpack.c.bf16 %v6525_v0, %v6524_v49  ;;  %v1348_v37 = vld [vmem:[%s10701_s1 + $0xe0] sm:$0xff]  ;;  %v7258_v50 = vld [vmem:[%s10700_s0 + $0x98] sm:$0xff]  ;;  %v5628_v0 = vpack.c.bf16 %v6155_v19, %v6154_v27  ;;  %v6280_v49 = vunpack.i.h.bf16 %v7751_v33 }
 0x1bf   :  { %2347 = vmatmul.mubr.f32.vlgmr.msra.gmra.mrb[8].mxu1 %v1340_v31  ;;  %5575 = vmatpush1.bf16.msra.mxu0 %v5574_v51  ;;  %v6650_v31 = vunpack.i.h.bf16 %v8047_v32  ;;  %v6849_v51 = vunpack.i.l.bf16 %v6848_v23  ;;  %v6855_v32 = vunpack.i.h.bf16 %v6853_v7 }
 0x1c0   :  { %5599 = vmatpush1.bf16.msra.mxu1 %v5598_v15  ;;  %5368 = vmatprep.mubr.msk.f32.mxu1 %vm1870_vm0, %v1343_v14  ;;  %v6850_v15 = vunpack.i.h.bf16 %v6848_v23  ;;  %v6858_v14 = vpop.permute.xlu1 %6857  ;;  %v6863_v21 = vpop.permute.xlu0 %6862  ;;  %v6279_v23 = vunpack.i.l.bf16 %v7751_v33  ;;  %v1353_v33 = vld [vmem:[%s10701_s1 + $0x108] sm:$0xff] }
 0x1c1   :  { %5576 = vmatprep.subr.bf16.mxu0 %v10822_v60  ;;  %5600 = vmatprep.subr.bf16.mxu1 %v10822_v60  ;;  %v5613_v48 = vpack.c.bf16 %v6650_v31, %v6649_v40  ;;  %v6860_v28 = vunpack.i.h.bf16 %v6858_v14  ;;  %v6865_v16 = vunpack.i.h.bf16 %v6863_v21  ;;  %v6864_v17 = vunpack.i.l.bf16 %v6863_v21  ;;  %v1351_v31 = vld [vmem:[%s10701_s1 + $0xf8] sm:$0xff] }
 0x1c2   :  { %5369 = vmatprep.mubr.msk.f32.mxu0 %vm1870_vm0, %v1345_v20  ;;  %v5592_v36 = vpack.c.bf16 %v6850_v15, %v6849_v51  ;;  %v6859_v20 = vunpack.i.l.bf16 %v6858_v14  ;;  %v5631_v40 = vpack.c.bf16 %v6280_v49, %v6279_v23  ;;  %v6404_v15 = vunpack.i.l.bf16 %v7855_v59 }
 0x1c3   :  { %2352 = vmatmul.mubr.f32.gmra.mrb[10].mxu1 %v1342_v29  ;;  %5578 = vmatpush1.bf16.msra.mxu0 %v5577_v26  ;;  %v5616_v29 = vpack.c.bf16 %v6835_v5, %v6834_v63  ;;  %v6854_v26 = vunpack.i.l.bf16 %v6853_v7  ;;  %v5622_v61 = vpack.c.bf16 %v6865_v16, %v6864_v17  ;;  %v6285_v7 = vunpack.i.h.bf16 %v7761_v2  ;;  %v1357_v63 = vld [vmem:[%s10701_s1 + $0x128] sm:$0xff] }
 0x1c4   :  { %5602 = vmatpush1.bf16.msra.mxu1 %v5601_v38  ;;  %5579 = vmatprep.subr.bf16.mxu0 %v10822_v60  ;;  %v5595_v39 = vpack.c.bf16 %v6860_v28, %v6859_v20  ;;  %v8538_v53 = vpop.permute.xlu1 %6867  ;;  %v6284_v5 = vunpack.i.l.bf16 %v7761_v2  ;;  %v6529_v2 = vunpack.i.l.bf16 %v7955_v47  ;;  %v6410_v20 = vunpack.i.h.bf16 %v7853_v58 }
 0x1c5   :  { %5603 = vmatprep.subr.bf16.mxu1 %v10822_v60  ;;  %5371 = vmatprep.mubr.msk.f32.mxu1 %vm1870_vm0, %v1349_v30  ;;  %v5619_v38 = vpack.c.bf16 %v6855_v32, %v6854_v26  ;;  %v1344_v30 = vld [vmem:[%s10701_s1 + $0xc0] sm:$0xff]  ;;  %v6655_v26 = vunpack.i.h.bf16 %v8071_v24  ;;  %v6654_v21 = vunpack.i.l.bf16 %v8071_v24  ;;  %v6534_v16 = vunpack.i.l.bf16 %v7965_v8 }
 0x1c6   :  { %v5658_v28 = vpack.c.bf16 %v6285_v7, %v6284_v5  ;;  %v6165_v7 = vunpack.i.h.bf16 %v7667_v46  ;;  %v6164_v5 = vunpack.i.l.bf16 %v7667_v46  ;;  %v7261_v46 = vld [vmem:[%s10700_s0 + $0xb0] sm:$0xff] }
 0x1c7   :  { %5581 = vmatpush1.bf16.msra.mxu0 %v5580_v52  ;;  %v7256_v52 = vld [vmem:[%s10700_s0 + $0x88] sm:$0xff] }
 0x1c8   :  { %5605 = vmatpush1.bf16.msra.mxu1 %v5604_v35  ;;  %5582 = vmatprep.subr.bf16.mxu0 %v10822_v60  ;;  %v5625_v55 = vpack.c.bf16 %v7256_v52, %v7255_v13  ;;  %v1347_v35 = vld [vmem:[%s10701_s1 + $0xd8] sm:$0xff]  ;;  %v8564_v14 = vpop.permute.xlu1 %6877  ;;  %v6839_v13 = vunpack.i.l.bf16 %v8479_v57  ;;  %v6660_v52 = vunpack.i.h.bf16 %v8061_v62 }
 0x1c9   :  { %5606 = vmatprep.subr.bf16.mxu1 %v10822_v60 }
 0x1cb   :  { %5584 = vmatpush1.bf16.msra.mxu0 %v5583_v43  ;;  %v1346_v43 = vld [vmem:[%s10701_s1 + $0xd0] sm:$0xff] }
 0x1cc   :  { %5608 = vmatpush1.bf16.msra.mxu1 %v5607_v11  ;;  %5585 = vmatprep.subr.bf16.mxu0 %v10822_v60  ;;  %v5652_v11 = vpack.c.bf16 %v7258_v50, %v7257_v42 }
 0x1cd   :  { %5609 = vmatprep.subr.bf16.mxu1 %v10822_v60 }
 0x1cf   :  { %5587 = vmatpush1.bf16.msra.mxu0 %v5586_v56  ;;  %v6159_v56 = vunpack.i.l.bf16 %v7657_v41  ;;  %v1350_v41 = vld [vmem:[%s10701_s1 + $0xf0] sm:$0xff] }
 0x1d0   :  { %5611 = vmatpush1.bf16.msra.mxu1 %v5610_v18  ;;  %5588 = vmatprep.subr.bf16.mxu0 %v10822_v60  ;;  %v8542_v18 = vpop.permute.xlu0 %6872 }
 0x1d1   :  { %5612 = vmatprep.subr.bf16.mxu1 %v10822_v60  ;;  %v5655_v51 = vpack.c.bf16 %v6160_v6, %v6159_v56 }
 0x1d3   :  { %5590 = vmatpush1.bf16.msra.mxu0 %v5589_v34  ;;  %v6405_v34 = vunpack.i.h.bf16 %v7855_v59 }
 0x1d4   :  { %5614 = vmatpush1.bf16.msra.mxu1 %v5613_v48  ;;  %5591 = vmatprep.subr.bf16.mxu0 %v10822_v60  ;;  %v8567_v59 = vpop.permute.xlu0 %6882 }
 0x1d5   :  { %5615 = vmatprep.subr.bf16.mxu1 %v10822_v60  ;;  %v5634_v48 = vpack.c.bf16 %v6405_v34, %v6404_v15 }
 0x1d7   :  { %5593 = vmatpush1.bf16.msra.mxu0 %v5592_v36  ;;  %v6530_v36 = vunpack.i.h.bf16 %v7955_v47  ;;  %v8579_v47 = vpop.permute.xlu1 %6887 }
 0x1d8   :  { %5617 = vmatpush1.bf16.msra.mxu1 %v5616_v29  ;;  %5594 = vmatprep.subr.bf16.mxu0 %v10822_v60  ;;  %v6409_v29 = vunpack.i.l.bf16 %v7853_v58  ;;  %v6893_v17 = vpop.permute.xlu0 %6892  ;;  %v5640_v58 = vpack.c.bf16 %v6655_v26, %v6654_v21  ;;  %v6170_v26 = vunpack.i.h.bf16 %v7665_v45  ;;  %v6169_v21 = vunpack.i.l.bf16 %v7665_v45  ;;  %v1358_v45 = vld [vmem:[%s10701_s1 + $0x130] sm:$0xff] }
 0x1d9   :  { %5618 = vmatprep.subr.bf16.mxu1 %v10822_v60  ;;  %v5637_v32 = vpack.c.bf16 %v6530_v36, %v6529_v2  ;;  %v7262_v36 = vld [vmem:[%s10700_s0 + $0xb8] sm:$0xff] }
 0x1da   :  { %v5706_v2 = vpack.c.bf16 %v7262_v36, %v7261_v46 }
 0x1db   :  { %5596 = vmatpush1.bf16.msra.mxu0 %v5595_v39  ;;  %v5661_v39 = vpack.c.bf16 %v6410_v20, %v6409_v29  ;;  %v6290_v20 = vunpack.i.h.bf16 %v7759_v1  ;;  %v6289_v29 = vunpack.i.l.bf16 %v7759_v1  ;;  %v1361_v1 = vld [vmem:[%s10701_s1 + $0x148] sm:$0xff] }
 0x1dc   :  { %5620 = vmatpush1.bf16.msra.mxu1 %v5619_v38  ;;  %5624 = vmatprep.subr.bf16.mxu0 %v10822_v60  ;;  %v6535_v38 = vunpack.i.h.bf16 %v7965_v8  ;;  %v6894_v8 = vunpack.i.l.bf16 %v6893_v17  ;;  %v6903_v19 = vpop.permute.xlu0 %6902 }
 0x1dd   :  { %5621 = vmatprep.subr.bf16.mxu1 %v10822_v60  ;;  %v6905_v50 = vunpack.i.h.bf16 %v6903_v19 }
 0x1de   :  { %2428 = vmatmul.mubr.f32.vlgmr.msra.gmra.mrb[12].mxu0 %v1344_v30  ;;  %v6840_v30 = vunpack.i.h.bf16 %v8479_v57  ;;  %v5664_v24 = vpack.c.bf16 %v6535_v38, %v6534_v16  ;;  %v6845_v57 = vunpack.i.h.bf16 %v8491_v4  ;;  %v1359_v38 = vld [vmem:[%s10701_s1 + $0x138] sm:$0xff]  ;;  %v5685_v16 = vpack.c.bf16 %v6290_v20, %v6289_v29 }
 0x1df   :  { %5626 = vmatpush1.bf16.msra.mxu0 %v5625_v55  ;;  %5370 = vmatprep.mubr.msk.f32.mxu0 %vm1870_vm0, %v1347_v35  ;;  %v6659_v55 = vunpack.i.l.bf16 %v8061_v62  ;;  %v6898_v35 = vpop.permute.xlu1 %6897  ;;  %v6904_v62 = vunpack.i.l.bf16 %v6903_v19 }
 0x1e0   :  { %5623 = vmatpush1.bf16.msra.mxu1 %v5622_v61  ;;  %5627 = vmatprep.subr.bf16.mxu0 %v10822_v60  ;;  %v6895_v61 = vunpack.i.h.bf16 %v6893_v17  ;;  %v5643_v27 = vpack.c.bf16 %v6840_v30, %v6839_v13  ;;  %v6415_v17 = vunpack.i.h.bf16 %v7863_v54  ;;  %v5709_v30 = vpack.c.bf16 %v6170_v26, %v6169_v21 }
 0x1e1   :  { %5651 = vmatprep.subr.bf16.mxu1 %v10822_v60  ;;  %v5649_v6 = vpack.c.bf16 %v6905_v50, %v6904_v62  ;;  %v6295_v13 = vunpack.i.h.bf16 %v7769_v10 }
 0x1e2   :  { %2433 = vmatmul.mubr.f32.gmra.mrb[14].mxu0 %v1346_v43  ;;  %v5667_v43 = vpack.c.bf16 %v6660_v52, %v6659_v55  ;;  %v5646_v42 = vpack.c.bf16 %v6895_v61, %v6894_v8  ;;  %v1365_v52 = vld [vmem:[%s10701_s1 + $0x168] sm:$0xff]  ;;  %v10861_v8 = vld [vmem:[#allocation43_spill] sm:$0xff] }
 0x1e3   :  { %2509 = vmatmul.mubr.f32.vlgmr.msra.gmra.mrb[12].mxu1 %v1348_v37  ;;  %5629 = vmatpush1.bf16.msra.mxu0 %v5628_v0  ;;  %v6844_v37 = vunpack.i.l.bf16 %v8491_v4  ;;  %v6899_v0 = vunpack.i.l.bf16 %v6898_v35  ;;  %v6908_v49 = vpop.permute.xlu1 %6907  ;;  %v1352_v4 = vld [vmem:[%s10701_s1 + $0x100] sm:$0xff] }
 0x1e4   :  { %5653 = vmatpush1.bf16.msra.mxu1 %v5652_v11  ;;  %5630 = vmatprep.subr.bf16.mxu0 %v10822_v60  ;;  %v6900_v11 = vunpack.i.h.bf16 %v6898_v35  ;;  %v6540_v35 = vunpack.i.h.bf16 %v10861_v8 }
 0x1e5   :  { %5654 = vmatprep.subr.bf16.mxu1 %v10822_v60  ;;  %5372 = vmatprep.mubr.msk.f32.mxu1 %vm1870_vm0, %v1351_v31  ;;  %v5670_v23 = vpack.c.bf16 %v6845_v57, %v6844_v37  ;;  %v6910_v31 = vunpack.i.h.bf16 %v6908_v49 }
 0x1e6   :  { %5373 = vmatprep.mubr.msk.f32.mxu0 %vm1870_vm0, %v1353_v33  ;;  %v5673_v56 = vpack.c.bf16 %v6900_v11, %v6899_v0  ;;  %v6909_v33 = vunpack.i.l.bf16 %v6908_v49  ;;  %v10864_v49 = vld [vmem:[#allocation45_spill] sm:$0xff] }
 0x1e7   :  { %5632 = vmatpush1.bf16.msra.mxu0 %v5631_v40  ;;  %2514 = vmatmul.mubr.f32.gmra.mrb[14].mxu1 %v1350_v41  ;;  %v7259_v41 = vld [vmem:[%s10700_s0 + $0xa0] sm:$0xff]  ;;  %v7260_v40 = vld [vmem:[%s10700_s0 + $0xa8] sm:$0xff] }
 0x1e8   :  { %5656 = vmatpush1.bf16.msra.mxu1 %v5655_v51  ;;  %5633 = vmatprep.subr.bf16.mxu0 %v10822_v60  ;;  %v5679_v34 = vpack.c.bf16 %v7260_v40, %v7259_v41  ;;  %v5676_v15 = vpack.c.bf16 %v6910_v31, %v6909_v33  ;;  %v1355_v51 = vld [vmem:[%s10701_s1 + $0x118] sm:$0xff]  ;;  %v6870_v31 = vunpack.i.h.bf16 %v8538_v53  ;;  %v6869_v33 = vunpack.i.l.bf16 %v8538_v53 }
 0x1e9   :  { %5657 = vmatprep.subr.bf16.mxu1 %v10822_v60  ;;  %5375 = vmatprep.mubr.msk.f32.mxu1 %vm1870_vm0, %v1357_v63  ;;  %v1354_v63 = vld [vmem:[%s10701_s1 + $0x110] sm:$0xff]  ;;  %v10865_v40 = vld [vmem:[#allocation58_spill] sm:$0xff]  ;;  %v6874_v53 = vunpack.i.l.bf16 %v8542_v18 }
 0x1eb   :  { %5635 = vmatpush1.bf16.msra.mxu0 %v5634_v48  ;;  %v1356_v48 = vld [vmem:[%s10701_s1 + $0x120] sm:$0xff] }
 0x1ec   :  { %5659 = vmatpush1.bf16.msra.mxu1 %v5658_v28  ;;  %5636 = vmatprep.subr.bf16.mxu0 %v10822_v60  ;;  %v5682_v28 = vpack.c.bf16 %v6165_v7, %v6164_v5 }
 0x1ed   :  { %5660 = vmatprep.subr.bf16.mxu1 %v10822_v60 }
 0x1ef   :  { %5638 = vmatpush1.bf16.msra.mxu0 %v5637_v32  ;;  %v8630_v32 = vpop.permute.xlu0 %6912 }
 0x1f0   :  { %5662 = vmatpush1.bf16.msra.mxu1 %v5661_v39  ;;  %5639 = vmatprep.subr.bf16.mxu0 %v10822_v60  ;;  %v8634_v39 = vpop.permute.xlu1 %6917 }
 0x1f1   :  { %5663 = vmatprep.subr.bf16.mxu1 %v10822_v60 }
 0x1f3   :  { %5641 = vmatpush1.bf16.msra.mxu0 %v5640_v58  ;;  %v6414_v58 = vunpack.i.l.bf16 %v7863_v54  ;;  %v8656_v55 = vpop.permute.xlu0 %6922 }
 0x1f4   :  { %5665 = vmatpush1.bf16.msra.mxu1 %v5664_v24  ;;  %5642 = vmatprep.subr.bf16.mxu0 %v10822_v60  ;;  %v6294_v24 = vunpack.i.l.bf16 %v7769_v10  ;;  %v8659_v54 = vpop.permute.xlu1 %6927  ;;  %v6539_v10 = vunpack.i.l.bf16 %v10861_v8 }
 0x1f5   :  { %5666 = vmatprep.subr.bf16.mxu1 %v10822_v60  ;;  %v5688_v61 = vpack.c.bf16 %v6415_v17, %v6414_v58  ;;  %v1360_v17 = vld [vmem:[%s10701_s1 + $0x140] sm:$0xff] }
 0x1f6   :  { %v5712_v19 = vpack.c.bf16 %v6295_v13, %v6294_v24  ;;  %v5691_v37 = vpack.c.bf16 %v6540_v35, %v6539_v10  ;;  %v7263_v58 = vld [vmem:[%s10700_s0 + $0xc0] sm:$0xff]  ;;  %v7301_v10 = vmov 0  }
 0x1f7   :  { %5644 = vmatpush1.bf16.msra.mxu0 %v5643_v27  ;;  %v10862_v27 = vld [vmem:[#allocation29_spill] sm:$0xff]  ;;  %v8671_v11 = vpop.permute.xlu0 %6932  ;;  %7112 = vset.pattern.permute.xlu1 %v7301_v10 }
 0x1f8   :  { %5668 = vmatpush1.bf16.msra.mxu1 %v5667_v43  ;;  %5645 = vmatprep.subr.bf16.mxu0 %v10822_v60  ;;  %v6420_v43 = vunpack.i.h.bf16 %v10862_v27  ;;  %v6419_v57 = vunpack.i.l.bf16 %v10862_v27  ;;  %v1364_v27 = vld [vmem:[%s10701_s1 + $0x160] sm:$0xff] }
 0x1f9   :  { %5669 = vmatprep.subr.bf16.mxu1 %v10822_v60  ;;  %7111 = vset.pattern.permute.xlu0 %v7301_v10 }
 0x1fa   :  { %v5715_v0 = vpack.c.bf16 %v6420_v43, %v6419_v57  ;;  %v7265_v43 = vld [vmem:[%s10700_s0 + $0xd0] sm:$0xff]  ;;  %v7266_v57 = vld [vmem:[%s10700_s0 + $0xd8] sm:$0xff] }
 0x1fb   :  { %5647 = vmatpush1.bf16.msra.mxu0 %v5646_v42  ;;  %v10863_v42 = vld [vmem:[#allocation59_spill] sm:$0xff] }
 0x1fc   :  { %5671 = vmatpush1.bf16.msra.mxu1 %v5670_v23  ;;  %5648 = vmatprep.subr.bf16.mxu0 %v10822_v60  ;;  %v6665_v50 = vunpack.i.h.bf16 %v10863_v42  ;;  %v6664_v62 = vunpack.i.l.bf16 %v10863_v42  ;;  %v6545_v23 = vunpack.i.h.bf16 %v10864_v49 }
 0x1fd   :  { %5672 = vmatprep.subr.bf16.mxu1 %v10822_v60 }
 0x1ff   :  { %5650 = vmatpush1.bf16.msra.mxu0 %v5649_v6  ;;  %v6544_v6 = vunpack.i.l.bf16 %v10864_v49 }
 0x200   :  { %5674 = vmatpush1.bf16.msra.mxu1 %v5673_v56  ;;  %5678 = vmatprep.subr.bf16.mxu0 %v10822_v60  ;;  %v6938_v56 = vpop.permute.xlu1 %6937 }
 0x201   :  { %5675 = vmatprep.subr.bf16.mxu1 %v10822_v60  ;;  %v5718_v41 = vpack.c.bf16 %v6545_v23, %v6544_v6  ;;  %v6940_v7 = vunpack.i.h.bf16 %v6938_v56  ;;  %v6939_v5 = vunpack.i.l.bf16 %v6938_v56  ;;  %v10868_v23 = vld [vmem:[#allocation3_spill] sm:$0xff] }
 0x202   :  { %2590 = vmatmul.mubr.f32.vlgmr.msra.gmra.mrb[16].mxu0 %v1352_v4  ;;  %v5694_v4 = vpack.c.bf16 %v6665_v50, %v6664_v62  ;;  %v10867_v50 = vld [vmem:[#allocation16_spill] sm:$0xff]  ;;  %v6180_v6 = vunpack.i.h.bf16 %v10868_v23  ;;  %v6179_v56 = vunpack.i.l.bf16 %v10868_v23  ;;  %v6885_v23 = vunpack.i.h.bf16 %v8567_v59 }
 0x203   :  { %5680 = vmatpush1.bf16.msra.mxu0 %v5679_v34  ;;  %5374 = vmatprep.mubr.msk.f32.mxu0 %vm1870_vm0, %v1355_v51  ;;  %v6670_v34 = vunpack.i.h.bf16 %v10865_v40  ;;  %v5697_v51 = vpack.c.bf16 %v6870_v31, %v6869_v33  ;;  %v6300_v62 = vunpack.i.h.bf16 %v10867_v50  ;;  %v1367_v33 = vld [vmem:[%s10701_s1 + $0x178] sm:$0xff] }
 0x204   :  { %5677 = vmatpush1.bf16.msra.mxu1 %v5676_v15  ;;  %5681 = vmatprep.subr.bf16.mxu0 %v10822_v60  ;;  %v6669_v15 = vunpack.i.l.bf16 %v10865_v40  ;;  %v6948_v46 = vpop.permute.xlu1 %6947 }
 0x205   :  { %5705 = vmatprep.subr.bf16.mxu1 %v10822_v60  ;;  %v6949_v20 = vunpack.i.l.bf16 %v6948_v46 }
 0x206   :  { %2595 = vmatmul.mubr.f32.gmra.mrb[18].mxu0 %v1354_v63  ;;  %v6943_v63 = vpop.permute.xlu0 %6942  ;;  %v5721_v36 = vpack.c.bf16 %v6670_v34, %v6669_v15  ;;  %v10869_v34 = vld [vmem:[#allocation31_spill] sm:$0xff] }
 0x207   :  { %2671 = vmatmul.mubr.f32.vlgmr.msra.gmra.mrb[16].mxu1 %v1356_v48  ;;  %5683 = vmatpush1.bf16.msra.mxu0 %v5682_v28  ;;  %v6875_v48 = vunpack.i.h.bf16 %v8542_v18  ;;  %v6950_v28 = vunpack.i.h.bf16 %v6948_v46  ;;  %v6945_v26 = vunpack.i.h.bf16 %v6943_v63  ;;  %v6944_v21 = vunpack.i.l.bf16 %v6943_v63 }
 0x208   :  { %5707 = vmatpush1.bf16.msra.mxu1 %v5706_v2  ;;  %5684 = vmatprep.subr.bf16.mxu0 %v10822_v60  ;;  %v5700_v2 = vpack.c.bf16 %v6940_v7, %v6939_v5  ;;  %v8722_v49 = vpop.permute.xlu1 %6957  ;;  %v6425_v15 = vunpack.i.h.bf16 %v10869_v34  ;;  %v5763_v7 = vpack.c.bf16 %v6180_v6, %v6179_v56  ;;  %v10870_v5 = vld [vmem:[#allocation18_spill] sm:$0xff]  ;;  %v6884_v6 = vunpack.i.l.bf16 %v8567_v59 }
 0x209   :  { %5708 = vmatprep.subr.bf16.mxu1 %v10822_v60  ;;  %5376 = vmatprep.mubr.msk.f32.mxu1 %vm1870_vm0, %v1359_v38  ;;  %v5724_v29 = vpack.c.bf16 %v6875_v48, %v6874_v53  ;;  %v5703_v38 = vpack.c.bf16 %v6950_v28, %v6949_v20  ;;  %v6305_v63 = vunpack.i.h.bf16 %v10870_v5  ;;  %v6304_v48 = vunpack.i.l.bf16 %v10870_v5  ;;  %v1373_v53 = vld [vmem:[%s10701_s1 + $0x1a8] sm:$0xff] }
 0x20a   :  { %5377 = vmatprep.mubr.msk.f32.mxu0 %vm1870_vm0, %v1361_v1  ;;  %v6953_v18 = vpop.permute.xlu0 %6952  ;;  %v5727_v1 = vpack.c.bf16 %v6945_v26, %v6944_v21  ;;  %v10871_v28 = vld [vmem:[#allocation44_spill] sm:$0xff]  ;;  %v10872_v21 = vld [vmem:[#allocation30_spill] sm:$0xff] }
 0x20b   :  { %5686 = vmatpush1.bf16.msra.mxu0 %v5685_v16  ;;  %2676 = vmatmul.mubr.f32.gmra.mrb[18].mxu1 %v1358_v45  ;;  %v6955_v45 = vunpack.i.h.bf16 %v6953_v18  ;;  %v6954_v16 = vunpack.i.l.bf16 %v6953_v18  ;;  %v6550_v20 = vunpack.i.h.bf16 %v10871_v28  ;;  %v5766_v26 = vpack.c.bf16 %v6305_v63, %v6304_v48 }
 0x20c   :  { %5710 = vmatpush1.bf16.msra.mxu1 %v5709_v30  ;;  %5687 = vmatprep.subr.bf16.mxu0 %v10822_v60  ;;  %v7264_v30 = vld [vmem:[%s10700_s0 + $0xc8] sm:$0xff]  ;;  %v8748_v46 = vpop.permute.xlu1 %6967  ;;  %v6430_v18 = vunpack.i.h.bf16 %v10872_v21 }
 0x20d   :  { %5711 = vmatprep.subr.bf16.mxu1 %v10822_v60  ;;  %5379 = vmatprep.mubr.msk.f32.mxu1 %vm1870_vm0, %v1365_v52  ;;  %v5733_v13 = vpack.c.bf16 %v7264_v30, %v7263_v58  ;;  %v5730_v24 = vpack.c.bf16 %v6955_v45, %v6954_v16  ;;  %v1363_v52 = vld [vmem:[%s10701_s1 + $0x158] sm:$0xff]  ;;  %v10873_v45 = vld [vmem:[#allocation61_spill] sm:$0xff] }
 0x20e   :  { %v8726_v31 = vpop.permute.xlu0 %6962  ;;  %v6675_v16 = vunpack.i.h.bf16 %v10873_v45 }
 0x20f   :  { %5689 = vmatpush1.bf16.msra.mxu0 %v5688_v61  ;;  %v10866_v61 = vld [vmem:[#allocation4_spill] sm:$0xff] }
 0x210   :  { %5713 = vmatpush1.bf16.msra.mxu1 %v5712_v19  ;;  %5690 = vmatprep.subr.bf16.mxu0 %v10822_v60  ;;  %v6175_v8 = vunpack.i.h.bf16 %v10866_v61  ;;  %v6174_v35 = vunpack.i.l.bf16 %v10866_v61  ;;  %v1362_v19 = vld [vmem:[%s10701_s1 + $0x150] sm:$0xff]  ;;  %v8763_v58 = vpop.permute.xlu1 %6977 }
 0x211   :  { %5714 = vmatprep.subr.bf16.mxu1 %v10822_v60 }
 0x212   :  { %v5736_v42 = vpack.c.bf16 %v6175_v8, %v6174_v35  ;;  %v6880_v8 = vunpack.i.h.bf16 %v8564_v14  ;;  %v6879_v35 = vunpack.i.l.bf16 %v8564_v14 }
 0x213   :  { %5692 = vmatpush1.bf16.msra.mxu0 %v5691_v37  ;;  %v5760_v37 = vpack.c.bf16 %v7266_v57, %v7265_v43 }
 0x214   :  { %5716 = vmatpush1.bf16.msra.mxu1 %v5715_v0  ;;  %5693 = vmatprep.subr.bf16.mxu0 %v10822_v60  ;;  %v6299_v0 = vunpack.i.l.bf16 %v10867_v50 }
 0x215   :  { %5717 = vmatprep.subr.bf16.mxu1 %v10822_v60 }
 0x216   :  { %v5739_v40 = vpack.c.bf16 %v6300_v62, %v6299_v0  ;;  %v6988_v62 = vpop.permute.xlu1 %6987 }
 0x217   :  { %5695 = vmatpush1.bf16.msra.mxu0 %v5694_v4  ;;  %v1369_v4 = vld [vmem:[%s10701_s1 + $0x188] sm:$0xff] }
 0x218   :  { %5719 = vmatpush1.bf16.msra.mxu1 %v5718_v41  ;;  %5696 = vmatprep.subr.bf16.mxu0 %v10822_v60  ;;  %v1366_v41 = vld [vmem:[%s10701_s1 + $0x170] sm:$0xff] }
 0x219   :  { %5720 = vmatprep.subr.bf16.mxu1 %v10822_v60 }
 0x21b   :  { %5698 = vmatpush1.bf16.msra.mxu0 %v5697_v51  ;;  %v6424_v51 = vunpack.i.l.bf16 %v10869_v34  ;;  %v6998_v34 = vpop.permute.xlu1 %6997 }
 0x21c   :  { %5722 = vmatpush1.bf16.msra.mxu1 %v5721_v36  ;;  %5699 = vmatprep.subr.bf16.mxu0 %v10822_v60  ;;  %v8751_v36 = vpop.permute.xlu0 %6972  ;;  %v7000_v5 = vunpack.i.h.bf16 %v6998_v34  ;;  %v6999_v63 = vunpack.i.l.bf16 %v6998_v34 }
 0x21d   :  { %5723 = vmatprep.subr.bf16.mxu1 %v10822_v60 }
 0x21f   :  { %5701 = vmatpush1.bf16.msra.mxu0 %v5700_v2  ;;  %v5742_v2 = vpack.c.bf16 %v6425_v15, %v6424_v51  ;;  %v5778_v15 = vpack.c.bf16 %v6885_v23, %v6884_v6 }
 0x220   :  { %5725 = vmatpush1.bf16.msra.mxu1 %v5724_v29  ;;  %5702 = vmatprep.subr.bf16.mxu0 %v10822_v60  ;;  %v6549_v29 = vunpack.i.l.bf16 %v10871_v28  ;;  %v6983_v61 = vpop.permute.xlu0 %6982  ;;  %v1368_v28 = vld [vmem:[%s10701_s1 + $0x180] sm:$0xff] }
 0x221   :  { %5726 = vmatprep.subr.bf16.mxu1 %v10822_v60  ;;  %v6984_v50 = vunpack.i.l.bf16 %v6983_v61 }
 0x223   :  { %5704 = vmatpush1.bf16.msra.mxu0 %v5703_v38  ;;  %v6429_v38 = vunpack.i.l.bf16 %v10872_v21  ;;  %v5784_v21 = vpack.c.bf16 %v7000_v5, %v6999_v63 }
 0x224   :  { %5728 = vmatpush1.bf16.msra.mxu1 %v5727_v1  ;;  %5732 = vmatprep.subr.bf16.mxu0 %v10822_v60  ;;  %v5745_v1 = vpack.c.bf16 %v6550_v20, %v6549_v29  ;;  %v6993_v14 = vpop.permute.xlu0 %6992  ;;  %v7267_v20 = vld [vmem:[%s10700_s0 + $0xe0] sm:$0xff]  ;;  %v7268_v29 = vld [vmem:[%s10700_s0 + $0xe8] sm:$0xff] }
 0x225   :  { %5729 = vmatprep.subr.bf16.mxu1 %v10822_v60  ;;  %v5769_v30 = vpack.c.bf16 %v6430_v18, %v6429_v38  ;;  %v1371_v18 = vld [vmem:[%s10701_s1 + $0x198] sm:$0xff] }
 0x226   :  { %2752 = vmatmul.mubr.f32.vlgmr.msra.gmra.mrb[20].mxu0 %v1360_v17  ;;  %v6674_v17 = vunpack.i.l.bf16 %v10873_v45  ;;  %v10876_v38 = vld [vmem:[#allocation6_spill] sm:$0xff] }
 0x227   :  { %5734 = vmatpush1.bf16.msra.mxu0 %v5733_v13  ;;  %5378 = vmatprep.mubr.msk.f32.mxu0 %vm1870_vm0, %v1363_v52  ;;  %v10874_v13 = vld [vmem:[#allocation47_spill] sm:$0xff]  ;;  %v6184_v45 = vunpack.i.l.bf16 %v10876_v38 }
 0x228   :  { %5731 = vmatpush1.bf16.msra.mxu1 %v5730_v24  ;;  %5735 = vmatprep.subr.bf16.mxu0 %v10822_v60  ;;  %v6555_v24 = vunpack.i.h.bf16 %v10874_v13  ;;  %v6554_v52 = vunpack.i.l.bf16 %v10874_v13  ;;  %v5748_v10 = vpack.c.bf16 %v6675_v16, %v6674_v17 }
 0x229   :  { %5759 = vmatprep.subr.bf16.mxu1 %v10822_v60 }
 0x22a   :  { %2757 = vmatmul.mubr.f32.gmra.mrb[22].mxu0 %v1362_v19  ;;  %v5772_v19 = vpack.c.bf16 %v6555_v24, %v6554_v52 }
 0x22b   :  { %2833 = vmatmul.mubr.f32.vlgmr.msra.gmra.mrb[20].mxu1 %v1364_v27  ;;  %5737 = vmatpush1.bf16.msra.mxu0 %v5736_v42  ;;  %v10875_v27 = vld [vmem:[#allocation60_spill] sm:$0xff]  ;;  %v6985_v42 = vunpack.i.h.bf16 %v6983_v61  ;;  %v1370_v61 = vld [vmem:[%s10701_s1 + $0x190] sm:$0xff] }
 0x22c   :  { %5761 = vmatpush1.bf16.msra.mxu1 %v5760_v37  ;;  %5738 = vmatprep.subr.bf16.mxu0 %v10822_v60  ;;  %v6680_v43 = vunpack.i.h.bf16 %v10875_v27  ;;  %v6679_v57 = vunpack.i.l.bf16 %v10875_v27  ;;  %v5751_v37 = vpack.c.bf16 %v6880_v8, %v6879_v35  ;;  %v1372_v8 = vld [vmem:[%s10701_s1 + $0x1a0] sm:$0xff]  ;;  %v7269_v35 = vld [vmem:[%s10700_s0 + $0xf0] sm:$0xff] }
 0x22d   :  { %5762 = vmatprep.subr.bf16.mxu1 %v10822_v60  ;;  %5380 = vmatprep.mubr.msk.f32.mxu1 %vm1870_vm0, %v1367_v33  ;;  %v5754_v56 = vpack.c.bf16 %v6985_v42, %v6984_v50  ;;  %v6995_v33 = vunpack.i.h.bf16 %v6993_v14  ;;  %v10878_v42 = vld [vmem:[#allocation5_spill] sm:$0xff] }
 0x22e   :  { %5381 = vmatprep.mubr.msk.f32.mxu0 %vm1870_vm0, %v1369_v4  ;;  %v5775_v0 = vpack.c.bf16 %v6680_v43, %v6679_v57  ;;  %v6994_v4 = vunpack.i.l.bf16 %v6993_v14  ;;  %v10877_v43 = vld [vmem:[#allocation17_spill] sm:$0xff]  ;;  %v6190_v50 = vunpack.i.h.bf16 %v10878_v42 }
 0x22f   :  { %5740 = vmatpush1.bf16.msra.mxu0 %v5739_v40  ;;  %2838 = vmatmul.mubr.f32.gmra.mrb[22].mxu1 %v1366_v41  ;;  %v6990_v41 = vunpack.i.h.bf16 %v6988_v62  ;;  %v6989_v40 = vunpack.i.l.bf16 %v6988_v62  ;;  %v6310_v57 = vunpack.i.h.bf16 %v10877_v43  ;;  %v6189_v62 = vunpack.i.l.bf16 %v10878_v42 }
 0x230   :  { %5764 = vmatpush1.bf16.msra.mxu1 %v5763_v7  ;;  %5741 = vmatprep.subr.bf16.mxu0 %v10822_v60  ;;  %v5757_v51 = vpack.c.bf16 %v6995_v33, %v6994_v4  ;;  %v8782_v7 = vld [vmem:[%s10702_s2] ss:$0 sm:$0xff]  ;;  %v1377_v33 = vld [vmem:[%s10701_s1 + $0x1c8] sm:$0xff]  ;;  %v1374_v4 = vld [vmem:[%s10701_s1 + $0x1b0] sm:$0xff] }
 0x231   :  { %5765 = vmatprep.subr.bf16.mxu1 %v10822_v60  ;;  %5383 = vmatprep.mubr.msk.f32.mxu1 %vm1870_vm0, %v1373_v53  ;;  %v5781_v59 = vpack.c.bf16 %v6990_v41, %v6989_v40  ;;  %v10879_v40 = vld [vmem:[#allocation33_spill] sm:$0xff] }
 0x232   :  { %v6435_v34 = vunpack.i.h.bf16 %v10879_v40 }
 0x233   :  { %5743 = vmatpush1.bf16.msra.mxu0 %v5742_v2 }
 0x234   :  { %5767 = vmatpush1.bf16.msra.mxu1 %v5766_v26  ;;  %5744 = vmatprep.subr.bf16.mxu0 %v10822_v60  ;;  %v5787_v26 = vpack.c.bf16 %v7268_v29, %v7267_v20  ;;  %v10881_v29 = vld [vmem:[#allocation46_spill] sm:$0xff] }
 0x235   :  { %5768 = vmatprep.subr.bf16.mxu1 %v10822_v60 }
 0x237   :  { %5746 = vmatpush1.bf16.msra.mxu0 %v5745_v1  ;;  %v6185_v1 = vunpack.i.h.bf16 %v10876_v38  ;;  %v10882_v38 = vld [vmem:[#allocation32_spill] sm:$0xff] }
 0x238   :  { %5770 = vmatpush1.bf16.msra.mxu1 %v5769_v30  ;;  %5747 = vmatprep.subr.bf16.mxu0 %v10822_v60 }
 0x239   :  { %5771 = vmatprep.subr.bf16.mxu1 %v10822_v60  ;;  %v5790_v27 = vpack.c.bf16 %v6185_v1, %v6184_v45  ;;  %v6440_v1 = vunpack.i.h.bf16 %v10882_v38  ;;  %v6439_v45 = vunpack.i.l.bf16 %v10882_v38  ;;  %v1376_v38 = vld [vmem:[%s10701_s1 + $0x1c0] sm:$0xff] }
 0x23b   :  { %5749 = vmatpush1.bf16.msra.mxu0 %v5748_v10  ;;  %v7270_v10 = vld [vmem:[%s10700_s0 + $0xf8] sm:$0xff] }
 0x23c   :  { %5773 = vmatpush1.bf16.msra.mxu1 %v5772_v19  ;;  %5750 = vmatprep.subr.bf16.mxu0 %v10822_v60  ;;  %v5814_v19 = vpack.c.bf16 %v7270_v10, %v7269_v35  ;;  %v10884_v35 = vld [vmem:[#allocation49_spill] sm:$0xff] }
 0x23d   :  { %5774 = vmatprep.subr.bf16.mxu1 %v10822_v60  ;;  %v6565_v10 = vunpack.i.h.bf16 %v10884_v35 }
 0x23f   :  { %5752 = vmatpush1.bf16.msra.mxu0 %v5751_v37  ;;  %v6309_v37 = vunpack.i.l.bf16 %v10877_v43 }
 0x240   :  { %5776 = vmatpush1.bf16.msra.mxu1 %v5775_v0  ;;  %5753 = vmatprep.subr.bf16.mxu0 %v10822_v60  ;;  %v8833_v0 = vpop.permute.xlu0 %7002 }
 0x241   :  { %5777 = vmatprep.subr.bf16.mxu1 %v10822_v60  ;;  %v5793_v41 = vpack.c.bf16 %v6310_v57, %v6309_v37  ;;  %v6890_v57 = vunpack.i.h.bf16 %v8579_v47  ;;  %v6889_v37 = vunpack.i.l.bf16 %v8579_v47 }
 0x243   :  { %5755 = vmatpush1.bf16.msra.mxu0 %v5754_v56  ;;  %v1375_v56 = vld [vmem:[%s10701_s1 + $0x1b8] sm:$0xff] }
 0x244   :  { %5779 = vmatpush1.bf16.msra.mxu1 %v5778_v15  ;;  %5756 = vmatprep.subr.bf16.mxu0 %v10822_v60  ;;  %v6434_v15 = vunpack.i.l.bf16 %v10879_v40  ;;  %v5805_v40 = vpack.c.bf16 %v6890_v57, %v6889_v37 }
 0x245   :  { %v1943_v48 = vpop.f32.mrb[0].mxu0  ;;  %5780 = vmatprep.subr.bf16.mxu1 %v10822_v60 }
 0x246   :  { %v8787_v53 = vmul.f32 %v8782_v7, %v1943_v48  ;;  %v1945_v2 = vpop.f32.mrb[1].mxu0  ;;  %v1381_v48 = vld [vmem:[%s10701_s1 + $0x1e8] sm:$0xff]  ;;  %v5796_v20 = vpack.c.bf16 %v6435_v34, %v6434_v15 }
 0x247   :  { %5758 = vmatpush1.bf16.msra.mxu0 %v5757_v51  ;;  %v5817_v51 = vpack.c.bf16 %v6190_v50, %v6189_v62  ;;  %v7008_v2 = vpop.permute.xlu1 %7007  ;;  %v10885_v50 = vld [vmem:[#allocation62_spill] sm:$0xff] }
 0x248   :  { %5782 = vmatpush1.bf16.msra.mxu1 %v5781_v59  ;;  %3953 = vadd.xlane.f32.xlu0 %v8787_v53  ;;  %v10880_v59 = vld [vmem:[#allocation20_spill] sm:$0xff]  ;;  %v6690_v62 = vunpack.i.h.bf16 %v10885_v50 }
 0x249   :  { %v1948_v16 = vpop.f32.mrb[2].mxu0  ;;  %5783 = vmatprep.subr.bf16.mxu1 %v10822_v60  ;;  %5786 = vmatprep.subr.bf16.mxu0 %v10822_v60  ;;  %v6315_v5 = vunpack.i.h.bf16 %v10880_v59  ;;  %v6314_v63 = vunpack.i.l.bf16 %v10880_v59 }
 0x24a   :  { %v8807_v17 = vmul.f32 %v8782_v7, %v1948_v16  ;;  %v2024_v30 = vpop.f32.mrb[0].mxu1  ;;  %2914 = vmatmul.mubr.f32.vlgmr.msra.gmra.mrb[24].mxu0 %v1368_v28  ;;  %v1950_v13 = vpop.f32.mrb[3].mxu0 }
 0x24b   :  { %v8810_v24 = vmul.f32 %v8782_v7, %v2024_v30  ;;  %v2026_v52 = vpop.f32.mrb[1].mxu1  ;;  %5788 = vmatpush1.bf16.msra.mxu0 %v5787_v26  ;;  %5382 = vmatprep.mubr.msk.f32.mxu0 %vm1870_vm0, %v1371_v18  ;;  %v8860_v28 = vpop.permute.xlu0 %7012  ;;  %v6560_v26 = vunpack.i.h.bf16 %v10881_v29  ;;  %v5820_v18 = vpack.c.bf16 %v6315_v5, %v6314_v63  ;;  %v10883_v30 = vld [vmem:[#allocation63_spill] sm:$0xff]  ;;  %v7010_v5 = vunpack.i.h.bf16 %v7008_v2 }
 0x24c   :  { %5785 = vmatpush1.bf16.msra.mxu1 %v5784_v21  ;;  %3955 = vadd.xlane.f32.xlu1 %v8807_v17  ;;  %v6559_v21 = vunpack.i.l.bf16 %v10881_v29  ;;  %v6685_v13 = vunpack.i.h.bf16 %v10883_v30  ;;  %v6684_v52 = vunpack.i.l.bf16 %v10883_v30  ;;  %v7009_v63 = vunpack.i.l.bf16 %v7008_v2 }
 0x24d   :  { %3957 = vadd.xlane.f32.xlu0 %v8810_v24  ;;  %5789 = vmatprep.subr.bf16.mxu0 %v10822_v60 }
 0x24e   :  { %v2029_v14 = vpop.f32.mrb[2].mxu1  ;;  %5813 = vmatprep.subr.bf16.mxu1 %v10822_v60  ;;  %2919 = vmatmul.mubr.f32.gmra.mrb[26].mxu0 %v1370_v61  ;;  %v5799_v16 = vpack.c.bf16 %v6560_v26, %v6559_v21  ;;  %v8872_v61 = vpop.permute.xlu1 %7017  ;;  %v5802_v43 = vpack.c.bf16 %v6685_v13, %v6684_v52  ;;  %v1379_v13 = vld [vmem:[%s10701_s1 + $0x1d8] sm:$0xff]  ;;  %v10886_v52 = vld [vmem:[#allocation8_spill] sm:$0xff] }
 0x24f   :  { %v8836_v23 = vmul.f32 %v8782_v7, %v2029_v14  ;;  %2995 = vmatmul.mubr.f32.vlgmr.msra.gmra.mrb[24].mxu1 %v1372_v8  ;;  %5791 = vmatpush1.bf16.msra.mxu0 %v5790_v27  ;;  %v2031_v6 = vpop.f32.mrb[3].mxu1  ;;  %v5823_v8 = vpack.c.bf16 %v6440_v1, %v6439_v45  ;;  %v8876_v27 = vpop.permute.xlu0 %7022  ;;  %v6689_v14 = vunpack.i.l.bf16 %v10885_v50  ;;  %v7271_v1 = vld [vmem:[%s10700_s0 + $0x100] sm:$0xff]  ;;  %v7272_v45 = vld [vmem:[%s10700_s0 + $0x108] sm:$0xff]  ;;  %v1378_v50 = vld [vmem:[%s10701_s1 + $0x1d0] sm:$0xff] }
 0x250   :  { %5815 = vmatpush1.bf16.msra.mxu1 %v5814_v19  ;;  %5792 = vmatprep.subr.bf16.mxu0 %v10822_v60  ;;  %v6564_v19 = vunpack.i.l.bf16 %v10884_v35  ;;  %v7005_v6 = vunpack.i.h.bf16 %v8833_v0  ;;  %v6194_v35 = vunpack.i.l.bf16 %v10886_v52 }
 0x251   :  { %3959 = vadd.xlane.f32.xlu0 %v8836_v23  ;;  %5816 = vmatprep.subr.bf16.mxu1 %v10822_v60  ;;  %v5829_v34 = vpack.c.bf16 %v6690_v62, %v6689_v14  ;;  %v1380_v62 = vld [vmem:[%s10701_s1 + $0x1e0] sm:$0xff]  ;;  %v7273_v14 = vld [vmem:[%s10700_s0 + $0x110] sm:$0xff] }
 0x252   :  { %5384 = vmatprep.mubr.msk.f32.mxu1 %vm1870_vm0, %v1375_v56  ;;  %5385 = vmatprep.mubr.msk.f32.mxu0 %vm1870_vm0, %v1377_v33  ;;  %v5826_v42 = vpack.c.bf16 %v6565_v10, %v6564_v19  ;;  %v7004_v56 = vunpack.i.l.bf16 %v8833_v0  ;;  %v8886_v33 = vpop.permute.xlu1 %7027 }
 0x253   :  { %5794 = vmatpush1.bf16.msra.mxu0 %v5793_v41  ;;  %3000 = vmatmul.mubr.f32.gmra.mrb[26].mxu1 %v1374_v4  ;;  %v6915_v4 = vunpack.i.h.bf16 %v8630_v32  ;;  %v6914_v41 = vunpack.i.l.bf16 %v8630_v32  ;;  %v7033_v47 = vpop.permute.xlu0 %7032 }
 0x254   :  { %5818 = vmatpush1.bf16.msra.mxu1 %v5817_v51  ;;  %5795 = vmatprep.subr.bf16.mxu0 %v10822_v60  ;;  %v5808_v15 = vpack.c.bf16 %v7005_v6, %v7004_v56  ;;  %v7035_v51 = vunpack.i.h.bf16 %v7033_v47  ;;  %v7034_v59 = vunpack.i.l.bf16 %v7033_v47  ;;  %v7274_v6 = vld [vmem:[%s10700_s0 + $0x118] sm:$0xff] }
 0x255   :  { %5819 = vmatprep.subr.bf16.mxu1 %v10822_v60  ;;  %5387 = vmatprep.mubr.msk.f32.mxu1 %vm1870_vm0, %v1381_v48  ;;  %v5832_v0 = vpack.c.bf16 %v6915_v4, %v6914_v41  ;;  %v5868_v56 = vpack.c.bf16 %v7274_v6, %v7273_v14  ;;  %v10887_v41 = vld [vmem:[#allocation19_spill] sm:$0xff]  ;;  %v10893_v14 = vld [vmem:[#allocation65_spill] sm:$0xff] }
 0x256   :  { %v7038_v32 = vpop.permute.xlu1 %7037  ;;  %v5811_v48 = vpack.c.bf16 %v7035_v51, %v7034_v59  ;;  %v6320_v47 = vunpack.i.h.bf16 %v10887_v41  ;;  %v6695_v6 = vunpack.i.h.bf16 %v10893_v14 }
 0x257   :  { %5797 = vmatpush1.bf16.msra.mxu0 %v5796_v20  ;;  %v5835_v20 = vpack.c.bf16 %v7010_v5, %v7009_v63  ;;  %v7040_v29 = vunpack.i.h.bf16 %v7038_v32  ;;  %v7039_v26 = vunpack.i.l.bf16 %v7038_v32  ;;  %v1383_v63 = vld [vmem:[%s10701_s1 + $0x1f8] sm:$0xff]  ;;  %v1385_v32 = vld [vmem:[%s10701_s1 + $0x208] sm:$0xff] }
 0x258   :  { %5821 = vmatpush1.bf16.msra.mxu1 %v5820_v18  ;;  %5798 = vmatprep.subr.bf16.mxu0 %v10822_v60 }
 0x259   :  { %5822 = vmatprep.subr.bf16.mxu1 %v10822_v60  ;;  %v5838_v30 = vpack.c.bf16 %v7040_v29, %v7039_v26  ;;  %v10889_v29 = vld [vmem:[#allocation35_spill] sm:$0xff] }
 0x25a   :  { %v6445_v26 = vunpack.i.h.bf16 %v10889_v29 }
 0x25b   :  { %5800 = vmatpush1.bf16.msra.mxu0 %v5799_v16  ;;  %v5841_v16 = vpack.c.bf16 %v7272_v45, %v7271_v1 }
 0x25c   :  { %5824 = vmatpush1.bf16.msra.mxu1 %v5823_v8  ;;  %5801 = vmatprep.subr.bf16.mxu0 %v10822_v60  ;;  %v6195_v8 = vunpack.i.h.bf16 %v10886_v52 }
 0x25d   :  { %5825 = vmatprep.subr.bf16.mxu1 %v10822_v60 }
 0x25e   :  { %v5844_v4 = vpack.c.bf16 %v6195_v8, %v6194_v35  ;;  %v10891_v8 = vld [vmem:[#allocation48_spill] sm:$0xff] }
 0x25f   :  { %5803 = vmatpush1.bf16.msra.mxu0 %v5802_v43  ;;  %v6570_v35 = vunpack.i.h.bf16 %v10891_v8 }
 0x260   :  { %5827 = vmatpush1.bf16.msra.mxu1 %v5826_v42  ;;  %5804 = vmatprep.subr.bf16.mxu0 %v10822_v60 }
 0x261   :  { %5828 = vmatprep.subr.bf16.mxu1 %v10822_v60 }
 0x263   :  { %5806 = vmatpush1.bf16.msra.mxu0 %v5805_v40  ;;  %v6319_v40 = vunpack.i.l.bf16 %v10887_v41 }
 0x264   :  { %5830 = vmatpush1.bf16.msra.mxu1 %v5829_v34  ;;  %5807 = vmatprep.subr.bf16.mxu0 %v10822_v60  ;;  %v10888_v34 = vld [vmem:[#allocation7_spill] sm:$0xff] }
 0x265   :  { %5831 = vmatprep.subr.bf16.mxu1 %v10822_v60  ;;  %v6199_v51 = vunpack.i.l.bf16 %v10888_v34 }
 0x267   :  { %5809 = vmatpush1.bf16.msra.mxu0 %v5808_v15  ;;  %v6200_v15 = vunpack.i.h.bf16 %v10888_v34 }
 0x268   :  { %5833 = vmatpush1.bf16.msra.mxu1 %v5832_v0  ;;  %5810 = vmatprep.subr.bf16.mxu0 %v10822_v60 }
 0x269   :  { %v2105_v21 = vpop.f32.mrb[4].mxu0  ;;  %5834 = vmatprep.subr.bf16.mxu1 %v10822_v60 }
 0x26a   :  { %v8897_v18 = vmul.f32 %v8782_v7, %v2105_v21  ;;  %v2107_v2 = vpop.f32.mrb[5].mxu0  ;;  %v6444_v21 = vunpack.i.l.bf16 %v10889_v29 }
 0x26b   :  { %5812 = vmatpush1.bf16.msra.mxu0 %v5811_v48  ;;  %v1382_v48 = vld [vmem:[%s10701_s1 + $0x1f0] sm:$0xff]  ;;  %v5871_v2 = vpack.c.bf16 %v6200_v15, %v6199_v51  ;;  %v6920_v51 = vunpack.i.h.bf16 %v8634_v39 }
 0x26c   :  { %5836 = vmatpush1.bf16.msra.mxu1 %v5835_v20  ;;  %3961 = vadd.xlane.f32.xlu1 %v8897_v18  ;;  %v5847_v20 = vpack.c.bf16 %v6320_v47, %v6319_v40  ;;  %v5850_v52 = vpack.c.bf16 %v6445_v26, %v6444_v21  ;;  %v10894_v47 = vld [vmem:[#allocation51_spill] sm:$0xff]  ;;  %v7015_v26 = vunpack.i.h.bf16 %v8860_v28  ;;  %v7014_v21 = vunpack.i.l.bf16 %v8860_v28 }
 0x26d   :  { %v2110_v10 = vpop.f32.mrb[6].mxu0  ;;  %5837 = vmatprep.subr.bf16.mxu1 %v10822_v60  ;;  %5840 = vmatprep.subr.bf16.mxu0 %v10822_v60  ;;  %v6575_v40 = vunpack.i.h.bf16 %v10894_v47  ;;  %v6574_v34 = vunpack.i.l.bf16 %v10894_v47  ;;  %v7020_v28 = vunpack.i.h.bf16 %v8872_v61 }
 0x26e   :  { %v8917_v19 = vmul.f32 %v8782_v7, %v2110_v10  ;;  %v2186_v43 = vpop.f32.mrb[4].mxu1  ;;  %3076 = vmatmul.mubr.f32.vlgmr.msra.gmra.mrb[28].mxu0 %v1376_v38  ;;  %v2112_v57 = vpop.f32.mrb[7].mxu0  ;;  %v10890_v38 = vld [vmem:[#allocation22_spill] sm:$0xff]  ;;  %v6569_v10 = vunpack.i.l.bf16 %v10891_v8 }
 0x26f   :  { %v8920_v37 = vmul.f32 %v8782_v7, %v2186_v43  ;;  %v2188_v42 = vpop.f32.mrb[5].mxu1  ;;  %5842 = vmatpush1.bf16.msra.mxu0 %v5841_v16  ;;  %5386 = vmatprep.mubr.msk.f32.mxu0 %vm1870_vm0, %v1379_v13  ;;  %v6325_v1 = vunpack.i.h.bf16 %v10890_v38  ;;  %v6324_v45 = vunpack.i.l.bf16 %v10890_v38  ;;  %v1389_v16 = vld [vmem:[%s10701_s1 + $0x228] sm:$0xff]  ;;  %v8970_v13 = vpop.permute.xlu1 %7047  ;;  %v10892_v57 = vld [vmem:[#allocation34_spill] sm:$0xff]  ;;  %v6924_v38 = vunpack.i.l.bf16 %v8656_v55 }
 0x270   :  { %5839 = vmatpush1.bf16.msra.mxu1 %v5838_v30  ;;  %3963 = vadd.xlane.f32.xlu0 %v8917_v19  ;;  %v8967_v30 = vpop.permute.xlu0 %7042  ;;  %v6450_v42 = vunpack.i.h.bf16 %v10892_v57 }
 0x271   :  { %3965 = vadd.xlane.f32.xlu1 %v8920_v37  ;;  %5843 = vmatprep.subr.bf16.mxu0 %v10822_v60  ;;  %v5874_v43 = vpack.c.bf16 %v6325_v1, %v6324_v45 }
 0x272   :  { %v2191_v59 = vpop.f32.mrb[6].mxu1  ;;  %5867 = vmatprep.subr.bf16.mxu1 %v10822_v60  ;;  %3081 = vmatmul.mubr.f32.gmra.mrb[30].mxu0 %v1378_v50  ;;  %v6449_v50 = vunpack.i.l.bf16 %v10892_v57 }
 0x273   :  { %v8944_v0 = vmul.f32 %v8782_v7, %v2191_v59  ;;  %3157 = vmatmul.mubr.f32.vlgmr.msra.gmra.mrb[28].mxu1 %v1380_v62  ;;  %5845 = vmatpush1.bf16.msra.mxu0 %v5844_v4  ;;  %v2193_v5 = vpop.f32.mrb[7].mxu1  ;;  %v5853_v62 = vpack.c.bf16 %v6570_v35, %v6569_v10  ;;  %v8986_v15 = vpop.permute.xlu1 %7057  ;;  %v6919_v59 = vunpack.i.l.bf16 %v8634_v39  ;;  %v6925_v39 = vunpack.i.h.bf16 %v8656_v55 }
 0x274   :  { %5869 = vmatpush1.bf16.msra.mxu1 %v5868_v56  ;;  %5846 = vmatprep.subr.bf16.mxu0 %v10822_v60  ;;  %v6694_v56 = vunpack.i.l.bf16 %v10893_v14  ;;  %v8982_v4 = vpop.permute.xlu0 %7052  ;;  %v5877_v41 = vpack.c.bf16 %v6450_v42, %v6449_v50  ;;  %v7019_v10 = vunpack.i.l.bf16 %v8872_v61 }
 0x275   :  { %3967 = vadd.xlane.f32.xlu0 %v8944_v0  ;;  %5870 = vmatprep.subr.bf16.mxu1 %v10822_v60  ;;  %v5859_v29 = vpack.c.bf16 %v6920_v51, %v6919_v59  ;;  %v5886_v35 = vpack.c.bf16 %v6925_v39, %v6924_v38  ;;  %v10896_v51 = vld [vmem:[#allocation10_spill] sm:$0xff]  ;;  %v1388_v39 = vld [vmem:[%s10701_s1 + $0x220] sm:$0xff]  ;;  %v7277_v38 = vld [vmem:[%s10700_s0 + $0x130] sm:$0xff] }
 0x276   :  { %5388 = vmatprep.mubr.msk.f32.mxu1 %vm1870_vm0, %v1383_v63  ;;  %5389 = vmatprep.mubr.msk.f32.mxu0 %vm1870_vm0, %v1385_v32  ;;  %v5856_v5 = vpack.c.bf16 %v6695_v6, %v6694_v56  ;;  %v5880_v63 = vpack.c.bf16 %v6575_v40, %v6574_v34  ;;  %v10895_v32 = vld [vmem:[#allocation64_spill] sm:$0xff]  ;;  %v5889_v57 = vpack.c.bf16 %v7020_v28, %v7019_v10  ;;  %v1384_v6 = vld [vmem:[%s10701_s1 + $0x200] sm:$0xff]  ;;  %v1387_v34 = vld [vmem:[%s10701_s1 + $0x218] sm:$0xff]  ;;  %v6205_v59 = vunpack.i.h.bf16 %v10896_v51 }
 0x277   :  { %5848 = vmatpush1.bf16.msra.mxu0 %v5847_v20  ;;  %3162 = vmatmul.mubr.f32.gmra.mrb[30].mxu1 %v1382_v48  ;;  %v6700_v48 = vunpack.i.h.bf16 %v10895_v32  ;;  %v6699_v20 = vunpack.i.l.bf16 %v10895_v32  ;;  %v7068_v1 = vpop.permute.xlu1 %7067  ;;  %v7275_v56 = vld [vmem:[%s10700_s0 + $0x120] sm:$0xff]  ;;  %v10898_v28 = vld [vmem:[#allocation9_spill] sm:$0xff] }
 0x278   :  { %5872 = vmatpush1.bf16.msra.mxu1 %v5871_v2  ;;  %5849 = vmatprep.subr.bf16.mxu0 %v10822_v60  ;;  %v8996_v2 = vpop.permute.xlu0 %7062  ;;  %v7069_v8 = vunpack.i.l.bf16 %v7068_v1  ;;  %v6210_v10 = vunpack.i.h.bf16 %v10898_v28 }
 0x279   :  { %5873 = vmatprep.subr.bf16.mxu1 %v10822_v60  ;;  %5391 = vmatprep.mubr.msk.f32.mxu1 %vm1870_vm0, %v1389_v16  ;;  %v5883_v45 = vpack.c.bf16 %v6700_v48, %v6699_v20  ;;  %v5862_v16 = vpack.c.bf16 %v7015_v26, %v7014_v21  ;;  %v1386_v21 = vld [vmem:[%s10701_s1 + $0x210] sm:$0xff] }
 0x27b   :  { %5851 = vmatpush1.bf16.msra.mxu0 %v5850_v52  ;;  %v7070_v52 = vunpack.i.h.bf16 %v7068_v1  ;;  %v7278_v1 = vld [vmem:[%s10700_s0 + $0x138] sm:$0xff] }
 0x27c   :  { %5875 = vmatpush1.bf16.msra.mxu1 %v5874_v43  ;;  %5852 = vmatprep.subr.bf16.mxu0 %v10822_v60  ;;  %v7073_v55 = vpop.permute.xlu0 %7072 }
 0x27d   :  { %5876 = vmatprep.subr.bf16.mxu1 %v10822_v60  ;;  %v5865_v43 = vpack.c.bf16 %v7070_v52, %v7069_v8  ;;  %v7075_v42 = vunpack.i.h.bf16 %v7073_v55  ;;  %v7074_v50 = vunpack.i.l.bf16 %v7073_v55  ;;  %v10897_v52 = vld [vmem:[#allocation21_spill] sm:$0xff]  ;;  %v6209_v55 = vunpack.i.l.bf16 %v10898_v28 }
 0x27e   :  { %v6330_v8 = vunpack.i.h.bf16 %v10897_v52  ;;  %v10904_v28 = vld [vmem:[#allocation53_spill] sm:$0xff] }
 0x27f   :  { %5854 = vmatpush1.bf16.msra.mxu0 %v5853_v62  ;;  %v5892_v40 = vpack.c.bf16 %v7075_v42, %v7074_v50  ;;  %v1391_v42 = vld [vmem:[%s10701_s1 + $0x238] sm:$0xff]  ;;  %v1393_v50 = vld [vmem:[%s10701_s1 + $0x248] sm:$0xff] }
 0x280   :  { %5878 = vmatpush1.bf16.msra.mxu1 %v5877_v41  ;;  %5855 = vmatprep.subr.bf16.mxu0 %v10822_v60  ;;  %v7276_v41 = vld [vmem:[%s10700_s0 + $0x128] sm:$0xff] }
 0x281   :  { %5879 = vmatprep.subr.bf16.mxu1 %v10822_v60  ;;  %v5895_v47 = vpack.c.bf16 %v7276_v41, %v7275_v56  ;;  %v10899_v56 = vld [vmem:[#allocation37_spill] sm:$0xff] }
 0x282   :  { %v6455_v41 = vunpack.i.h.bf16 %v10899_v56 }
 0x283   :  { %5857 = vmatpush1.bf16.msra.mxu0 %v5856_v5  ;;  %v6204_v5 = vunpack.i.l.bf16 %v10896_v51 }
 0x284   :  { %5881 = vmatpush1.bf16.msra.mxu1 %v5880_v63  ;;  %5858 = vmatprep.subr.bf16.mxu0 %v10822_v60 }
 0x285   :  { %5882 = vmatprep.subr.bf16.mxu1 %v10822_v60 }
 0x287   :  { %5860 = vmatpush1.bf16.msra.mxu0 %v5859_v29 }
 0x288   :  { %5884 = vmatpush1.bf16.msra.mxu1 %v5883_v45  ;;  %5861 = vmatprep.subr.bf16.mxu0 %v10822_v60  ;;  %v5922_v45 = vpack.c.bf16 %v7278_v1, %v7277_v38 }
 0x289   :  { %5885 = vmatprep.subr.bf16.mxu1 %v10822_v60 }
 0x28b   :  { %5863 = vmatpush1.bf16.msra.mxu0 %v5862_v16  ;;  %v5898_v16 = vpack.c.bf16 %v6205_v59, %v6204_v5  ;;  %v1397_v5 = vld [vmem:[%s10701_s1 + $0x268] sm:$0xff] }
 0x28c   :  { %5887 = vmatpush1.bf16.msra.mxu1 %v5886_v35  ;;  %5864 = vmatprep.subr.bf16.mxu0 %v10822_v60  ;;  %v6329_v35 = vunpack.i.l.bf16 %v10897_v52 }
 0x28d   :  { %v2267_v62 = vpop.f32.mrb[8].mxu0  ;;  %5888 = vmatprep.subr.bf16.mxu1 %v10822_v60 }
 0x28e   :  { %v9009_v14 = vmul.f32 %v8782_v7, %v2267_v62  ;;  %v2269_v61 = vpop.f32.mrb[9].mxu0 }
 0x28f   :  { %5866 = vmatpush1.bf16.msra.mxu0 %v5865_v43  ;;  %v1390_v61 = vld [vmem:[%s10701_s1 + $0x230] sm:$0xff] }
 0x290   :  { %5890 = vmatpush1.bf16.msra.mxu1 %v5889_v57  ;;  %3969 = vadd.xlane.f32.xlu1 %v9009_v14 }
 0x291   :  { %v2272_v63 = vpop.f32.mrb[10].mxu0  ;;  %5891 = vmatprep.subr.bf16.mxu1 %v10822_v60  ;;  %5894 = vmatprep.subr.bf16.mxu0 %v10822_v60 }
 0x292   :  { %v9029_v32 = vmul.f32 %v8782_v7, %v2272_v63  ;;  %v2348_v48 = vpop.f32.mrb[8].mxu1  ;;  %3238 = vmatmul.mubr.f32.vlgmr.msra.gmra.mrb[32].mxu0 %v1384_v6  ;;  %v2274_v20 = vpop.f32.mrb[11].mxu0  ;;  %v5901_v6 = vpack.c.bf16 %v6330_v8, %v6329_v35 }
 0x293   :  { %v9032_v29 = vmul.f32 %v8782_v7, %v2348_v48  ;;  %v2350_v26 = vpop.f32.mrb[9].mxu1  ;;  %5896 = vmatpush1.bf16.msra.mxu0 %v5895_v47  ;;  %5390 = vmatprep.mubr.msk.f32.mxu0 %vm1870_vm0, %v1387_v34  ;;  %v6454_v47 = vunpack.i.l.bf16 %v10899_v56  ;;  %v10900_v34 = vld [vmem:[#allocation24_spill] sm:$0xff]  ;;  %v10901_v48 = vld [vmem:[#allocation50_spill] sm:$0xff]  ;;  %v6739_v56 = vunpack.i.l.bf16 %v8217_v9 }
 0x294   :  { %5893 = vmatpush1.bf16.msra.mxu1 %v5892_v40  ;;  %3971 = vadd.xlane.f32.xlu0 %v9029_v32  ;;  %v5925_v40 = vpack.c.bf16 %v6210_v10, %v6209_v55  ;;  %v6335_v51 = vunpack.i.h.bf16 %v10900_v34  ;;  %v6334_v59 = vunpack.i.l.bf16 %v10900_v34  ;;  %v6580_v20 = vunpack.i.h.bf16 %v10901_v48 }
 0x295   :  { %3973 = vadd.xlane.f32.xlu1 %v9032_v29  ;;  %5897 = vmatprep.subr.bf16.mxu0 %v10822_v60  ;;  %v5904_v63 = vpack.c.bf16 %v6455_v41, %v6454_v47  ;;  %v6579_v26 = vunpack.i.l.bf16 %v10901_v48  ;;  %v6585_v10 = vunpack.i.h.bf16 %v10904_v28  ;;  %v6584_v55 = vunpack.i.l.bf16 %v10904_v28  ;;  %v1392_v28 = vld [vmem:[%s10701_s1 + $0x240] sm:$0xff] }
 0x296   :  { %v2353_v43 = vpop.f32.mrb[10].mxu1  ;;  %5921 = vmatprep.subr.bf16.mxu1 %v10822_v60  ;;  %3243 = vmatmul.mubr.f32.gmra.mrb[34].mxu0 %v1386_v21  ;;  %v5928_v21 = vpack.c.bf16 %v6335_v51, %v6334_v59  ;;  %v7025_v41 = vunpack.i.h.bf16 %v8876_v27  ;;  %v7024_v47 = vunpack.i.l.bf16 %v8876_v27  ;;  %v6934_v59 = vunpack.i.l.bf16 %v8671_v11  ;;  %v4908_v27 = vld [vmem:[%s10703_s4 + $0x28] sm:$0xff] }
 0x297   :  { %v9056_v57 = vmul.f32 %v8782_v7, %v2353_v43  ;;  %3319 = vmatmul.mubr.f32.vlgmr.msra.gmra.mrb[32].mxu1 %v1388_v39  ;;  %5899 = vmatpush1.bf16.msra.mxu0 %v5898_v16  ;;  %v2355_v62 = vpop.f32.mrb[11].mxu1  ;;  %v10902_v39 = vld [vmem:[#allocation36_spill] sm:$0xff]  ;;  %v10903_v16 = vld [vmem:[#allocation66_spill] sm:$0xff] }
 0x298   :  { %5923 = vmatpush1.bf16.msra.mxu1 %v5922_v45  ;;  %5900 = vmatprep.subr.bf16.mxu0 %v10822_v60  ;;  %v6460_v38 = vunpack.i.h.bf16 %v10902_v39  ;;  %v6459_v1 = vunpack.i.l.bf16 %v10902_v39  ;;  %v5907_v45 = vpack.c.bf16 %v6580_v20, %v6579_v26  ;;  %v6705_v52 = vunpack.i.h.bf16 %v10903_v16  ;;  %v4904_v43 = vld [vmem:[%s10703_s4 + $0x8] sm:$0xff] }
 0x299   :  { %3975 = vadd.xlane.f32.xlu0 %v9056_v57  ;;  %5924 = vmatprep.subr.bf16.mxu1 %v10822_v60  ;;  %v6704_v8 = vunpack.i.l.bf16 %v10903_v16  ;;  %v6929_v62 = vunpack.i.l.bf16 %v8659_v54  ;;  %v7030_v20 = vunpack.i.h.bf16 %v8886_v33  ;;  %v7029_v26 = vunpack.i.l.bf16 %v8886_v33 }
 0x29a   :  { %5392 = vmatprep.mubr.msk.f32.mxu1 %vm1870_vm0, %v1391_v42  ;;  %5393 = vmatprep.mubr.msk.f32.mxu0 %vm1870_vm0, %v1393_v50  ;;  %v5931_v35 = vpack.c.bf16 %v6460_v38, %v6459_v1  ;;  %v6930_v50 = vunpack.i.h.bf16 %v8659_v54  ;;  %v7078_v54 = vpop.permute.xlu1 %7077  ;;  %v4910_v1 = vld [vmem:[%s10703_s4 + $0x38] sm:$0xff] }
 0x29b   :  { %5902 = vmatpush1.bf16.msra.mxu0 %v5901_v6  ;;  %3324 = vmatmul.mubr.f32.gmra.mrb[34].mxu1 %v1390_v61  ;;  %v5910_v42 = vpack.c.bf16 %v6705_v52, %v6704_v8  ;;  %v5934_v61 = vpack.c.bf16 %v6585_v10, %v6584_v55  ;;  %v6740_v6 = vunpack.i.h.bf16 %v8217_v9  ;;  %v6935_v9 = vunpack.i.h.bf16 %v8671_v11  ;;  %v4903_v11 = vld [vmem:[%s10703_s4] sm:$0xff]  ;;  %v4905_v52 = vld [vmem:[%s10703_s4 + $0x10] sm:$0xff]  ;;  %v7280_v55 = vld [vmem:[%s10700_s0 + $0x148] sm:$0xff] }
 0x29c   :  { %5926 = vmatpush1.bf16.msra.mxu1 %v5925_v40  ;;  %5903 = vmatprep.subr.bf16.mxu0 %v10822_v60  ;;  %v4906_v40 = vld [vmem:[%s10703_s4 + $0x18] sm:$0xff]  ;;  %v5913_v34 = vpack.c.bf16 %v6930_v50, %v6929_v62  ;;  %v7079_v48 = vunpack.i.l.bf16 %v7078_v54  ;;  %v5943_v33 = vpack.c.bf16 %v7030_v20, %v7029_v26  ;;  %v7279_v10 = vld [vmem:[%s10700_s0 + $0x140] sm:$0xff] }
 0x29d   :  { %5927 = vmatprep.subr.bf16.mxu1 %v10822_v60  ;;  %5395 = vmatprep.mubr.msk.f32.mxu1 %vm1870_vm0, %v1397_v5  ;;  %v5937_v51 = vpack.c.bf16 %v6740_v6, %v6739_v56  ;;  %v5916_v5 = vpack.c.bf16 %v7025_v41, %v7024_v47  ;;  %v5940_v39 = vpack.c.bf16 %v6935_v9, %v6934_v59  ;;  %v4907_v50 = vld [vmem:[%s10703_s4 + $0x20] sm:$0xff]  ;;  %v1395_v47 = vld [vmem:[%s10701_s1 + $0x258] sm:$0xff]  ;;  %v7281_v59 = vld [vmem:[%s10700_s0 + $0x150] sm:$0xff] }
 0x29e   :  { %v1396_v9 = vld [vmem:[%s10701_s1 + $0x260] sm:$0xff] }
 0x29f   :  { %5905 = vmatpush1.bf16.msra.mxu0 %v5904_v63  ;;  %v7080_v63 = vunpack.i.h.bf16 %v7078_v54 }
 0x2a0   :  { %5929 = vmatpush1.bf16.msra.mxu1 %v5928_v21  ;;  %5906 = vmatprep.subr.bf16.mxu0 %v10822_v60  ;;  %v7083_v21 = vpop.permute.xlu0 %7082 }
 0x2a1   :  { %5930 = vmatprep.subr.bf16.mxu1 %v10822_v60  ;;  %v5919_v38 = vpack.c.bf16 %v7080_v63, %v7079_v48  ;;  %v7084_v16 = vunpack.i.l.bf16 %v7083_v21  ;;  %v10906_v63 = vld [vmem:[#allocation11_spill] sm:$0xff] }
 0x2a2   :  { %v6220_v48 = vunpack.i.h.bf16 %v10906_v63  ;;  %v6219_v20 = vunpack.i.l.bf16 %v10906_v63 }
 0x2a3   :  { %5908 = vmatpush1.bf16.msra.mxu0 %v5907_v45  ;;  %v7085_v45 = vunpack.i.h.bf16 %v7083_v21 }
 0x2a4   :  { %5932 = vmatpush1.bf16.msra.mxu1 %v5931_v35  ;;  %5909 = vmatprep.subr.bf16.mxu0 %v10822_v60 }
 0x2a5   :  { %5933 = vmatprep.subr.bf16.mxu1 %v10822_v60 }
 0x2a6   :  { %4960 = vperm.xlu1 %7112, %v4904_v43   ;;  %v5949_v43 = vpack.c.bf16 %v7280_v55, %v7279_v10  ;;  %v5979_v10 = vpack.c.bf16 %v6220_v48, %v6219_v20  ;;  %v6745_v20 = vunpack.i.h.bf16 %v8223_v44 }
 0x2a7   :  { %5911 = vmatpush1.bf16.msra.mxu0 %v5910_v42  ;;  %v5946_v42 = vpack.c.bf16 %v7085_v45, %v7084_v16  ;;  %v1398_v16 = vld [vmem:[%s10701_s1 + $0x270] sm:$0xff] }
 0x2a8   :  { %5935 = vmatpush1.bf16.msra.mxu1 %v5934_v61  ;;  %5912 = vmatprep.subr.bf16.mxu0 %v10822_v60  ;;  %v10905_v61 = vld [vmem:[#allocation12_spill] sm:$0xff] }
 0x2a9   :  { %5936 = vmatprep.subr.bf16.mxu1 %v10822_v60  ;;  %v6215_v6 = vunpack.i.h.bf16 %v10905_v61  ;;  %v6214_v56 = vunpack.i.l.bf16 %v10905_v61  ;;  %v1405_v61 = vld [vmem:[%s10701_s1 + $0x2a8] sm:$0xff] }
 0x2aa   :  { %4970 = vperm.xlu1 %7112, %v4906_v40  }
 0x2ab   :  { %5914 = vmatpush1.bf16.msra.mxu0 %v5913_v34  ;;  %v1394_v34 = vld [vmem:[%s10701_s1 + $0x250] sm:$0xff]  ;;  %v5952_v26 = vpack.c.bf16 %v6215_v6, %v6214_v56  ;;  %v10910_v56 = vld [vmem:[#allocation38_spill] sm:$0xff] }
 0x2ac   :  { %5938 = vmatpush1.bf16.msra.mxu1 %v5937_v51  ;;  %5915 = vmatprep.subr.bf16.mxu0 %v10822_v60  ;;  %v4909_v51 = vld [vmem:[%s10703_s4 + $0x30] sm:$0xff] }
 0x2ad   :  { %5939 = vmatprep.subr.bf16.mxu1 %v10822_v60 }
 0x2ae   :  { %4980 = vperm.xlu1 %7112, %v4908_v27  }
 0x2af   :  { %4955 = vperm.xlu0 %7111, %v4903_v11   ;;  %5917 = vmatpush1.bf16.msra.mxu0 %v5916_v5  ;;  %v7282_v5 = vld [vmem:[%s10700_s0 + $0x158] sm:$0xff]  ;;  %v10907_v11 = vld [vmem:[#allocation23_spill] sm:$0xff] }
 0x2b0   :  { %5941 = vmatpush1.bf16.msra.mxu1 %v5940_v39  ;;  %5918 = vmatprep.subr.bf16.mxu0 %v10822_v60  ;;  %v5976_v27 = vpack.c.bf16 %v7282_v5, %v7281_v59  ;;  %v6340_v21 = vunpack.i.h.bf16 %v10907_v11  ;;  %v6339_v39 = vunpack.i.l.bf16 %v10907_v11  ;;  %v10912_v59 = vld [vmem:[#allocation55_spill] sm:$0xff] }
 0x2b1   :  { %5942 = vmatprep.subr.bf16.mxu1 %v10822_v60  ;;  %v9128_v8 = vpop.f32.mrb[12].mxu0  ;;  %v6595_v5 = vunpack.i.h.bf16 %v10912_v59 }
 0x2b2   :  { %4990 = vperm.xlu1 %7112, %v4910_v1   ;;  %v2431_v35 = vpop.f32.mrb[13].mxu0  ;;  %v1399_v1 = vld [vmem:[%s10701_s1 + $0x278] sm:$0xff]  ;;  %v5955_v55 = vpack.c.bf16 %v6340_v21, %v6339_v39  ;;  %v6750_v21 = vunpack.i.h.bf16 %v8246_v22 }
 0x2b3   :  { %4965 = vperm.xlu0 %7111, %v4905_v52   ;;  %5920 = vmatpush1.bf16.msra.mxu0 %v5919_v38  ;;  %v10908_v52 = vld [vmem:[#allocation26_spill] sm:$0xff] }
 0x2b4   :  { %5944 = vmatpush1.bf16.msra.mxu1 %v5943_v33  ;;  %5948 = vmatprep.subr.bf16.mxu0 %v10822_v60  ;;  %v1401_v33 = vld [vmem:[%s10701_s1 + $0x288] sm:$0xff]  ;;  %v6345_v35 = vunpack.i.h.bf16 %v10908_v52 }
 0x2b5   :  { %5945 = vmatprep.subr.bf16.mxu1 %v10822_v60  ;;  %v9144_v62 = vpop.f32.mrb[14].mxu0 }
 0x2b6   :  { %3400 = vmatmul.mubr.f32.vlgmr.msra.gmra.mrb[36].mxu0 %v1392_v28  ;;  %v9148_v41 = vpop.f32.mrb[12].mxu1  ;;  %v2436_v40 = vpop.f32.mrb[15].mxu0  ;;  %v6344_v28 = vunpack.i.l.bf16 %v10908_v52  ;;  %v6965_v52 = vunpack.i.h.bf16 %v8726_v31 }
 0x2b7   :  { %4975 = vperm.xlu0 %7111, %v4907_v50   ;;  %5950 = vmatpush1.bf16.msra.mxu0 %v5949_v43  ;;  %v2512_v54 = vpop.f32.mrb[13].mxu1  ;;  %v10909_v43 = vld [vmem:[#allocation39_spill] sm:$0xff]  ;;  %v6469_v40 = vunpack.i.l.bf16 %v10910_v56 }
 0x2b8   :  { %5947 = vmatpush1.bf16.msra.mxu1 %v5946_v42  ;;  %5951 = vmatprep.subr.bf16.mxu0 %v10822_v60  ;;  %v6465_v42 = vunpack.i.h.bf16 %v10909_v43  ;;  %v6464_v50 = vunpack.i.l.bf16 %v10909_v43  ;;  %v5982_v6 = vpack.c.bf16 %v6345_v35, %v6344_v28  ;;  %v6964_v35 = vunpack.i.l.bf16 %v8726_v31 }
 0x2b9   :  { %5975 = vmatprep.subr.bf16.mxu1 %v10822_v60  ;;  %5394 = vmatprep.mubr.msk.f32.mxu0 %vm1870_vm0, %v1395_v47  ;;  %v6470_v47 = vunpack.i.h.bf16 %v10910_v56  ;;  %v7050_v43 = vunpack.i.h.bf16 %v8970_v13 }
 0x2ba   :  { %3405 = vmatmul.mubr.f32.gmra.mrb[38].mxu0 %v1394_v34  ;;  %v9175_v38 = vpop.f32.mrb[14].mxu1  ;;  %v5958_v54 = vpack.c.bf16 %v6465_v42, %v6464_v50  ;;  %v10911_v34 = vld [vmem:[#allocation52_spill] sm:$0xff]  ;;  %v9228_v50 = vmul.f32 %v8782_v7, %v9128_v8  ;;  %v9241_v8 = vmul.f32 %v8782_v7, %v9144_v62  ;;  %v10913_v62 = vld [vmem:[#allocation14_spill] sm:$0xff] }
 0x2bb   :  { %4985 = vperm.xlu0 %7111, %v4909_v51   ;;  %3481 = vmatmul.mubr.f32.vlgmr.msra.gmra.mrb[36].mxu1 %v1396_v9  ;;  %v2517_v45 = vpop.f32.mrb[15].mxu1  ;;  %v6590_v51 = vunpack.i.h.bf16 %v10911_v34  ;;  %v6589_v9 = vunpack.i.l.bf16 %v10911_v34  ;;  %v5985_v63 = vpack.c.bf16 %v6470_v47, %v6469_v40 }
 0x2bc   :  { %5953 = vmatpush1.bf16.msra.mxu0 %v5952_v26  ;;  %5977 = vmatpush1.bf16.msra.mxu1 %v5976_v27  ;;  %v6594_v27 = vunpack.i.l.bf16 %v10912_v59  ;;  %v6744_v26 = vunpack.i.l.bf16 %v8223_v44  ;;  %v6959_v45 = vunpack.i.l.bf16 %v8722_v49  ;;  %v7044_v44 = vunpack.i.l.bf16 %v8967_v30  ;;  %v7283_v59 = vld [vmem:[%s10700_s0 + $0x160] sm:$0xff] }
 0x2bd   :  { %5954 = vmatprep.subr.bf16.mxu0 %v10822_v60  ;;  %5978 = vmatprep.subr.bf16.mxu1 %v10822_v60  ;;  %v5961_v48 = vpack.c.bf16 %v6590_v51, %v6589_v9  ;;  %v1400_v9 = vld [vmem:[%s10701_s1 + $0x280] sm:$0xff] }
 0x2be   :  { %5396 = vmatprep.mubr.msk.f32.mxu1 %vm1870_vm0, %v1399_v1  ;;  %5397 = vmatprep.mubr.msk.f32.mxu0 %vm1870_vm0, %v1401_v33  ;;  %v5988_v11 = vpack.c.bf16 %v6595_v5, %v6594_v27  ;;  %v5964_v39 = vpack.c.bf16 %v6745_v20, %v6744_v26  ;;  %v6749_v1 = vunpack.i.l.bf16 %v8246_v22  ;;  %v6960_v33 = vunpack.i.h.bf16 %v8722_v49 }
 0x2bf   :  { %3486 = vmatmul.mubr.f32.gmra.mrb[38].mxu1 %v1398_v16  ;;  %v7045_v16 = vunpack.i.h.bf16 %v8967_v30  ;;  %v5994_v49 = vpack.c.bf16 %v6965_v52, %v6964_v35  ;;  %v7049_v30 = vunpack.i.l.bf16 %v8970_v13  ;;  %v9236_v13 = vmul.f32 %v8782_v7, %v9148_v41  ;;  %v7284_v41 = vld [vmem:[%s10700_s0 + $0x168] sm:$0xff] }
 0x2c0   :  { %5956 = vmatpush1.bf16.msra.mxu0 %v5955_v55  ;;  %5980 = vmatpush1.bf16.msra.mxu1 %v5979_v10  ;;  %v5991_v28 = vpack.c.bf16 %v6750_v21, %v6749_v1  ;;  %v5967_v22 = vpack.c.bf16 %v6960_v33, %v6959_v45  ;;  %v7088_v10 = vpop.permute.xlu1 %7087  ;;  %v6003_v5 = vpack.c.bf16 %v7284_v41, %v7283_v59  ;;  %v6225_v27 = vunpack.i.h.bf16 %v10913_v62  ;;  %v1404_v1 = vld [vmem:[%s10701_s1 + $0x2a0] sm:$0xff]  ;;  %v7287_v33 = vld [vmem:[%s10700_s0 + $0x178] sm:$0xff]  ;;  %v1413_v59 = vld [vmem:[%s10701_s1 + $0x2e8] sm:$0xff] }
 0x2c1   :  { %5957 = vmatprep.subr.bf16.mxu0 %v10822_v60  ;;  %5981 = vmatprep.subr.bf16.mxu1 %v10822_v60  ;;  %v5970_v55 = vpack.c.bf16 %v7045_v16, %v7044_v44  ;;  %v7090_v31 = vunpack.i.h.bf16 %v7088_v10  ;;  %v7089_v42 = vunpack.i.l.bf16 %v7088_v10  ;;  %v5997_v40 = vpack.c.bf16 %v7050_v43, %v7049_v30  ;;  %v1402_v16 = vld [vmem:[%s10701_s1 + $0x290] sm:$0xff]  ;;  %v1407_v43 = vld [vmem:[%s10701_s1 + $0x2b8] sm:$0xff]  ;;  %v1409_v30 = vld [vmem:[%s10701_s1 + $0x2c8] sm:$0xff] }
 0x2c2   :  { %5399 = vmatprep.mubr.msk.f32.mxu1 %vm1870_vm0, %v1405_v61  ;;  %v7093_v61 = vpop.permute.xlu0 %7092  ;;  %v10914_v44 = vld [vmem:[#allocation13_spill] sm:$0xff] }
 0x2c3   :  { %v7094_v56 = vunpack.i.l.bf16 %v7093_v61  ;;  %v6230_v52 = vunpack.i.h.bf16 %v10914_v44  ;;  %v6229_v35 = vunpack.i.l.bf16 %v10914_v44 }
 0x2c4   :  { %5959 = vmatpush1.bf16.msra.mxu0 %v5958_v54  ;;  %5983 = vmatpush1.bf16.msra.mxu1 %v5982_v6  ;;  %v7095_v6 = vunpack.i.h.bf16 %v7093_v61  ;;  %v5973_v54 = vpack.c.bf16 %v7090_v31, %v7089_v42  ;;  %v1406_v42 = vld [vmem:[%s10701_s1 + $0x2b0] sm:$0xff]  ;;  %v10916_v61 = vld [vmem:[#allocation28_spill] sm:$0xff] }
 0x2c5   :  { %5960 = vmatprep.subr.bf16.mxu0 %v10822_v60  ;;  %5984 = vmatprep.subr.bf16.mxu1 %v10822_v60 }
 0x2c6   :  { %v6000_v51 = vpack.c.bf16 %v7095_v6, %v7094_v56  ;;  %v6355_v6 = vunpack.i.h.bf16 %v10916_v61  ;;  %v6354_v56 = vunpack.i.l.bf16 %v10916_v61  ;;  %v6974_v61 = vunpack.i.l.bf16 %v8751_v36 }
 0x2c8   :  { %5962 = vmatpush1.bf16.msra.mxu0 %v5961_v48  ;;  %5986 = vmatpush1.bf16.msra.mxu1 %v5985_v63  ;;  %v6224_v63 = vunpack.i.l.bf16 %v10913_v62  ;;  %v9263_v48 = vld [vmem:[%s10702_s2] ss:$0 sm:$0xff]  ;;  %v6036_v41 = vpack.c.bf16 %v6355_v6, %v6354_v56  ;;  %v7055_v56 = vunpack.i.h.bf16 %v8982_v4 }
 0x2c9   :  { %5963 = vmatprep.subr.bf16.mxu0 %v10822_v60  ;;  %5987 = vmatprep.subr.bf16.mxu1 %v10822_v60  ;;  %v9267_v20 = vmul.f32 %v9263_v48, %v9175_v38  ;;  %v7286_v38 = vld [vmem:[%s10700_s0 + $0x170] sm:$0xff] }
 0x2ca   :  { %v6030_v45 = vpack.c.bf16 %v7287_v33, %v7286_v38  ;;  %v10920_v38 = vld [vmem:[#allocation57_spill] sm:$0xff] }
 0x2cb   :  { %v6605_v33 = vunpack.i.h.bf16 %v10920_v38 }
 0x2cc   :  { %5965 = vmatpush1.bf16.msra.mxu0 %v5964_v39  ;;  %5989 = vmatpush1.bf16.msra.mxu1 %v5988_v11  ;;  %v1403_v11 = vld [vmem:[%s10701_s1 + $0x298] sm:$0xff] }
 0x2cd   :  { %5966 = vmatprep.subr.bf16.mxu0 %v10822_v60  ;;  %5990 = vmatprep.subr.bf16.mxu1 %v10822_v60 }
 0x2d0   :  { %5968 = vmatpush1.bf16.msra.mxu0 %v5967_v22  ;;  %5992 = vmatpush1.bf16.msra.mxu1 %v5991_v28  ;;  %v6006_v28 = vpack.c.bf16 %v6225_v27, %v6224_v63  ;;  %v10915_v22 = vld [vmem:[#allocation25_spill] sm:$0xff] }
 0x2d1   :  { %5969 = vmatprep.subr.bf16.mxu0 %v10822_v60  ;;  %5993 = vmatprep.subr.bf16.mxu1 %v10822_v60  ;;  %v6350_v10 = vunpack.i.h.bf16 %v10915_v22 }
 0x2d4   :  { %5971 = vmatpush1.bf16.msra.mxu0 %v5970_v55  ;;  %5995 = vmatpush1.bf16.msra.mxu1 %v5994_v49  ;;  %v6349_v55 = vunpack.i.l.bf16 %v10915_v22 }
 0x2d5   :  { %5972 = vmatprep.subr.bf16.mxu0 %v10822_v60  ;;  %5996 = vmatprep.subr.bf16.mxu1 %v10822_v60  ;;  %v9232_v47 = vpop.f32.mrb[16].mxu0 }
 0x2d6   :  { %3977 = vadd.xlane.f32.xlu1 %v9228_v50  ;;  %v2593_v34 = vpop.f32.mrb[17].mxu0 }
 0x2d7   :  { %v10917_v34 = vld [vmem:[#allocation41_spill] sm:$0xff] }
 0x2d8   :  { %5974 = vmatpush1.bf16.msra.mxu0 %v5973_v54  ;;  %5998 = vmatpush1.bf16.msra.mxu1 %v5997_v40  ;;  %v6033_v40 = vpack.c.bf16 %v6230_v52, %v6229_v35  ;;  %v6009_v54 = vpack.c.bf16 %v6350_v10, %v6349_v55  ;;  %v6785_v52 = vunpack.i.h.bf16 %v8355_v25  ;;  %v6784_v35 = vunpack.i.l.bf16 %v8355_v25 }
 0x2d9   :  { %5999 = vmatprep.subr.bf16.mxu1 %v10822_v60  ;;  %6002 = vmatprep.subr.bf16.mxu0 %v10822_v60  ;;  %v9254_v7 = vpop.f32.mrb[18].mxu0  ;;  %v6790_v10 = vunpack.i.h.bf16 %v8361_v12  ;;  %v6789_v55 = vunpack.i.l.bf16 %v8361_v12  ;;  %v6969_v25 = vunpack.i.l.bf16 %v8748_v46 }
 0x2da   :  { %3981 = vadd.xlane.f32.xlu1 %v9236_v13  ;;  %3979 = vadd.xlane.f32.xlu0 %v9241_v8  ;;  %v9269_v26 = vpop.f32.mrb[16].mxu1  ;;  %v2598_v39 = vpop.f32.mrb[19].mxu0 }
 0x2db   :  { %3562 = vmatmul.mubr.f32.vlgmr.msra.gmra.mrb[40].mxu0 %v1400_v9  ;;  %v2674_v21 = vpop.f32.mrb[17].mxu1  ;;  %v6474_v9 = vunpack.i.l.bf16 %v10917_v34  ;;  %v6045_v12 = vpack.c.bf16 %v6790_v10, %v6789_v55 }
 0x2dc   :  { %6001 = vmatpush1.bf16.msra.mxu1 %v6000_v51  ;;  %6004 = vmatpush1.bf16.msra.mxu0 %v6003_v5  ;;  %v6475_v51 = vunpack.i.h.bf16 %v10917_v34  ;;  %v10918_v5 = vld [vmem:[#allocation40_spill] sm:$0xff] }
 0x2dd   :  { %6005 = vmatprep.subr.bf16.mxu0 %v10822_v60  ;;  %6029 = vmatprep.subr.bf16.mxu1 %v10822_v60  ;;  %v6480_v62 = vunpack.i.h.bf16 %v10918_v5  ;;  %v6479_v27 = vunpack.i.l.bf16 %v10918_v5  ;;  %v4913_v5 = vld [vmem:[%s10703_s4 + $0x50] sm:$0xff] }
 0x2de   :  { %3983 = vadd.xlane.f32.xlu0 %v9267_v20  ;;  %5398 = vmatprep.mubr.msk.f32.mxu0 %vm1870_vm0, %v1403_v11  ;;  %v9294_v49 = vpop.f32.mrb[18].mxu1  ;;  %v6012_v63 = vpack.c.bf16 %v6475_v51, %v6474_v9  ;;  %v10919_v11 = vld [vmem:[#allocation54_spill] sm:$0xff]  ;;  %v7060_v51 = vunpack.i.h.bf16 %v8986_v15 }
 0x2df   :  { %3643 = vmatmul.mubr.f32.vlgmr.msra.gmra.mrb[40].mxu1 %v1404_v1  ;;  %3567 = vmatmul.mubr.f32.gmra.mrb[42].mxu0 %v1402_v16  ;;  %v2679_v31 = vpop.f32.mrb[19].mxu1  ;;  %v6600_v21 = vunpack.i.h.bf16 %v10919_v11  ;;  %v6599_v39 = vunpack.i.l.bf16 %v10919_v11  ;;  %v4912_v1 = vld [vmem:[%s10703_s4 + $0x48] sm:$0xff]  ;;  %v6039_v16 = vpack.c.bf16 %v6480_v62, %v6479_v27  ;;  %v7103_v27 = vpop.permute.xlu0 %7102 }
 0x2e0   :  { %6007 = vmatpush1.bf16.msra.mxu0 %v6006_v28  ;;  %6031 = vmatpush1.bf16.msra.mxu1 %v6030_v45  ;;  %v6604_v45 = vunpack.i.l.bf16 %v10920_v38  ;;  %v4914_v28 = vld [vmem:[%s10703_s4 + $0x58] sm:$0xff]  ;;  %v4916_v31 = vld [vmem:[%s10703_s4 + $0x68] sm:$0xff] }
 0x2e1   :  { %6008 = vmatprep.subr.bf16.mxu0 %v10822_v60  ;;  %6032 = vmatprep.subr.bf16.mxu1 %v10822_v60  ;;  %v6015_v44 = vpack.c.bf16 %v6600_v21, %v6599_v39  ;;  %v4920_v62 = vld [vmem:[%s10703_s4 + $0x88] sm:$0xff]  ;;  %v7105_v21 = vunpack.i.h.bf16 %v7103_v27  ;;  %v7104_v39 = vunpack.i.l.bf16 %v7103_v27 }
 0x2e2   :  { %5400 = vmatprep.mubr.msk.f32.mxu1 %vm1870_vm0, %v1407_v43  ;;  %5401 = vmatprep.mubr.msk.f32.mxu0 %vm1870_vm0, %v1409_v30  ;;  %v6042_v22 = vpack.c.bf16 %v6605_v33, %v6604_v45  ;;  %v6018_v43 = vpack.c.bf16 %v6785_v52, %v6784_v35  ;;  %v6970_v30 = vunpack.i.h.bf16 %v8748_v46  ;;  %v7054_v46 = vunpack.i.l.bf16 %v8982_v4  ;;  %v4922_v33 = vld [vmem:[%s10703_s4 + $0x98] sm:$0xff]  ;;  %v1408_v45 = vld [vmem:[%s10701_s1 + $0x2c0] sm:$0xff] }
 0x2e3   :  { %3648 = vmatmul.mubr.f32.gmra.mrb[42].mxu1 %v1406_v42  ;;  %v6975_v42 = vunpack.i.h.bf16 %v8751_v36  ;;  %v4918_v36 = vld [vmem:[%s10703_s4 + $0x78] sm:$0xff]  ;;  %v7059_v4 = vunpack.i.l.bf16 %v8986_v15  ;;  %v6054_v55 = vpack.c.bf16 %v7105_v21, %v7104_v39  ;;  %v6980_v39 = vunpack.i.h.bf16 %v8763_v58 }
 0x2e4   :  { %6010 = vmatpush1.bf16.msra.mxu0 %v6009_v54  ;;  %6034 = vmatpush1.bf16.msra.mxu1 %v6033_v40  ;;  %v6021_v6 = vpack.c.bf16 %v6970_v30, %v6969_v25  ;;  %v4911_v40 = vld [vmem:[%s10703_s4 + $0x40] sm:$0xff]  ;;  %v7098_v54 = vpop.permute.xlu1 %7097  ;;  %v6024_v9 = vpack.c.bf16 %v7055_v56, %v7054_v46 }
 0x2e5   :  { %6011 = vmatprep.subr.bf16.mxu0 %v10822_v60  ;;  %6035 = vmatprep.subr.bf16.mxu1 %v10822_v60  ;;  %v6048_v34 = vpack.c.bf16 %v6975_v42, %v6974_v61  ;;  %v1412_v42 = vld [vmem:[%s10701_s1 + $0x2e0] sm:$0xff] }
 0x2e6   :  { %5403 = vmatprep.mubr.msk.f32.mxu1 %vm1870_vm0, %v1413_v59  ;;  %v7100_v59 = vunpack.i.h.bf16 %v7098_v54  ;;  %v4919_v46 = vld [vmem:[%s10703_s4 + $0x80] sm:$0xff] }
 0x2e8   :  { %6013 = vmatpush1.bf16.msra.mxu0 %v6012_v63  ;;  %6037 = vmatpush1.bf16.msra.mxu1 %v6036_v41  ;;  %v7099_v41 = vunpack.i.l.bf16 %v7098_v54  ;;  %v6051_v63 = vpack.c.bf16 %v7060_v51, %v7059_v4 }
 0x2e9   :  { %6014 = vmatprep.subr.bf16.mxu0 %v10822_v60  ;;  %6038 = vmatprep.subr.bf16.mxu1 %v10822_v60 }
 0x2ea   :  { %v6027_v11 = vpack.c.bf16 %v7100_v59, %v7099_v41  ;;  %v10924_v41 = vld [vmem:[#allocation56_spill] sm:$0xff] }
 0x2eb   :  { %5000 = vperm.xlu1 %7112, %v4912_v1   ;;  %v4915_v1 = vld [vmem:[%s10703_s4 + $0x60] sm:$0xff] }
 0x2ec   :  { %6016 = vmatpush1.bf16.msra.mxu0 %v6015_v44  ;;  %6040 = vmatpush1.bf16.msra.mxu1 %v6039_v16  ;;  %v7288_v16 = vld [vmem:[%s10700_s0 + $0x180] sm:$0xff]  ;;  %v7289_v44 = vld [vmem:[%s10700_s0 + $0x188] sm:$0xff] }
 0x2ed   :  { %6017 = vmatprep.subr.bf16.mxu0 %v10822_v60  ;;  %6041 = vmatprep.subr.bf16.mxu1 %v10822_v60  ;;  %v6057_v52 = vpack.c.bf16 %v7289_v44, %v7288_v16  ;;  %v3954_v16 = vpop.xlane.xlu0 %3953 }
 0x2ef   :  { %5010 = vperm.xlu1 %7112, %v4914_v28   ;;  %v10921_v28 = vld [vmem:[#allocation15_spill] sm:$0xff] }
 0x2f0   :  { %6019 = vmatpush1.bf16.msra.mxu0 %v6018_v43  ;;  %6043 = vmatpush1.bf16.msra.mxu1 %v6042_v22  ;;  %v6235_v22 = vunpack.i.h.bf16 %v10921_v28  ;;  %v6234_v10 = vunpack.i.l.bf16 %v10921_v28  ;;  %v4917_v43 = vld [vmem:[%s10703_s4 + $0x70] sm:$0xff]  ;;  %v4053_v28 = vmul.f32 0.020408163, %v3954_v16 }
 0x2f1   :  { %6020 = vmatprep.subr.bf16.mxu0 %v10822_v60  ;;  %6044 = vmatprep.subr.bf16.mxu1 %v10822_v60 }
 0x2f2   :  { %v6060_v61 = vpack.c.bf16 %v6235_v22, %v6234_v10  ;;  %v3958_v22 = vpop.xlane.xlu0 %3957 }
 0x2f3   :  { %5020 = vperm.xlu1 %7112, %v4916_v31  }
 0x2f4   :  { %6022 = vmatpush1.bf16.msra.mxu0 %v6021_v6  ;;  %6046 = vmatpush1.bf16.msra.mxu1 %v6045_v12  ;;  %v10922_v12 = vld [vmem:[#allocation27_spill] sm:$0xff] }
 0x2f5   :  { %4995 = vperm.xlu0 %7111, %v4911_v40   ;;  %6023 = vmatprep.subr.bf16.mxu0 %v10822_v60  ;;  %v6360_v6 = vunpack.i.h.bf16 %v10922_v12  ;;  %v6359_v56 = vunpack.i.l.bf16 %v10922_v12 }
 0x2f6   :  { %6047 = vmatprep.subr.bf16.mxu1 %v10822_v60 }
 0x2f7   :  { %5030 = vperm.xlu1 %7112, %v4918_v36   ;;  %v6063_v36 = vpack.c.bf16 %v6360_v6, %v6359_v56  ;;  %v3960_v6 = vpop.xlane.xlu0 %3959  ;;  %v9447_v56 = vmul.f32 %v9263_v48, %v9269_v26  ;;  %v9463_v26 = vmul.f32 %v9263_v48, %v9294_v49 }
 0x2f8   :  { %6025 = vmatpush1.bf16.msra.mxu0 %v6024_v9  ;;  %6049 = vmatpush1.bf16.msra.mxu1 %v6048_v34  ;;  %v10923_v34 = vld [vmem:[#allocation42_spill] sm:$0xff]  ;;  %v4921_v9 = vld [vmem:[%s10703_s4 + $0x90] sm:$0xff] }
 0x2f9   :  { %5005 = vperm.xlu0 %7111, %v4913_v5   ;;  %6026 = vmatprep.subr.bf16.mxu0 %v10822_v60  ;;  %v9367_v15 = vpop.f32.mrb[20].mxu0  ;;  %v6485_v51 = vunpack.i.h.bf16 %v10923_v34  ;;  %v6484_v4 = vunpack.i.l.bf16 %v10923_v34  ;;  %v6610_v5 = vunpack.i.h.bf16 %v10924_v41 }
 0x2fa   :  { %6050 = vmatprep.subr.bf16.mxu1 %v10822_v60  ;;  %v2755_v38 = vpop.f32.mrb[21].mxu0 }
 0x2fb   :  { %5040 = vperm.xlu1 %7112, %v4920_v62   ;;  %v6066_v59 = vpack.c.bf16 %v6485_v51, %v6484_v4  ;;  %v6609_v62 = vunpack.i.l.bf16 %v10924_v41 }
 0x2fc   :  { %6028 = vmatpush1.bf16.msra.mxu0 %v6027_v11  ;;  %6052 = vmatpush1.bf16.msra.mxu1 %v6051_v63  ;;  %v6795_v63 = vunpack.i.h.bf16 %v8384_v3  ;;  %v6794_v11 = vunpack.i.l.bf16 %v8384_v3  ;;  %v7065_v3 = vunpack.i.h.bf16 %v8996_v2 }
 0x2fd   :  { %5015 = vperm.xlu0 %7111, %v4915_v1   ;;  %6053 = vmatprep.subr.bf16.mxu1 %v10822_v60  ;;  %v9386_v35 = vpop.f32.mrb[22].mxu0  ;;  %v6069_v27 = vpack.c.bf16 %v6610_v5, %v6609_v62  ;;  %v6979_v1 = vunpack.i.l.bf16 %v8763_v58  ;;  %v1411_v62 = vld [vmem:[%s10701_s1 + $0x2d8] sm:$0xff] }
 0x2fe   :  { %6056 = vmatprep.subr.bf16.mxu0 %v10822_v60  ;;  %v9394_v30 = vpop.f32.mrb[20].mxu1  ;;  %v2760_v31 = vpop.f32.mrb[23].mxu0  ;;  %v6072_v21 = vpack.c.bf16 %v6795_v63, %v6794_v11  ;;  %v4924_v63 = vld [vmem:[%s10703_s4 + $0xa8] sm:$0xff]  ;;  %v1415_v11 = vld [vmem:[%s10701_s1 + $0x2f8] sm:$0xff] }
 0x2ff   :  { %5050 = vperm.xlu1 %7112, %v4922_v33   ;;  %3724 = vmatmul.mubr.f32.vlgmr.msra.gmra.mrb[44].mxu0 %v1408_v45  ;;  %v2836_v25 = vpop.f32.mrb[21].mxu1  ;;  %v6075_v38 = vpack.c.bf16 %v6980_v39, %v6979_v1  ;;  %v7064_v33 = vunpack.i.l.bf16 %v8996_v2  ;;  %v7108_v45 = vpop.permute.xlu1 %7107  ;;  %v4103_v31 = vsub.f32 %v8787_v53, %v4053_v28  ;;  %v4926_v39 = vld [vmem:[%s10703_s4 + $0xb8] sm:$0xff] }
 0x300   :  { %6055 = vmatpush1.bf16.msra.mxu1 %v6054_v55  ;;  %6058 = vmatpush1.bf16.msra.mxu0 %v6057_v52  ;;  %v7110_v44 = vunpack.i.h.bf16 %v7108_v45  ;;  %v9439_v25 = vmul.f32 %v9263_v48, %v9232_v47  ;;  %v9452_v47 = vmul.f32 %v9263_v48, %v9254_v7 }
 0x301   :  { %5025 = vperm.xlu0 %7111, %v4917_v43   ;;  %6083 = vmatprep.subr.bf16.mxu1 %v10822_v60  ;;  %v6078_v58 = vpack.c.bf16 %v7065_v3, %v7064_v33  ;;  %v9455_v53 = vmul.f32 %v9263_v48, %v4103_v31  ;;  %v4928_v3 = vld [vmem:[%s10703_s4 + $0xc8] sm:$0xff] }
 0x302   :  { %6059 = vmatprep.subr.bf16.mxu0 %v10822_v60  ;;  %v9406_v40 = vpop.f32.mrb[22].mxu1  ;;  %5402 = vmatprep.mubr.msk.f32.mxu0 %vm1870_vm0, %v1411_v62 }
 0x303   :  { %3805 = vmatmul.mubr.f32.vlgmr.msra.gmra.mrb[44].mxu1 %v1412_v42  ;;  %v2841_v54 = vpop.f32.mrb[23].mxu1  ;;  %v3956_v43 = vpop.xlane.xlu1 %3955  ;;  %v4055_v42 = vmul.f32 0.020408163, %v3958_v22  ;;  %v4203_v34 = vmul.f32 %v9455_v53, %v9455_v53  ;;  %v4927_v22 = vld [vmem:[%s10703_s4 + $0xc0] sm:$0xff] }
 0x304   :  { %6092 = vmatpush1.bf16.msra.mxu1 %v6057_v52  ;;  %6061 = vmatpush1.bf16.msra.mxu0 %v6060_v61  ;;  %v7109_v52 = vunpack.i.l.bf16 %v7108_v45  ;;  %v4923_v45 = vld [vmem:[%s10703_s4 + $0xa0] sm:$0xff] }
 0x305   :  { %5035 = vperm.xlu0 %7111, %v4919_v46   ;;  %6084 = vmatprep.subr.bf16.mxu1 %v10822_v60 }
 0x306   :  { %6062 = vmatprep.subr.bf16.mxu0 %v10822_v60  ;;  %v6081_v10 = vpack.c.bf16 %v7110_v44, %v7109_v52  ;;  %5404 = vmatprep.mubr.msk.f32.mxu1 %vm1870_vm0, %v1415_v11  ;;  %v4925_v44 = vld [vmem:[%s10703_s4 + $0xb0] sm:$0xff]  ;;  %v4932_v52 = vld [vmem:[%s10703_s4 + $0xe8] sm:$0xff] }
 0x308   :  { %6093 = vmatpush1.bf16.msra.mxu1 %v6060_v61  ;;  %6064 = vmatpush1.bf16.msra.mxu0 %v6063_v36  ;;  %v4054_v61 = vmul.f32 0.020408163, %v3956_v43  ;;  %v4929_v43 = vld [vmem:[%s10703_s4 + $0xd0] sm:$0xff] }
 0x309   :  { %5045 = vperm.xlu0 %7111, %v4921_v9   ;;  %6085 = vmatprep.subr.bf16.mxu1 %v10822_v60 }
 0x30a   :  { %6065 = vmatprep.subr.bf16.mxu0 %v10822_v60  ;;  %v4104_v54 = vsub.f32 %v8807_v17, %v4054_v61 }
 0x30c   :  { %6094 = vmatpush1.bf16.msra.mxu1 %v6063_v36  ;;  %6067 = vmatpush1.bf16.msra.mxu0 %v6066_v59  ;;  %v4056_v36 = vmul.f32 0.020408163, %v3960_v6  ;;  %v9471_v51 = vmul.f32 %v9263_v48, %v4104_v54 }
 0x30d   :  { %6086 = vmatprep.subr.bf16.mxu1 %v10822_v60  ;;  %6068 = vmatprep.subr.bf16.mxu0 %v10822_v60 }
 0x30e   :  { %v4106_v17 = vsub.f32 %v8836_v23, %v4056_v36  ;;  %v4204_v4 = vmul.f32 %v9471_v51, %v9471_v51 }
 0x310   :  { %6095 = vmatpush1.bf16.msra.mxu1 %v6066_v59  ;;  %6070 = vmatpush1.bf16.msra.mxu0 %v6069_v27  ;;  %v9478_v49 = vmul.f32 %v9263_v48, %v4106_v17 }
 0x311   :  { %6087 = vmatprep.subr.bf16.mxu1 %v10822_v60  ;;  %6071 = vmatprep.subr.bf16.mxu0 %v10822_v60 }
 0x312   :  { %v4206_v9 = vmul.f32 %v9478_v49, %v9478_v49 }
 0x314   :  { %6096 = vmatpush1.bf16.msra.mxu1 %v6069_v27  ;;  %6073 = vmatpush1.bf16.msra.mxu0 %v6072_v21  ;;  %v1410_v27 = vld [vmem:[%s10701_s1 + $0x2d0] sm:$0xff] }
 0x315   :  { %6088 = vmatprep.subr.bf16.mxu1 %v10822_v60  ;;  %6074 = vmatprep.subr.bf16.mxu0 %v10822_v60 }
 0x316   :  { %3729 = vmatmul.mubr.f32.gmra.mrb[46].mxu0 %v1410_v27  ;;  %v9551_v27 = vmul.f32 %v9263_v48, %v9367_v15 }
 0x318   :  { %6097 = vmatpush1.bf16.msra.mxu1 %v6072_v21  ;;  %6076 = vmatpush1.bf16.msra.mxu0 %v6075_v38  ;;  %v1414_v21 = vld [vmem:[%s10701_s1 + $0x2f0] sm:$0xff] }
 0x319   :  { %6089 = vmatprep.subr.bf16.mxu1 %v10822_v60  ;;  %6077 = vmatprep.subr.bf16.mxu0 %v10822_v60 }
 0x31a   :  { %3810 = vmatmul.mubr.f32.gmra.mrb[46].mxu1 %v1414_v21  ;;  %v9556_v21 = vmul.f32 %v9263_v48, %v9386_v35  ;;  %v9571_v35 = vmul.f32 %v9263_v48, %v9406_v40 }
 0x31c   :  { %6098 = vmatpush1.bf16.msra.mxu1 %v6075_v38  ;;  %6079 = vmatpush1.bf16.msra.mxu0 %v6078_v58 }
 0x31d   :  { %6090 = vmatprep.subr.bf16.mxu1 %v10822_v60  ;;  %6080 = vmatprep.subr.bf16.mxu0 %v10822_v60  ;;  %v9435_v2 = vpop.f32.mrb[24].mxu0 }
 0x31e   :  { %v2917_v55 = vpop.f32.mrb[25].mxu0 }
 0x320   :  { %6099 = vmatpush1.bf16.msra.mxu1 %v6078_v58  ;;  %6082 = vmatpush1.bf16.msra.mxu0 %v6081_v10  ;;  %v4930_v58 = vld [vmem:[%s10703_s4 + $0xd8] sm:$0xff] }
 0x321   :  { %6091 = vmatprep.subr.bf16.mxu1 %v10822_v60  ;;  %v4105_v60 = vsub.f32 %v8810_v24, %v4055_v42  ;;  %v9484_v59 = vpop.f32.mrb[26].mxu0  ;;  %v4931_v42 = vld [vmem:[%s10703_s4 + $0xe0] sm:$0xff] }
 0x322   :  { %v9443_v12 = vpop.f32.mrb[24].mxu1  ;;  %v2922_v23 = vpop.f32.mrb[27].mxu0 }
 0x323   :  { %3985 = vadd.xlane.f32.xlu1 %v9439_v25  ;;  %v2998_v46 = vpop.f32.mrb[25].mxu1  ;;  %v9466_v7 = vmul.f32 %v9263_v48, %v4105_v60 }
 0x324   :  { %6100 = vmatpush1.bf16.msra.mxu1 %v6081_v10  ;;  %v3962_v46 = vpop.xlane.xlu1 %3961 }
 0x325   :  { %v4205_v24 = vmul.f32 %v9466_v7, %v9466_v7  ;;  %v4057_v17 = vmul.f32 0.020408163, %v3962_v46 }
 0x326   :  { %v9486_v41 = vpop.f32.mrb[26].mxu1 }
 0x327   :  { %3989 = vadd.xlane.f32.xlu1 %v9447_v56  ;;  %v3003_v5 = vpop.f32.mrb[27].mxu1 }
 0x328   :  { %3987 = vadd.xlane.f32.xlu0 %v9452_v47  ;;  %v4107_v5 = vsub.f32 %v8897_v18, %v4057_v17  ;;  %v9564_v18 = vmul.f32 %v9263_v48, %v9394_v30  ;;  %v1419_v30 = vld [vmem:[%s10701_s1 + $0x318] sm:$0xff] }
 0x329   :  { %5406 = vmatprep.mubr.msk.f32.mxu1 %vm1870_vm0, %v1419_v30  ;;  %v4938_v17 = vld [vmem:[%s10703_s4 + $0x118] sm:$0xff] }
 0x32b   :  { %4253 = vadd.xlane.f32.xlu1 %v4203_v34 }
 0x32c   :  { %3991 = vadd.xlane.f32.xlu0 %v9463_v26 }
 0x32f   :  { %4257 = vadd.xlane.f32.xlu1 %v4205_v24  ;;  %v3964_v24 = vpop.xlane.xlu0 %3963 }
 0x330   :  { %4255 = vadd.xlane.f32.xlu0 %v4204_v4 }
 0x333   :  { %v3968_v11 = vpop.xlane.xlu0 %3967 }
 0x334   :  { %4259 = vadd.xlane.f32.xlu0 %v4206_v9  ;;  %v3966_v9 = vpop.xlane.xlu1 %3965 }
 0x335   :  { %v4059_v62 = vmul.f32 0.020408163, %v3966_v9  ;;  %v4933_v9 = vld [vmem:[%s10703_s4 + $0xf0] sm:$0xff] }
 0x340   :  { %5060 = vperm.xlu1 %7112, %v4924_v63   ;;  %v4058_v63 = vmul.f32 0.020408163, %v3964_v24 }
 0x341   :  { %v9508_v1 = vpop.f32.mrb[28].mxu0 }
 0x342   :  { %v3079_v38 = vpop.f32.mrb[29].mxu0  ;;  %v4108_v15 = vsub.f32 %v8917_v19, %v4058_v63 }
 0x343   :  { %v4109_v38 = vsub.f32 %v8920_v37, %v4059_v62 }
 0x344   :  { %5070 = vperm.xlu1 %7112, %v4926_v39   ;;  %v9559_v39 = vmul.f32 %v9263_v48, %v4107_v5  ;;  %v9582_v19 = vmul.f32 %v9263_v48, %v4108_v15  ;;  %v4935_v5 = vld [vmem:[%s10703_s4 + $0x100] sm:$0xff] }
 0x345   :  { %v9527_v28 = vpop.f32.mrb[30].mxu0 }
 0x346   :  { %v9513_v33 = vpop.f32.mrb[28].mxu1  ;;  %v3084_v10 = vpop.f32.mrb[31].mxu0  ;;  %10925 = vst [vmem:[#allocation43_spill] sm:$0xff] %v9559_v39  ;;  %v4207_v37 = vmul.f32 %v9559_v39, %v9559_v39  ;;  %10927 = vst [vmem:[#allocation59_spill] sm:$0xff] %v9582_v19 }
 0x347   :  { %v3160_v16 = vpop.f32.mrb[29].mxu1 }
 0x348   :  { %5080 = vperm.xlu1 %7112, %v4928_v3   ;;  %v4060_v3 = vmul.f32 0.020408163, %v3968_v11 }
 0x34a   :  { %5055 = vperm.xlu0 %7111, %v4923_v45   ;;  %v9532_v55 = vpop.f32.mrb[30].mxu1  ;;  %v9574_v45 = vmul.f32 %v9263_v48, %v4109_v38  ;;  %v4110_v16 = vsub.f32 %v8944_v0, %v4060_v3 }
 0x34b   :  { %v3165_v31 = vpop.f32.mrb[31].mxu1 }
 0x34c   :  { %5090 = vperm.xlu1 %7112, %v4930_v58   ;;  %10926 = vst [vmem:[#allocation29_spill] sm:$0xff] %v9574_v45  ;;  %v4209_v40 = vmul.f32 %v9574_v45, %v9574_v45  ;;  %v1418_v58 = vld [vmem:[%s10701_s1 + $0x310] sm:$0xff] }
 0x34d   :  { %3891 = vmatmul.mubr.f32.vlgmr.msra.gmra.mrb[48].mxu1 %v1418_v58 }
 0x34e   :  { %5065 = vperm.xlu0 %7111, %v4925_v44   ;;  %v9593_v44 = vmul.f32 %v9263_v48, %v4110_v16 }
 0x350   :  { %5100 = vperm.xlu1 %7112, %v4932_v52   ;;  %10928 = vst [vmem:[#allocation45_spill] sm:$0xff] %v9593_v44  ;;  %v3970_v52 = vpop.xlane.xlu1 %3969  ;;  %v4210_v0 = vmul.f32 %v9593_v44, %v9593_v44 }
 0x352   :  { %5075 = vperm.xlu0 %7111, %v4927_v22   ;;  %v4208_v22 = vmul.f32 %v9582_v19, %v9582_v19 }
 0x354   :  { %v3974_v10 = vpop.xlane.xlu1 %3973 }
 0x356   :  { %5085 = vperm.xlu0 %7111, %v4929_v43   ;;  %v3972_v43 = vpop.xlane.xlu0 %3971 }
 0x357   :  { %v4062_v39 = vmul.f32 0.020408163, %v3972_v43 }
 0x358   :  { %v9599_v31 = vpop.permute.xlu1 %4960 }
 0x35a   :  { %5095 = vperm.xlu0 %7111, %v4931_v42   ;;  %v4934_v42 = vld [vmem:[%s10703_s4 + $0xf8] sm:$0xff] }
 0x35c   :  { %v9604_v46 = vpop.permute.xlu1 %4970 }
 0x360   :  { %v9614_v24 = vpop.permute.xlu1 %4980 }
 0x361   :  { %10929 = vst [vmem:[#allocation58_spill] sm:$0xff] %v9614_v24 }
 0x364   :  { %v9624_v62 = vpop.permute.xlu1 %4990 }
 0x365   :  { %v9540_v61 = vpop.f32.mrb[32].mxu0  ;;  %10930 = vst [vmem:[#allocation4_spill] sm:$0xff] %v9624_v62 }
 0x366   :  { %v3241_v6 = vpop.f32.mrb[33].mxu0 }
 0x367   :  { %v3976_v6 = vpop.xlane.xlu0 %3975 }
 0x368   :  { %v3978_v58 = vpop.xlane.xlu1 %3977 }
 0x369   :  { %v9542_v60 = vpop.f32.mrb[34].mxu0 }
 0x36a   :  { %v9544_v54 = vpop.f32.mrb[32].mxu1  ;;  %v3246_v36 = vpop.f32.mrb[35].mxu0 }
 0x36b   :  { %v3322_v34 = vpop.f32.mrb[33].mxu1  ;;  %v4936_v36 = vld [vmem:[%s10703_s4 + $0x108] sm:$0xff] }
 0x36c   :  { %v9609_v34 = vpop.permute.xlu0 %4955 }
 0x36e   :  { %v9546_v4 = vpop.f32.mrb[34].mxu1 }
 0x36f   :  { %v3327_v23 = vpop.f32.mrb[35].mxu1 }
 0x370   :  { %v9619_v23 = vpop.permute.xlu0 %4965 }
 0x374   :  { %3993 = vadd.xlane.f32.xlu1 %v9551_v27  ;;  %v9630_v3 = vpop.permute.xlu0 %4975 }
 0x375   :  { %10931 = vst [vmem:[#allocation16_spill] sm:$0xff] %v9630_v3  ;;  %v9667_v3 = vmul.f32 %v9263_v48, %v9435_v2  ;;  %v9685_v2 = vmul.f32 %v9263_v48, %v9484_v59  ;;  %v9702_v59 = vmul.f32 %v9263_v48, %v9486_v41 }
 0x378   :  { %3997 = vadd.xlane.f32.xlu1 %v9564_v18 }
 0x379   :  { %3995 = vadd.xlane.f32.xlu0 %v9556_v21 }
 0x37c   :  { %4261 = vadd.xlane.f32.xlu1 %v4207_v37  ;;  %v4937_v37 = vld [vmem:[%s10703_s4 + $0x110] sm:$0xff] }
 0x37d   :  { %3999 = vadd.xlane.f32.xlu0 %v9571_v35 }
 0x380   :  { %4265 = vadd.xlane.f32.xlu1 %v4209_v40 }
 0x381   :  { %4263 = vadd.xlane.f32.xlu0 %v4208_v22 }
 0x385   :  { %4267 = vadd.xlane.f32.xlu0 %v4210_v0  ;;  %v9639_v0 = vpop.permute.xlu0 %4985 }
 0x386   :  { %10932 = vst [vmem:[#allocation3_spill] sm:$0xff] %v9639_v0 }
 0x389   :  { %v9626_v63 = vpop.f32.mrb[36].mxu0 }
 0x38a   :  { %v3403_v38 = vpop.f32.mrb[37].mxu0 }
 0x38d   :  { %v9635_v30 = vpop.f32.mrb[38].mxu0 }
 0x38e   :  { %v9628_v11 = vpop.f32.mrb[36].mxu1  ;;  %v3408_v16 = vpop.f32.mrb[39].mxu0 }
 0x38f   :  { %v3484_v15 = vpop.f32.mrb[37].mxu1 }
 0x391   :  { %5110 = vperm.xlu1 %7112, %v4934_v42   ;;  %v1417_v42 = vld [vmem:[%s10701_s1 + $0x308] sm:$0xff] }
 0x392   :  { %v9637_v40 = vpop.f32.mrb[38].mxu1  ;;  %5405 = vmatprep.mubr.msk.f32.mxu0 %vm1870_vm0, %v1417_v42 }
 0x393   :  { %v3489_v22 = vpop.f32.mrb[39].mxu1 }
 0x395   :  { %5120 = vperm.xlu1 %7112, %v4936_v36   ;;  %v1416_v36 = vld [vmem:[%s10701_s1 + $0x300] sm:$0xff] }
 0x396   :  { %3886 = vmatmul.mubr.f32.vlgmr.msra.gmra.mrb[48].mxu0 %v1416_v36  ;;  %v4061_v36 = vmul.f32 0.020408163, %v3970_v52 }
 0x399   :  { %5130 = vperm.xlu1 %7112, %v4938_v17   ;;  %v3982_v17 = vpop.xlane.xlu1 %3981 }
 0x39b   :  { %5105 = vperm.xlu0 %7111, %v4933_v9   ;;  %v3980_v9 = vpop.xlane.xlu0 %3979 }
 0x39d   :  { %v9650_v15 = vpop.permute.xlu1 %5000 }
 0x39e   :  { %10933 = vst [vmem:[#allocation31_spill] sm:$0xff] %v9650_v15  ;;  %v4063_v15 = vmul.f32 0.020408163, %v3974_v10  ;;  %v4064_v10 = vmul.f32 0.020408163, %v3976_v6 }
 0x39f   :  { %5115 = vperm.xlu0 %7111, %v4935_v5  }
 0x3a0   :  { %v4113_v52 = vsub.f32 %v9032_v29, %v4063_v15  ;;  %v4065_v15 = vmul.f32 0.020408163, %v3978_v58  ;;  %v4066_v58 = vmul.f32 0.020408163, %v3980_v9 }
 0x3a1   :  { %v9658_v19 = vpop.permute.xlu1 %5010 }
 0x3a2   :  { %v9692_v29 = vmul.f32 %v9263_v48, %v4113_v52  ;;  %v4115_v41 = vsub.f32 %v9228_v50, %v4065_v15  ;;  %v4116_v9 = vsub.f32 %v9241_v8, %v4066_v58 }
 0x3a3   :  { %5125 = vperm.xlu0 %7111, %v4937_v37   ;;  %v3984_v37 = vpop.xlane.xlu0 %3983 }
 0x3a4   :  { %v9733_v50 = vmul.f32 %v9263_v48, %v4115_v41  ;;  %v4068_v15 = vmul.f32 0.020408163, %v3984_v37  ;;  %v9755_v8 = vmul.f32 %v9263_v48, %v4116_v9  ;;  %v9768_v9 = vmul.f32 %v9263_v48, %v9540_v61 }
 0x3a5   :  { %v9780_v61 = vmul.f32 %v9263_v48, %v9542_v60 }
 0x3a6   :  { %10943 = vst [vmem:[#allocation33_spill] sm:$0xff] %v9755_v8  ;;  %v4118_v37 = vsub.f32 %v9267_v20, %v4068_v15 }
 0x3a7   :  { %v9656_v24 = vpop.permute.xlu0 %4995 }
 0x3a8   :  { %v9762_v58 = vmul.f32 %v9263_v48, %v4118_v37  ;;  %v9775_v37 = vmul.f32 %v9263_v48, %v9544_v54 }
 0x3aa   :  { %10944 = vst [vmem:[#allocation20_spill] sm:$0xff] %v9762_v58 }
 0x3ab   :  { %v9662_v45 = vpop.permute.xlu0 %5005 }
 0x3ae   :  { %v9648_v5 = vpop.f32.mrb[40].mxu0 }
 0x3af   :  { %v3565_v38 = vpop.f32.mrb[41].mxu0 }
 0x3b0   :  { %v4111_v38 = vsub.f32 %v9009_v14, %v4061_v36  ;;  %v4112_v14 = vsub.f32 %v9029_v32, %v4062_v39  ;;  %v9681_v36 = vpop.permute.xlu0 %5015  ;;  %v4114_v39 = vsub.f32 %v9056_v57, %v4064_v10  ;;  %v4067_v10 = vmul.f32 0.020408163, %v3982_v17 }
 0x3b1   :  { %10935 = vst [vmem:[#allocation44_spill] sm:$0xff] %v9681_v36  ;;  %v9738_v17 = vmul.f32 %v9263_v48, %v9513_v33  ;;  %v4215_v33 = vmul.f32 %v9733_v50, %v9733_v50 }
 0x3b2   :  { %v9652_v16 = vpop.f32.mrb[42].mxu0  ;;  %v9654_v22 = vpop.f32.mrb[40].mxu1  ;;  %v9697_v32 = vmul.f32 %v9263_v48, %v4112_v14  ;;  %v9710_v52 = vmul.f32 %v9263_v48, %v4114_v39 }
 0x3b3   :  { %v3646_v62 = vpop.f32.mrb[41].mxu1  ;;  %v3570_v44 = vpop.f32.mrb[43].mxu0 }
 0x3b4   :  { %v9669_v62 = vpop.permute.xlu1 %5020  ;;  %v9673_v44 = vmul.f32 %v9263_v48, %v4111_v38  ;;  %v9704_v6 = vpop.permute.xlu0 %5025  ;;  %v4213_v38 = vmul.f32 %v9692_v29, %v9692_v29  ;;  %v4212_v57 = vmul.f32 %v9697_v32, %v9697_v32  ;;  %v4214_v39 = vmul.f32 %v9710_v52, %v9710_v52 }
 0x3b5   :  { %10934 = vst [vmem:[#allocation18_spill] sm:$0xff] %v9669_v62  ;;  %10937 = vst [vmem:[#allocation61_spill] sm:$0xff] %v9704_v6 }
 0x3b6   :  { %v9660_v42 = vpop.f32.mrb[42].mxu1 }
 0x3b7   :  { %v3651_v0 = vpop.f32.mrb[43].mxu1 }
 0x3b8   :  { %v9678_v0 = vmul.f32 %v9263_v48, %v9443_v12  ;;  %v9688_v43 = vpop.permute.xlu1 %5030  ;;  %v4211_v12 = vmul.f32 %v9673_v44, %v9673_v44 }
 0x3b9   :  { %10936 = vst [vmem:[#allocation30_spill] sm:$0xff] %v9688_v43  ;;  %v9721_v43 = vpop.permute.xlu0 %5035 }
 0x3ba   :  { %10939 = vst [vmem:[#allocation60_spill] sm:$0xff] %v9721_v43 }
 0x3bc   :  { %v9712_v14 = vpop.permute.xlu1 %5040 }
 0x3bd   :  { %4001 = vadd.xlane.f32.xlu1 %v9667_v3  ;;  %10938 = vst [vmem:[#allocation47_spill] sm:$0xff] %v9712_v14 }
 0x3c0   :  { %v9726_v14 = vpop.permute.xlu1 %5050 }
 0x3c1   :  { %4005 = vadd.xlane.f32.xlu1 %v9678_v0  ;;  %10940 = vst [vmem:[#allocation6_spill] sm:$0xff] %v9726_v14  ;;  %v4216_v14 = vmul.f32 %v9755_v8, %v9755_v8 }
 0x3c2   :  { %4003 = vadd.xlane.f32.xlu0 %v9685_v2 }
 0x3c5   :  { %4269 = vadd.xlane.f32.xlu1 %v4211_v12  ;;  %v9719_v12 = vmul.f32 %v9263_v48, %v9508_v1  ;;  %v4117_v1 = vsub.f32 %v9236_v13, %v4067_v10 }
 0x3c6   :  { %4007 = vadd.xlane.f32.xlu0 %v9702_v59 }
 0x3c7   :  { %v9750_v13 = vmul.f32 %v9263_v48, %v4117_v1 }
 0x3c9   :  { %4273 = vadd.xlane.f32.xlu1 %v4213_v38  ;;  %v9730_v38 = vmul.f32 %v9263_v48, %v9527_v28  ;;  %v9747_v28 = vmul.f32 %v9263_v48, %v9532_v55  ;;  %10942 = vst [vmem:[#allocation5_spill] sm:$0xff] %v9750_v13  ;;  %v4217_v55 = vmul.f32 %v9750_v13, %v9750_v13 }
 0x3ca   :  { %4271 = vadd.xlane.f32.xlu0 %v4212_v57  ;;  %v9742_v57 = vpop.permute.xlu0 %5045 }
 0x3cb   :  { %10941 = vst [vmem:[#allocation17_spill] sm:$0xff] %v9742_v57  ;;  %v4218_v57 = vmul.f32 %v9762_v58, %v9762_v58 }
 0x3cd   :  { %4009 = vadd.xlane.f32.xlu1 %v9719_v12 }
 0x3ce   :  { %4275 = vadd.xlane.f32.xlu0 %v4214_v39  ;;  %v3986_v39 = vpop.xlane.xlu1 %3985  ;;  %v3988_v41 = vpop.xlane.xlu0 %3987 }
 0x3cf   :  { %v4069_v10 = vmul.f32 0.020408163, %v3986_v39  ;;  %v4070_v39 = vmul.f32 0.020408163, %v3988_v41 }
 0x3d1   :  { %4013 = vadd.xlane.f32.xlu1 %v9738_v17  ;;  %v4119_v20 = vsub.f32 %v9439_v25, %v4069_v10  ;;  %v4120_v41 = vsub.f32 %v9452_v47, %v4070_v39 }
 0x3d2   :  { %4011 = vadd.xlane.f32.xlu0 %v9730_v38  ;;  %v3990_v1 = vpop.xlane.xlu1 %3989 }
 0x3d3   :  { %v4071_v15 = vmul.f32 0.020408163, %v3990_v1  ;;  %v9783_v25 = vmul.f32 %v9263_v48, %v4119_v20 }
 0x3d5   :  { %4277 = vadd.xlane.f32.xlu1 %v4215_v33  ;;  %v3992_v33 = vpop.xlane.xlu0 %3991  ;;  %10945 = vst [vmem:[#allocation46_spill] sm:$0xff] %v9783_v25  ;;  %v4219_v20 = vmul.f32 %v9783_v25, %v9783_v25 }
 0x3d6   :  { %4015 = vadd.xlane.f32.xlu0 %v9747_v28  ;;  %v4072_v10 = vmul.f32 0.020408163, %v3992_v33 }
 0x3d8   :  { %v4122_v47 = vsub.f32 %v9463_v26, %v4072_v10 }
 0x3d9   :  { %4281 = vadd.xlane.f32.xlu1 %v4217_v55  ;;  %v4254_v55 = vpop.xlane.xlu1 %4253  ;;  %v4256_v54 = vpop.xlane.xlu0 %4255 }
 0x3da   :  { %4279 = vadd.xlane.f32.xlu0 %v4216_v14  ;;  %v4121_v14 = vsub.f32 %v9447_v56, %v4071_v15  ;;  %v4353_v1 = vmul.f32 0.020408163, %v4254_v55  ;;  %v9799_v56 = vmul.f32 %v9263_v48, %v4120_v41 }
 0x3dc   :  { %v9794_v60 = vmul.f32 %v9263_v48, %v4121_v14  ;;  %10947 = vst [vmem:[#allocation63_spill] sm:$0xff] %v9799_v56  ;;  %v4403_v39 = vadd.f32 1e-05, %v4353_v1  ;;  %v9806_v14 = vmul.f32 %v9263_v48, %v4122_v47  ;;  %v4220_v43 = vmul.f32 %v9799_v56, %v9799_v56  ;;  %v4503_v47 = vld [vmem:[%s10704_s3] sm:$0xff] }
 0x3dd   :  { %4017 = vadd.xlane.f32.xlu1 %v9768_v9  ;;  %v4258_v15 = vpop.xlane.xlu1 %4257  ;;  %v4260_v55 = vpop.xlane.xlu0 %4259  ;;  %v4354_v1 = vmul.f32 0.020408163, %v4256_v54 }
 0x3de   :  { %4283 = vadd.xlane.f32.xlu0 %v4218_v57  ;;  %v9791_v57 = vmul.f32 %v9263_v48, %v9546_v4  ;;  %10946 = vst [vmem:[#allocation32_spill] sm:$0xff] %v9794_v60  ;;  %v4355_v33 = vmul.f32 0.020408163, %v4258_v15  ;;  %v4221_v4 = vmul.f32 %v9794_v60, %v9794_v60  ;;  %10948 = vst [vmem:[#allocation49_spill] sm:$0xff] %v9806_v14  ;;  %7113 = vrsqrt.f32 %v4403_v39  ;;  %v4505_v39 = vld [vmem:[%s10704_s3 + $0x10] sm:$0xff] }
 0x3df   :  { %v4356_v41 = vmul.f32 0.020408163, %v4260_v55  ;;  %v4222_v10 = vmul.f32 %v9806_v14, %v9806_v14  ;;  %v4404_v15 = vadd.f32 1e-05, %v4354_v1  ;;  %v4504_v1 = vld [vmem:[%s10704_s3 + $0x8] sm:$0xff] }
 0x3e0   :  { %v4405_v26 = vadd.f32 1e-05, %v4355_v33 }
 0x3e1   :  { %4021 = vadd.xlane.f32.xlu1 %v9775_v37  ;;  %v9818_v33 = vpop.permute.xlu0 %5055 }
 0x3e2   :  { %4019 = vadd.xlane.f32.xlu0 %v9780_v61  ;;  %7115 = vrsqrt.f32 %v4405_v26  ;;  %10949 = vst [vmem:[#allocation62_spill] sm:$0xff] %v9818_v33  ;;  %v4506_v26 = vld [vmem:[%s10704_s3 + $0x18] sm:$0xff] }
 0x3e5   :  { %4285 = vadd.xlane.f32.xlu1 %v4219_v20  ;;  %v4406_v20 = vadd.f32 1e-05, %v4356_v41  ;;  %v9823_v41 = vpop.permute.xlu1 %5060 }
 0x3e6   :  { %4023 = vadd.xlane.f32.xlu0 %v9791_v57  ;;  %10950 = vst [vmem:[#allocation8_spill] sm:$0xff] %v9823_v41  ;;  %v9838_v41 = vpop.f32.mrb[44].mxu1 }
 0x3e7   :  { %7117 = vrsqrt.f32 %v4406_v20  ;;  %v3808_v33 = vpop.f32.mrb[45].mxu1 }
 0x3e8   :  { %v7114_v48 = vpop.eup %7113  ;;  %7119 = vrsqrt.f32 %v4404_v15  ;;  %v9828_v15 = vpop.permute.xlu0 %5065  ;;  %v9855_v33 = vld [vmem:[%s10702_s2] ss:$0 sm:$0xff] }
 0x3e9   :  { %4289 = vadd.xlane.f32.xlu1 %v4221_v4  ;;  %v4553_v4 = vmul.f32 %v7114_v48, %v4503_v47  ;;  %10951 = vst [vmem:[#allocation19_spill] sm:$0xff] %v9828_v15  ;;  %v9830_v47 = vpop.permute.xlu1 %5070 }
 0x3ea   :  { %4287 = vadd.xlane.f32.xlu0 %v4220_v43  ;;  %10952 = vst [vmem:[#allocation7_spill] sm:$0xff] %v9830_v47 }
 0x3ec   :  { %v7116_v43 = vpop.eup %7115 }
 0x3ed   :  { %v4555_v54 = vmul.f32 %v7116_v43, %v4505_v39  ;;  %v9834_v43 = vpop.permute.xlu1 %5080  ;;  %v9836_v39 = vpop.f32.mrb[44].mxu0 }
 0x3ee   :  { %4291 = vadd.xlane.f32.xlu0 %v4222_v10  ;;  %10954 = vst [vmem:[#allocation22_spill] sm:$0xff] %v9834_v43 }
 0x3f1   :  { %v7118_v55 = vpop.eup %7117 }
 0x3f2   :  { %v7120_v10 = vpop.eup %7119  ;;  %v4556_v20 = vmul.f32 %v7118_v55, %v4506_v26 }
 0x3f3   :  { %v4554_v48 = vmul.f32 %v7120_v10, %v4504_v1  ;;  %v9846_v10 = vpop.f32.mrb[46].mxu1 }
 0x3f4   :  { %v3813_v1 = vpop.f32.mrb[47].mxu1 }
 0x3fa   :  { %4605 = vperm.xlu1 %7112, %v4553_v4   ;;  %v9832_v4 = vpop.permute.xlu0 %5075 }
 0x3fb   :  { %10953 = vst [vmem:[#allocation35_spill] sm:$0xff] %v9832_v4 }
 0x3fe   :  { %4615 = vperm.xlu1 %7112, %v4555_v54   ;;  %v3727_v54 = vpop.f32.mrb[45].mxu0  ;;  %v9840_v14 = vpop.permute.xlu0 %5085 }
 0x3ff   :  { %10955 = vst [vmem:[#allocation48_spill] sm:$0xff] %v9840_v14  ;;  %v9842_v55 = vpop.f32.mrb[46].mxu0 }
 0x400   :  { %v3732_v26 = vpop.f32.mrb[47].mxu0 }
 0x401   :  { %v9859_v26 = vmul.f32 %v9855_v33, %v9635_v30 }
 0x402   :  { %4620 = vperm.xlu1 %7112, %v4556_v20   ;;  %v9844_v20 = vpop.permute.xlu1 %5090 }
 0x403   :  { %10956 = vst [vmem:[#allocation34_spill] sm:$0xff] %v9844_v20 }
 0x404   :  { %4610 = vperm.xlu0 %7111, %v4554_v48   ;;  %v9848_v48 = vpop.permute.xlu0 %5095 }
 0x405   :  { %10957 = vst [vmem:[#allocation65_spill] sm:$0xff] %v9848_v48 }
 0x406   :  { %v9850_v4 = vpop.permute.xlu1 %5100 }
 0x407   :  { %10958 = vst [vmem:[#allocation51_spill] sm:$0xff] %v9850_v4  ;;  %v9864_v4 = vmul.f32 %v9855_v33, %v9626_v63 }
 0x408   :  { %v3996_v43 = vpop.xlane.xlu0 %3995 }
 0x409   :  { %v4074_v54 = vmul.f32 0.020408163, %v3996_v43  ;;  %10959 = vst [vmem:[#allocation64_spill] sm:$0xff] %v9864_v4  ;;  %v9869_v43 = vmul.f32 %v9855_v33, %v9637_v40 }
 0x40a   :  { %v3994_v47 = vpop.xlane.xlu1 %3993 }
 0x40b   :  { %v4073_v20 = vmul.f32 0.020408163, %v3994_v47  ;;  %v4124_v1 = vsub.f32 %v9556_v21, %v4074_v54  ;;  %v9878_v21 = vmul.f32 %v9855_v33, %v9628_v11 }
 0x40c   :  { %v4000_v15 = vpop.xlane.xlu0 %3999 }
 0x40d   :  { %v4076_v48 = vmul.f32 0.020408163, %v4000_v15  ;;  %v4123_v56 = vsub.f32 %v9551_v27, %v4073_v20  ;;  %v9873_v30 = vmul.f32 %v9855_v33, %v4124_v1  ;;  %10961 = vst [vmem:[#allocation21_spill] sm:$0xff] %v9878_v21 }
 0x40e   :  { %v3998_v14 = vpop.xlane.xlu1 %3997 }
 0x40f   :  { %v4075_v60 = vmul.f32 0.020408163, %v3998_v14  ;;  %10960 = vst [vmem:[#allocation10_spill] sm:$0xff] %v9873_v30  ;;  %v4126_v47 = vsub.f32 %v9571_v35, %v4076_v48  ;;  %v9883_v40 = vmul.f32 %v9855_v33, %v4123_v56  ;;  %v4224_v35 = vmul.f32 %v9873_v30, %v9873_v30 }
 0x410   :  { %v9901_v48 = vmul.f32 %v9855_v33, %v9652_v16 }
 0x411   :  { %10962 = vst [vmem:[#allocation9_spill] sm:$0xff] %v9883_v40  ;;  %v4125_v27 = vsub.f32 %v9564_v18, %v4075_v60  ;;  %v9887_v14 = vmul.f32 %v9855_v33, %v4126_v47  ;;  %v4223_v20 = vmul.f32 %v9883_v40, %v9883_v40  ;;  %v4264_v60 = vpop.xlane.xlu0 %4263 }
 0x412   :  { %v4262_v63 = vpop.xlane.xlu1 %4261  ;;  %10965 = vst [vmem:[#allocation50_spill] sm:$0xff] %v9901_v48 }
 0x413   :  { %10963 = vst [vmem:[#allocation37_spill] sm:$0xff] %v9887_v14  ;;  %v9893_v11 = vmul.f32 %v9855_v33, %v4125_v27  ;;  %v4357_v15 = vmul.f32 0.020408163, %v4262_v63  ;;  %v4226_v18 = vmul.f32 %v9887_v14, %v9887_v14  ;;  %v9908_v63 = vmul.f32 %v9855_v33, %v9660_v42  ;;  %v4507_v14 = vld [vmem:[%s10704_s3 + $0x20] sm:$0xff] }
 0x415   :  { %10964 = vst [vmem:[#allocation24_spill] sm:$0xff] %v9893_v11  ;;  %v4407_v54 = vadd.f32 1e-05, %v4357_v15  ;;  %v4225_v47 = vmul.f32 %v9893_v11, %v9893_v11  ;;  %10966 = vst [vmem:[#allocation36_spill] sm:$0xff] %v9908_v63 }
 0x416   :  { %v4266_v56 = vpop.xlane.xlu1 %4265 }
 0x417   :  { %v4359_v1 = vmul.f32 0.020408163, %v4266_v56  ;;  %7121 = vrsqrt.f32 %v4407_v54 }
 0x419   :  { %v4409_v27 = vadd.f32 1e-05, %v4359_v1 }
 0x41a   :  { %v9911_v56 = vpop.permute.xlu1 %5110 }
 0x41b   :  { %7123 = vrsqrt.f32 %v4409_v27  ;;  %10967 = vst [vmem:[#allocation66_spill] sm:$0xff] %v9911_v56  ;;  %v4509_v27 = vld [vmem:[%s10704_s3 + $0x30] sm:$0xff]  ;;  %v4508_v56 = vld [vmem:[%s10704_s3 + $0x28] sm:$0xff] }
 0x41e   :  { %v9918_v54 = vpop.permute.xlu1 %5120 }
 0x41f   :  { %10969 = vst [vmem:[#allocation12_spill] sm:$0xff] %v9918_v54 }
 0x423   :  { %4027 = vadd.xlane.f32.xlu0 %v9859_v26 }
 0x426   :  { %4025 = vadd.xlane.f32.xlu1 %v9864_v4 }
 0x427   :  { %4031 = vadd.xlane.f32.xlu0 %v9869_v43 }
 0x42a   :  { %4029 = vadd.xlane.f32.xlu1 %v9878_v21 }
 0x42b   :  { %4295 = vadd.xlane.f32.xlu0 %v4224_v35  ;;  %v4358_v35 = vmul.f32 0.020408163, %v4264_v60 }
 0x42d   :  { %v4408_v16 = vadd.f32 1e-05, %v4358_v35 }
 0x42e   :  { %4293 = vadd.xlane.f32.xlu1 %v4223_v20  ;;  %v4268_v20 = vpop.xlane.xlu0 %4267 }
 0x42f   :  { %4299 = vadd.xlane.f32.xlu0 %v4226_v18  ;;  %v4360_v15 = vmul.f32 0.020408163, %v4268_v20  ;;  %7125 = vrsqrt.f32 %v4408_v16 }
 0x431   :  { %v4410_v18 = vadd.f32 1e-05, %v4360_v15  ;;  %v9925_v15 = vpop.permute.xlu1 %5130 }
 0x432   :  { %4297 = vadd.xlane.f32.xlu1 %v4225_v47  ;;  %v7122_v47 = vpop.eup %7121  ;;  %v9916_v42 = vpop.permute.xlu0 %5105  ;;  %10971 = vst [vmem:[#allocation23_spill] sm:$0xff] %v9925_v15 }
 0x433   :  { %4035 = vadd.xlane.f32.xlu0 %v9901_v48  ;;  %10968 = vst [vmem:[#allocation53_spill] sm:$0xff] %v9916_v42  ;;  %7127 = vrsqrt.f32 %v4410_v18  ;;  %v4557_v60 = vmul.f32 %v7122_v47, %v4507_v14  ;;  %v7124_v1 = vpop.eup %7123  ;;  %v4510_v47 = vld [vmem:[%s10704_s3 + $0x38] sm:$0xff] }
 0x434   :  { %v4559_v20 = vmul.f32 %v7124_v1, %v4509_v27 }
 0x436   :  { %v9923_v35 = vpop.permute.xlu0 %5115 }
 0x437   :  { %4039 = vadd.xlane.f32.xlu0 %v9908_v63  ;;  %10970 = vst [vmem:[#allocation11_spill] sm:$0xff] %v9923_v35 }
 0x439   :  { %v7126_v16 = vpop.eup %7125 }
 0x43a   :  { %v4558_v18 = vmul.f32 %v7126_v16, %v4508_v56  ;;  %v9933_v42 = vpop.permute.xlu0 %5125 }
 0x43b   :  { %10972 = vst [vmem:[#allocation26_spill] sm:$0xff] %v9933_v42 }
 0x43d   :  { %v7128_v54 = vpop.eup %7127 }
 0x443   :  { %4625 = vperm.xlu1 %7112, %v4557_v60   ;;  %v4560_v60 = vmul.f32 %v7128_v54, %v4510_v47 }
 0x447   :  { %4635 = vperm.xlu1 %7112, %v4559_v20   ;;  %v9936_v20 = vpop.f32.mrb[48].mxu1 }
 0x448   :  { %v3894_v40 = vpop.f32.mrb[49].mxu1 }
 0x44a   :  { %v4002_v14 = vpop.xlane.xlu1 %4001 }
 0x44b   :  { %4630 = vperm.xlu1 %7112, %v4558_v18  }
 0x44e   :  { %v4006_v1 = vpop.xlane.xlu1 %4005 }
 0x44f   :  { %v4004_v27 = vpop.xlane.xlu0 %4003  ;;  %4640 = vperm.xlu1 %7112, %v4560_v60   ;;  %v4079_v48 = vmul.f32 0.020408163, %v4006_v1 }
 0x450   :  { %v4078_v15 = vmul.f32 0.020408163, %v4004_v27 }
 0x451   :  { %v4129_v4 = vsub.f32 %v9678_v0, %v4079_v48 }
 0x452   :  { %v4128_v35 = vsub.f32 %v9685_v2, %v4078_v15  ;;  %v4270_v30 = vpop.xlane.xlu1 %4269 }
 0x453   :  { %v4008_v11 = vpop.xlane.xlu0 %4007 }
 0x454   :  { %v9939_v56 = vmul.f32 %v9855_v33, %v4128_v35  ;;  %v4080_v16 = vmul.f32 0.020408163, %v4008_v11 }
 0x456   :  { %10973 = vst [vmem:[#allocation39_spill] sm:$0xff] %v9939_v56  ;;  %v4130_v25 = vsub.f32 %v9702_v59, %v4080_v16  ;;  %v4274_v42 = vpop.xlane.xlu1 %4273  ;;  %v4228_v54 = vmul.f32 %v9939_v56, %v9939_v56 }
 0x457   :  { %v4272_v18 = vpop.xlane.xlu0 %4271  ;;  %v4363_v35 = vmul.f32 0.020408163, %v4274_v42 }
 0x458   :  { %v9945_v47 = vmul.f32 %v9855_v33, %v4130_v25  ;;  %4303 = vadd.xlane.f32.xlu0 %v4228_v54  ;;  %v4362_v48 = vmul.f32 0.020408163, %v4272_v18 }
 0x459   :  { %v4413_v59 = vadd.f32 1e-05, %v4363_v35  ;;  %v4513_v35 = vld [vmem:[%s10704_s3 + $0x50] sm:$0xff] }
 0x45a   :  { %10974 = vst [vmem:[#allocation38_spill] sm:$0xff] %v9945_v47  ;;  %v9947_v2 = vpop.xlane.xlu1 %4009  ;;  %v4230_v15 = vmul.f32 %v9945_v47, %v9945_v47 }
 0x45b   :  { %v4276_v60 = vpop.xlane.xlu0 %4275  ;;  %7129 = vrsqrt.f32 %v4413_v59  ;;  %v9974_v59 = vmul.f32 %v9855_v33, %v9648_v5 }
 0x45c   :  { %4307 = vadd.xlane.f32.xlu0 %v4230_v15  ;;  %v4077_v15 = vmul.f32 0.020408163, %v4002_v14  ;;  %v9983_v14 = vmul.f32 %v9855_v33, %v9654_v22 }
 0x45d   :  { %10975 = vst [vmem:[#allocation52_spill] sm:$0xff] %v9974_v59 }
 0x45e   :  { %v9951_v40 = vpop.xlane.xlu1 %4013  ;;  %v4127_v63 = vsub.f32 %v9667_v3, %v4077_v15  ;;  %10976 = vst [vmem:[#allocation55_spill] sm:$0xff] %v9983_v14  ;;  %v9996_v3 = vmul.f32 %v9855_v33, %v4129_v4 }
 0x45f   :  { %v9953_v11 = vpop.xlane.xlu0 %4011 }
 0x460   :  { %v9989_v5 = vmul.f32 %v9855_v33, %v4127_v63  ;;  %v4229_v4 = vmul.f32 %v9996_v3, %v9996_v3 }
 0x462   :  { %v9955_v27 = vpop.xlane.xlu1 %4277  ;;  %10977 = vst [vmem:[#allocation14_spill] sm:$0xff] %v9989_v5  ;;  %v4227_v22 = vmul.f32 %v9989_v5, %v9989_v5 }
 0x463   :  { %v9957_v16 = vpop.xlane.xlu0 %4015 }
 0x465   :  { %v7130_v42 = vpop.eup %7129 }
 0x466   :  { %v9959_v25 = vpop.xlane.xlu1 %4281  ;;  %v4563_v8 = vmul.f32 %v7130_v42, %v4513_v35 }
 0x467   :  { %v9961_v54 = vpop.xlane.xlu0 %4279 }
 0x469   :  { %v10003_v63 = vpop.f32.mrb[48].mxu0 }
 0x46a   :  { %v9963_v56 = vpop.xlane.xlu1 %4017 }
 0x46b   :  { %v9965_v47 = vpop.xlane.xlu0 %4283 }
 0x46e   :  { %v9970_v58 = vpop.xlane.xlu1 %4021 }
 0x46f   :  { %v9976_v62 = vpop.xlane.xlu0 %4019 }
 0x472   :  { %4655 = vperm.xlu0 %7111, %v4563_v8   ;;  %v9979_v21 = vpop.xlane.xlu1 %4285  ;;  %v4361_v8 = vmul.f32 0.020408163, %v4270_v30 }
 0x473   :  { %v9985_v6 = vpop.xlane.xlu0 %4023  ;;  %4033 = vadd.xlane.f32.xlu1 %v9974_v59 }
 0x474   :  { %v4411_v0 = vadd.f32 1e-05, %v4361_v8 }
 0x476   :  { %v9992_v42 = vpop.xlane.xlu1 %4289  ;;  %7131 = vrsqrt.f32 %v4411_v0 }
 0x477   :  { %4037 = vadd.xlane.f32.xlu1 %v9983_v14  ;;  %v9998_v1 = vpop.xlane.xlu0 %4287  ;;  %v3889_v14 = vpop.f32.mrb[49].mxu0 }
 0x47a   :  { %v4606_v15 = vpop.permute.xlu1 %4605 }
 0x47b   :  { %v4853_v35 = vmul.f32 %v4606_v15, %v9455_v53  ;;  %4301 = vadd.xlane.f32.xlu1 %v4227_v22  ;;  %v10008_v36 = vpop.xlane.xlu0 %4291  ;;  %v4412_v53 = vadd.f32 1e-05, %v4362_v48  ;;  %v4364_v22 = vmul.f32 0.020408163, %v4276_v60 }
 0x47d   :  { %v5203_v59 = vadd.f32 %v9609_v34, %v4853_v35  ;;  %7133 = vrsqrt.f32 %v4412_v53  ;;  %v4414_v35 = vadd.f32 1e-05, %v4364_v22 }
 0x47e   :  { %v4616_v30 = vpop.permute.xlu1 %4615 }
 0x47f   :  { %v5253_v13 = vmax.f32 %v5203_v59, 0.0  ;;  %v4855_v5 = vmul.f32 %v4616_v30, %v9466_v7  ;;  %4305 = vadd.xlane.f32.xlu1 %v4229_v4  ;;  %7135 = vrsqrt.f32 %v4414_v35  ;;  %v4084_v4 = vmul.f32 0.020408163, %v9957_v16  ;;  %v4512_v30 = vld [vmem:[%s10704_s3 + $0x48] sm:$0xff]  ;;  %v4514_v16 = vld [vmem:[%s10704_s3 + $0x58] sm:$0xff] }
 0x481   :  { %5303 = vst [vmem:[%s10705_s5] sm:$0xff] %v5253_v13  ;;  %v5205_v34 = vadd.f32 %v9619_v23, %v4855_v5 }
 0x482   :  { %v4621_v18 = vpop.permute.xlu1 %4620 }
 0x483   :  { %v5255_v8 = vmax.f32 %v5205_v34, 0.0  ;;  %v4856_v14 = vmul.f32 %v4621_v18, %v9478_v49  ;;  %v4611_v15 = vpop.permute.xlu0 %4610  ;;  %v4082_v49 = vmul.f32 0.020408163, %v9953_v11  ;;  %v10044_v11 = vmul.f32 %v9855_v33, %v9846_v10 }
 0x484   :  { %v4854_v59 = vmul.f32 %v4611_v15, %v9471_v51  ;;  %v7132_v51 = vpop.eup %7131  ;;  %v4367_v15 = vmul.f32 0.020408163, %v9959_v25  ;;  %v4081_v25 = vmul.f32 0.020408163, %v9947_v2 }
 0x485   :  { %5305 = vst [vmem:[%s10705_s5 + $0x10] sm:$0xff] %v5255_v8  ;;  %v5206_v7 = vadd.f32 %v9604_v46, %v4856_v14  ;;  %v4511_v46 = vld [vmem:[%s10704_s3 + $0x40] sm:$0xff]  ;;  %v4132_v48 = vsub.f32 %v9730_v38, %v4082_v49  ;;  %v4134_v38 = vsub.f32 %v9747_v28, %v4084_v4  ;;  %v4365_v28 = vmul.f32 0.020408163, %v9955_v27 }
 0x486   :  { %v5204_v60 = vadd.f32 %v9599_v31, %v4854_v59  ;;  %v10034_v31 = vmul.f32 %v9855_v33, %v9842_v55  ;;  %v4561_v23 = vmul.f32 %v7132_v51, %v4511_v46  ;;  %v4417_v59 = vadd.f32 1e-05, %v4367_v15 }
 0x487   :  { %v5256_v13 = vmax.f32 %v5206_v7, 0.0  ;;  %v7134_v5 = vpop.eup %7133  ;;  %v10047_v22 = vmul.f32 %v9855_v33, %v4132_v48  ;;  %v10055_v18 = vmul.f32 %v9855_v33, %v4134_v38  ;;  %v4415_v14 = vadd.f32 1e-05, %v4365_v28  ;;  %v4515_v7 = vld [vmem:[%s10704_s3 + $0x60] sm:$0xff] }
 0x488   :  { %v5254_v0 = vmax.f32 %v5204_v60, 0.0  ;;  %v4562_v53 = vmul.f32 %v7134_v5, %v4512_v30  ;;  %v4131_v46 = vsub.f32 %v9719_v12, %v4081_v25  ;;  %v10078_v5 = vmul.f32 %v9855_v33, %v9836_v39  ;;  %v10978_v38 = vld [vmem:[#allocation43_spill] sm:$0xff] }
 0x489   :  { %5306 = vst [vmem:[%s10705_s5 + $0x18] sm:$0xff] %v5256_v13  ;;  %v7136_v55 = vpop.eup %7135  ;;  %v4232_v10 = vmul.f32 %v10047_v22, %v10047_v22  ;;  %v4234_v8 = vmul.f32 %v10055_v18, %v10055_v18  ;;  %7137 = vrsqrt.f32 %v4415_v14  ;;  %v10089_v30 = vmul.f32 %v9855_v33, %v9838_v41  ;;  %v10982_v25 = vld [vmem:[#allocation59_spill] sm:$0xff] }
 0x48a   :  { %5304 = vst [vmem:[%s10705_s5 + $0x8] sm:$0xff] %v5254_v0  ;;  %v4564_v34 = vmul.f32 %v7136_v55, %v4514_v16  ;;  %7139 = vrsqrt.f32 %v4417_v59  ;;  %v4517_v0 = vld [vmem:[%s10704_s3 + $0x70] sm:$0xff]  ;;  %v10084_v4 = vmul.f32 %v9855_v33, %v4131_v46 }
 0x490   :  { %4645 = vperm.xlu1 %7112, %v4561_v23   ;;  %v4083_v23 = vmul.f32 0.020408163, %v9951_v40  ;;  %v4366_v40 = vmul.f32 0.020408163, %v9961_v54  ;;  %v10980_v54 = vld [vmem:[#allocation29_spill] sm:$0xff] }
 0x491   :  { %4043 = vadd.xlane.f32.xlu0 %v10034_v31 }
 0x492   :  { %v4133_v2 = vsub.f32 %v9738_v17, %v4083_v23  ;;  %v4416_v41 = vadd.f32 1e-05, %v4366_v40  ;;  %v10983_v23 = vld [vmem:[#allocation58_spill] sm:$0xff] }
 0x493   :  { %v7138_v35 = vpop.eup %7137 }
 0x494   :  { %4650 = vperm.xlu1 %7112, %v4562_v53   ;;  %v4565_v60 = vmul.f32 %v7138_v35, %v4515_v7  ;;  %v7140_v13 = vpop.eup %7139  ;;  %v10095_v39 = vmul.f32 %v9855_v33, %v4133_v2  ;;  %v4231_v53 = vmul.f32 %v10084_v4, %v10084_v4  ;;  %7141 = vrsqrt.f32 %v4416_v41  ;;  %v10981_v7 = vld [vmem:[#allocation3_spill] sm:$0xff] }
 0x495   :  { %4047 = vadd.xlane.f32.xlu0 %v10044_v11  ;;  %v4567_v51 = vmul.f32 %v7140_v13, %v4517_v0  ;;  %v4086_v0 = vmul.f32 0.020408163, %v9976_v62  ;;  %v10985_v62 = vld [vmem:[#allocation4_spill] sm:$0xff] }
 0x496   :  { %v4233_v28 = vmul.f32 %v10095_v39, %v10095_v39 }
 0x498   :  { %4660 = vperm.xlu1 %7112, %v4564_v34   ;;  %v4368_v34 = vmul.f32 0.020408163, %v9965_v47 }
 0x499   :  { %4311 = vadd.xlane.f32.xlu0 %v4232_v10  ;;  %v10979_v10 = vld [vmem:[#allocation16_spill] sm:$0xff] }
 0x49a   :  { %v4418_v35 = vadd.f32 1e-05, %v4368_v34 }
 0x49c   :  { %7143 = vrsqrt.f32 %v4418_v35 }
 0x49d   :  { %4315 = vadd.xlane.f32.xlu0 %v4234_v8 }
 0x4b0   :  { %v10101_v17 = vpop.xlane.xlu0 %4027 }
 0x4b3   :  { %4665 = vperm.xlu0 %7111, %v4565_v60   ;;  %v10069_v27 = vpop.xlane.xlu1 %4025 }
 0x4b4   :  { %v10112_v13 = vpop.xlane.xlu0 %4031 }
 0x4b7   :  { %4675 = vperm.xlu0 %7111, %v4567_v51   ;;  %v10072_v49 = vpop.xlane.xlu1 %4029 }
 0x4b8   :  { %v10123_v34 = vpop.xlane.xlu0 %4295 }
 0x4bb   :  { %v10080_v48 = vpop.xlane.xlu1 %4293 }
 0x4bc   :  { %4041 = vadd.xlane.f32.xlu1 %v10078_v5 }
 0x4bf   :  { %v10091_v12 = vpop.xlane.xlu1 %4297 }
 0x4c0   :  { %4045 = vadd.xlane.f32.xlu1 %v10089_v30 }
 0x4c3   :  { %v4626_v55 = vpop.permute.xlu1 %4625 }
 0x4c4   :  { %v4857_v16 = vmul.f32 %v4626_v55, %v10978_v38  ;;  %4309 = vadd.xlane.f32.xlu1 %v4231_v53  ;;  %v4136_v53 = vsub.f32 %v9780_v61, %v4086_v0  ;;  %v4088_v55 = vmul.f32 0.020408163, %v9985_v6  ;;  %v4369_v0 = vmul.f32 0.020408163, %v9979_v21  ;;  %v4519_v21 = vld [vmem:[%s10704_s3 + $0x80] sm:$0xff] }
 0x4c6   :  { %v5207_v8 = vadd.f32 %v10979_v10, %v4857_v16  ;;  %v10984_v16 = vld [vmem:[#allocation45_spill] sm:$0xff]  ;;  %v10134_v61 = vmul.f32 %v9855_v33, %v4136_v53  ;;  %v4138_v6 = vsub.f32 %v9791_v57, %v4088_v55 }
 0x4c7   :  { %v4636_v14 = vpop.permute.xlu1 %4635 }
 0x4c8   :  { %v5257_v15 = vmax.f32 %v5207_v8, 0.0  ;;  %v4859_v59 = vmul.f32 %v4636_v14, %v10980_v54  ;;  %4313 = vadd.xlane.f32.xlu1 %v4233_v28  ;;  %v10131_v8 = vmul.f32 %v9855_v33, %v9936_v20  ;;  %v7142_v28 = vpop.eup %7141  ;;  %v10144_v54 = vpop.xlane.xlu0 %4299  ;;  %v10147_v35 = vmul.f32 %v9855_v33, %v4138_v6 }
 0x4c9   :  { %v4236_v57 = vmul.f32 %v10134_v61, %v10134_v61 }
 0x4ca   :  { %5307 = vst [vmem:[%s10705_s5 + $0x20] sm:$0xff] %v5257_v15  ;;  %v5209_v60 = vadd.f32 %v10981_v7, %v4859_v59  ;;  %v4516_v15 = vld [vmem:[%s10704_s3 + $0x68] sm:$0xff]  ;;  %v7144_v59 = vpop.eup %7143  ;;  %v4518_v7 = vld [vmem:[%s10704_s3 + $0x78] sm:$0xff] }
 0x4cb   :  { %v4631_v47 = vpop.permute.xlu1 %4630  ;;  %v4566_v20 = vmul.f32 %v7142_v28, %v4516_v15  ;;  %v4087_v15 = vmul.f32 0.020408163, %v9970_v58 }
 0x4cc   :  { %v5259_v51 = vmax.f32 %v5209_v60, 0.0  ;;  %v4858_v46 = vmul.f32 %v4631_v47, %v10982_v25  ;;  %v4568_v60 = vmul.f32 %v7144_v59, %v4518_v7  ;;  %v4238_v47 = vmul.f32 %v10147_v35, %v10147_v35 }
 0x4cd   :  { %v4419_v25 = vadd.f32 1e-05, %v4369_v0  ;;  %v4137_v59 = vsub.f32 %v9775_v37, %v4087_v15  ;;  %v4090_v0 = vmul.f32 0.020408163, %v10101_v17  ;;  %v4522_v15 = vld [vmem:[%s10704_s3 + $0x98] sm:$0xff] }
 0x4ce   :  { %5309 = vst [vmem:[%s10705_s5 + $0x30] sm:$0xff] %v5259_v51  ;;  %v5208_v2 = vadd.f32 %v10983_v23, %v4858_v46  ;;  %v10157_v51 = vpop.xlane.xlu0 %4035  ;;  %v4371_v46 = vmul.f32 0.020408163, %v9992_v42  ;;  %v4521_v42 = vld [vmem:[%s10704_s3 + $0x90] sm:$0xff] }
 0x4cf   :  { %v4641_v40 = vpop.permute.xlu1 %4640  ;;  %7145 = vrsqrt.f32 %v4419_v25 }
 0x4d0   :  { %v5258_v38 = vmax.f32 %v5208_v2, 0.0  ;;  %v4860_v41 = vmul.f32 %v4641_v40, %v10984_v16  ;;  %v4421_v2 = vadd.f32 1e-05, %v4371_v46  ;;  %v4140_v46 = vsub.f32 %v9859_v26, %v4090_v0 }
 0x4d2   :  { %5308 = vst [vmem:[%s10705_s5 + $0x28] sm:$0xff] %v5258_v38  ;;  %v5210_v10 = vadd.f32 %v10985_v62, %v4860_v41  ;;  %v10160_v23 = vpop.xlane.xlu0 %4039  ;;  %7147 = vrsqrt.f32 %v4421_v2  ;;  %v4092_v2 = vmul.f32 0.020408163, %v10112_v13 }
 0x4d4   :  { %v5260_v14 = vmax.f32 %v5210_v10, 0.0 }
 0x4d6   :  { %5310 = vst [vmem:[%s10705_s5 + $0x38] sm:$0xff] %v5260_v14  ;;  %4051 = vadd.xlane.f32.xlu0 %v10131_v8  ;;  %v4085_v14 = vmul.f32 0.020408163, %v9963_v56  ;;  %v10192_v56 = vmul.f32 %v9855_v33, %v4137_v59  ;;  %v4373_v59 = vmul.f32 0.020408163, %v10080_v48 }
 0x4d8   :  { %v4237_v37 = vmul.f32 %v10192_v56, %v10192_v56 }
 0x4d9   :  { %4670 = vperm.xlu1 %7112, %v4566_v20   ;;  %v7146_v55 = vpop.eup %7145  ;;  %v10182_v20 = vmul.f32 %v9855_v33, %v10003_v63 }
 0x4da   :  { %4319 = vadd.xlane.f32.xlu0 %v4236_v57  ;;  %v4569_v41 = vmul.f32 %v7146_v55, %v4519_v21  ;;  %v4142_v21 = vsub.f32 %v9869_v43, %v4092_v2 }
 0x4dc   :  { %v7148_v62 = vpop.eup %7147 }
 0x4dd   :  { %4680 = vperm.xlu1 %7112, %v4568_v60   ;;  %v4571_v6 = vmul.f32 %v7148_v62, %v4521_v42  ;;  %v4372_v60 = vmul.f32 0.020408163, %v10008_v36  ;;  %v10210_v36 = vmul.f32 %v9855_v33, %v4140_v46  ;;  %v10216_v62 = vmul.f32 %v9855_v33, %v4142_v21  ;;  %v4523_v46 = vld [vmem:[%s10704_s3 + $0xa0] sm:$0xff]  ;;  %v4525_v21 = vld [vmem:[%s10704_s3 + $0xb0] sm:$0xff] }
 0x4de   :  { %4323 = vadd.xlane.f32.xlu0 %v4238_v47 }
 0x4df   :  { %v4422_v25 = vadd.f32 1e-05, %v4372_v60  ;;  %v4240_v13 = vmul.f32 %v10210_v36, %v10210_v36  ;;  %v4375_v60 = vmul.f32 0.020408163, %v10091_v12 }
 0x4e1   :  { %v4425_v48 = vadd.f32 1e-05, %v4375_v60  ;;  %v4094_v60 = vmul.f32 0.020408163, %v10157_v51 }
 0x4e5   :  { %v10162_v40 = vpop.xlane.xlu0 %4303 }
 0x4e9   :  { %v10164_v53 = vpop.xlane.xlu0 %4307 }
 0x4f1   :  { %v4656_v38 = vpop.permute.xlu0 %4655 }
 0x4f2   :  { %v4863_v16 = vmul.f32 %v4656_v38, %v9692_v29  ;;  %v4135_v29 = vsub.f32 %v9768_v9, %v4085_v14  ;;  %v4370_v9 = vmul.f32 0.020408163, %v9998_v1 }
 0x4f4   :  { %v5213_v10 = vadd.f32 %v9662_v45, %v4863_v16  ;;  %4685 = vperm.xlu0 %7111, %v4569_v41   ;;  %v10185_v45 = vmul.f32 %v9855_v33, %v4135_v29  ;;  %v4420_v63 = vadd.f32 1e-05, %v4370_v9  ;;  %v4242_v29 = vmul.f32 %v10216_v62, %v10216_v62 }
 0x4f6   :  { %v5263_v28 = vmax.f32 %v5213_v10, 0.0  ;;  %v4235_v58 = vmul.f32 %v10185_v45, %v10185_v45  ;;  %7149 = vrsqrt.f32 %v4420_v63  ;;  %v4520_v10 = vld [vmem:[%s10704_s3 + $0x88] sm:$0xff] }
 0x4f7   :  { %7151 = vrsqrt.f32 %v4422_v25 }
 0x4f8   :  { %5313 = vst [vmem:[%s10705_s5 + $0x50] sm:$0xff] %v5263_v28  ;;  %4695 = vperm.xlu0 %7111, %v4571_v6  }
 0x500   :  { %v10188_v57 = vpop.xlane.xlu1 %4033  ;;  %v7150_v41 = vpop.eup %7149 }
 0x501   :  { %4049 = vadd.xlane.f32.xlu1 %v10182_v20  ;;  %v4570_v28 = vmul.f32 %v7150_v41, %v4520_v10  ;;  %v7152_v6 = vpop.eup %7151  ;;  %v4089_v41 = vmul.f32 0.020408163, %v10069_v27 }
 0x504   :  { %v10197_v7 = vpop.xlane.xlu1 %4037 }
 0x505   :  { %4317 = vadd.xlane.f32.xlu1 %v4235_v58  ;;  %v4572_v58 = vmul.f32 %v7152_v6, %v4522_v15  ;;  %v4091_v6 = vmul.f32 0.020408163, %v10072_v49  ;;  %v4374_v49 = vmul.f32 0.020408163, %v10123_v34  ;;  %v4096_v34 = vmul.f32 0.020408163, %v10160_v23 }
 0x506   :  { %v4524_v23 = vld [vmem:[%s10704_s3 + $0xa8] sm:$0xff] }
 0x508   :  { %v10202_v47 = vpop.xlane.xlu1 %4301 }
 0x509   :  { %4321 = vadd.xlane.f32.xlu1 %v4237_v37 }
 0x50c   :  { %v10205_v1 = vpop.xlane.xlu1 %4305 }
 0x510   :  { %v4646_v55 = vpop.permute.xlu1 %4645 }
 0x511   :  { %v4861_v38 = vmul.f32 %v4646_v55, %v9673_v44 }
 0x513   :  { %v5211_v17 = vadd.f32 %v9656_v24, %v4861_v38  ;;  %v10986_v24 = vld [vmem:[#allocation31_spill] sm:$0xff] }
 0x514   :  { %v4651_v16 = vpop.permute.xlu1 %4650 }
 0x515   :  { %v5261_v42 = vmax.f32 %v5211_v17, 0.0  ;;  %v4862_v26 = vmul.f32 %v4651_v16, %v9697_v32 }
 0x517   :  { %5311 = vst [vmem:[%s10705_s5 + $0x40] sm:$0xff] %v5261_v42  ;;  %v5212_v44 = vadd.f32 %v10986_v24, %v4862_v26  ;;  %4327 = vadd.xlane.f32.xlu0 %v4240_v13  ;;  %v10987_v42 = vld [vmem:[#allocation44_spill] sm:$0xff]  ;;  %v10988_v24 = vld [vmem:[#allocation5_spill] sm:$0xff] }
 0x518   :  { %v4661_v43 = vpop.permute.xlu1 %4660 }
 0x519   :  { %v5262_v14 = vmax.f32 %v5212_v44, 0.0  ;;  %v4864_v32 = vmul.f32 %v4661_v43, %v9710_v52  ;;  %v4423_v52 = vadd.f32 1e-05, %v4373_v59  ;;  %v10989_v43 = vld [vmem:[#allocation64_spill] sm:$0xff] }
 0x51a   :  { %4690 = vperm.xlu1 %7112, %v4570_v28   ;;  %v4139_v28 = vsub.f32 %v10989_v43, %v4089_v41 }
 0x51b   :  { %5312 = vst [vmem:[%s10705_s5 + $0x48] sm:$0xff] %v5262_v14  ;;  %v5214_v9 = vadd.f32 %v9658_v19, %v4864_v32  ;;  %4331 = vadd.xlane.f32.xlu0 %v4242_v29  ;;  %7153 = vrsqrt.f32 %v4423_v52  ;;  %v10990_v14 = vld [vmem:[#allocation61_spill] sm:$0xff] }
 0x51c   :  { %7155 = vrsqrt.f32 %v4425_v48  ;;  %v10268_v27 = vmul.f32 %v9855_v33, %v4139_v28  ;;  %v10991_v29 = vld [vmem:[#allocation21_spill] sm:$0xff] }
 0x51d   :  { %v5264_v63 = vmax.f32 %v5214_v9, 0.0  ;;  %v4141_v15 = vsub.f32 %v10991_v29, %v4091_v6  ;;  %v10994_v6 = vld [vmem:[#allocation33_spill] sm:$0xff]  ;;  %v10995_v29 = vld [vmem:[#allocation18_spill] sm:$0xff] }
 0x51e   :  { %v10240_v37 = vpop.xlane.xlu0 %4043  ;;  %4700 = vperm.xlu1 %7112, %v4572_v58   ;;  %v4239_v9 = vmul.f32 %v10268_v27, %v10268_v27  ;;  %v4424_v58 = vadd.f32 1e-05, %v4374_v49 }
 0x51f   :  { %5314 = vst [vmem:[%s10705_s5 + $0x58] sm:$0xff] %v5264_v63  ;;  %v10275_v59 = vmul.f32 %v9855_v33, %v4141_v15  ;;  %v4376_v63 = vmul.f32 0.020408163, %v10144_v54  ;;  %v10993_v54 = vld [vmem:[#allocation36_spill] sm:$0xff] }
 0x520   :  { %7157 = vrsqrt.f32 %v4424_v58  ;;  %v10996_v58 = vld [vmem:[#allocation20_spill] sm:$0xff] }
 0x521   :  { %v4241_v52 = vmul.f32 %v10275_v59, %v10275_v59  ;;  %v4426_v48 = vadd.f32 1e-05, %v4376_v63 }
 0x522   :  { %v10245_v0 = vpop.xlane.xlu0 %4047 }
 0x523   :  { %7159 = vrsqrt.f32 %v4426_v48 }
 0x525   :  { %v7154_v19 = vpop.eup %7153 }
 0x526   :  { %v10247_v25 = vpop.xlane.xlu0 %4311  ;;  %v4573_v2 = vmul.f32 %v7154_v19, %v4523_v46  ;;  %v7156_v55 = vpop.eup %7155  ;;  %v10992_v46 = vld [vmem:[#allocation50_spill] sm:$0xff] }
 0x527   :  { %v4575_v16 = vmul.f32 %v7156_v55, %v4525_v21 }
 0x52a   :  { %v10252_v12 = vpop.xlane.xlu0 %4315  ;;  %v7158_v51 = vpop.eup %7157 }
 0x531   :  { %4705 = vperm.xlu0 %7111, %v4573_v2   ;;  %v4144_v2 = vsub.f32 %v10992_v46, %v4094_v60 }
 0x532   :  { %v4666_v38 = vpop.permute.xlu0 %4665 }
 0x533   :  { %v4865_v17 = vmul.f32 %v4666_v38, %v9733_v50  ;;  %v10291_v21 = vmul.f32 %v9855_v33, %v4144_v2  ;;  %v4146_v38 = vsub.f32 %v10993_v54, %v4096_v34  ;;  %v4527_v34 = vld [vmem:[%s10704_s3 + $0xc0] sm:$0xff] }
 0x535   :  { %v5215_v26 = vadd.f32 %v10987_v42, %v4865_v17  ;;  %4715 = vperm.xlu0 %7111, %v4575_v16   ;;  %v10297_v16 = vmul.f32 %v9855_v33, %v4146_v38  ;;  %v4244_v41 = vmul.f32 %v10291_v21, %v10291_v21 }
 0x536   :  { %v4676_v13 = vpop.permute.xlu0 %4675 }
 0x537   :  { %v5265_v10 = vmax.f32 %v5215_v26, 0.0  ;;  %v4867_v44 = vmul.f32 %v4676_v13, %v10988_v24  ;;  %v4574_v26 = vmul.f32 %v7158_v51, %v4524_v23  ;;  %v7160_v13 = vpop.eup %7159  ;;  %v4526_v24 = vld [vmem:[%s10704_s3 + $0xb8] sm:$0xff]  ;;  %v4529_v51 = vld [vmem:[%s10704_s3 + $0xd0] sm:$0xff] }
 0x538   :  { %v4576_v28 = vmul.f32 %v7160_v13, %v4526_v24 }
 0x539   :  { %5315 = vst [vmem:[%s10705_s5 + $0x60] sm:$0xff] %v5265_v10  ;;  %v5217_v50 = vadd.f32 %v10990_v14, %v4867_v44  ;;  %v4246_v10 = vmul.f32 %v10297_v16, %v10297_v16  ;;  %v4377_v44 = vmul.f32 0.020408163, %v10202_v47  ;;  %v10997_v47 = vld [vmem:[#allocation30_spill] sm:$0xff] }
 0x53b   :  { %v5267_v32 = vmax.f32 %v5217_v50, 0.0  ;;  %v4427_v50 = vadd.f32 1e-05, %v4377_v44  ;;  %v10999_v44 = vld [vmem:[#allocation52_spill] sm:$0xff] }
 0x53d   :  { %5317 = vst [vmem:[%s10705_s5 + $0x70] sm:$0xff] %v5267_v32  ;;  %v4379_v32 = vmul.f32 0.020408163, %v10205_v1  ;;  %7161 = vrsqrt.f32 %v4427_v50 }
 0x542   :  { %4325 = vadd.xlane.f32.xlu1 %v4239_v9 }
 0x546   :  { %4329 = vadd.xlane.f32.xlu1 %v4241_v52  ;;  %v4429_v52 = vadd.f32 1e-05, %v4379_v32 }
 0x547   :  { %v7162_v1 = vpop.eup %7161 }
 0x548   :  { %7163 = vrsqrt.f32 %v4429_v52  ;;  %v4577_v54 = vmul.f32 %v7162_v1, %v4527_v34  ;;  %v4380_v1 = vmul.f32 0.020408163, %v10164_v53 }
 0x549   :  { %v10284_v19 = vpop.xlane.xlu1 %4041 }
 0x54d   :  { %v10288_v55 = vpop.xlane.xlu1 %4045 }
 0x551   :  { %v10294_v17 = vpop.xlane.xlu1 %4309 }
 0x552   :  { %v7164_v38 = vpop.eup %7163 }
 0x553   :  { %v4579_v23 = vmul.f32 %v7164_v38, %v4529_v51  ;;  %v4100_v51 = vmul.f32 0.020408163, %v10245_v0 }
 0x554   :  { %4335 = vadd.xlane.f32.xlu0 %v4244_v41 }
 0x555   :  { %v10304_v42 = vpop.xlane.xlu1 %4313 }
 0x557   :  { %4710 = vperm.xlu1 %7112, %v4574_v26   ;;  %v4093_v26 = vmul.f32 0.020408163, %v10188_v57  ;;  %v11003_v57 = vld [vmem:[#allocation17_spill] sm:$0xff] }
 0x558   :  { %4339 = vadd.xlane.f32.xlu0 %v4246_v10  ;;  %v10998_v10 = vld [vmem:[#allocation46_spill] sm:$0xff] }
 0x559   :  { %v4671_v43 = vpop.permute.xlu1 %4670 }
 0x55a   :  { %v4866_v14 = vmul.f32 %v4671_v43, %v10994_v6  ;;  %v4143_v43 = vsub.f32 %v10999_v44, %v4093_v26  ;;  %v11000_v6 = vld [vmem:[#allocation60_spill] sm:$0xff]  ;;  %v4150_v26 = vsub.f32 %v10044_v11, %v4100_v51  ;;  %v4533_v51 = vld [vmem:[%s10704_s3 + $0xf0] sm:$0xff] }
 0x55b   :  { %4720 = vperm.xlu1 %7112, %v4576_v28   ;;  %v4095_v28 = vmul.f32 0.020408163, %v10197_v7  ;;  %v4378_v7 = vmul.f32 0.020408163, %v10162_v40  ;;  %v4430_v40 = vadd.f32 1e-05, %v4380_v1 }
 0x55c   :  { %v5216_v15 = vadd.f32 %v10995_v29, %v4866_v14  ;;  %v11001_v29 = vld [vmem:[#allocation32_spill] sm:$0xff] }
 0x55d   :  { %v4681_v49 = vpop.permute.xlu1 %4680 }
 0x55e   :  { %v5266_v9 = vmax.f32 %v5216_v15, 0.0  ;;  %v4868_v63 = vmul.f32 %v4681_v49, %v10996_v58  ;;  %v10342_v49 = vmul.f32 %v9855_v33, %v4143_v43  ;;  %v4381_v43 = vmul.f32 0.020408163, %v10294_v17 }
 0x560   :  { %5316 = vst [vmem:[%s10705_s5 + $0x68] sm:$0xff] %v5266_v9  ;;  %v5218_v60 = vadd.f32 %v10997_v47, %v4868_v63  ;;  %v11002_v9 = vld [vmem:[#allocation55_spill] sm:$0xff] }
 0x561   :  { %v4145_v58 = vsub.f32 %v11002_v9, %v4095_v28 }
 0x562   :  { %v5268_v48 = vmax.f32 %v5218_v60, 0.0  ;;  %v4243_v60 = vmul.f32 %v10342_v49, %v10342_v49 }
 0x563   :  { %v10320_v46 = vpop.xlane.xlu0 %4051  ;;  %v10351_v47 = vmul.f32 %v9855_v33, %v4145_v58  ;;  %v11005_v58 = vld [vmem:[#allocation47_spill] sm:$0xff] }
 0x564   :  { %5318 = vst [vmem:[%s10705_s5 + $0x78] sm:$0xff] %v5268_v48  ;;  %v4428_v48 = vadd.f32 1e-05, %v4378_v7  ;;  %v11006_v7 = vld [vmem:[#allocation49_spill] sm:$0xff] }
 0x565   :  { %v4245_v34 = vmul.f32 %v10351_v47, %v10351_v47 }
 0x566   :  { %7165 = vrsqrt.f32 %v4428_v48 }
 0x567   :  { %v10325_v2 = vpop.xlane.xlu0 %4319  ;;  %7167 = vrsqrt.f32 %v4430_v40 }
 0x56b   :  { %v10333_v41 = vpop.xlane.xlu0 %4323 }
 0x56e   :  { %4725 = vperm.xlu0 %7111, %v4577_v54   ;;  %v4098_v54 = vmul.f32 0.020408163, %v10240_v37 }
 0x570   :  { %v4148_v38 = vsub.f32 %v10034_v31, %v4098_v54  ;;  %v7166_v53 = vpop.eup %7165  ;;  %v4528_v31 = vld [vmem:[%s10704_s3 + $0xc8] sm:$0xff]  ;;  %v4531_v54 = vld [vmem:[%s10704_s3 + $0xe0] sm:$0xff] }
 0x571   :  { %v7168_v44 = vpop.eup %7167 }
 0x572   :  { %4735 = vperm.xlu0 %7111, %v4579_v23   ;;  %v10365_v23 = vmul.f32 %v9855_v33, %v4148_v38 }
 0x573   :  { %v4686_v13 = vpop.permute.xlu0 %4685 }
 0x574   :  { %v4869_v24 = vmul.f32 %v4686_v13, %v10998_v10  ;;  %v10371_v10 = vmul.f32 %v9855_v33, %v4150_v26  ;;  %v4248_v37 = vmul.f32 %v10365_v23, %v10365_v23  ;;  %v4530_v33 = vld [vmem:[%s10704_s3 + $0xd8] sm:$0xff] }
 0x576   :  { %v5219_v14 = vadd.f32 %v11000_v6, %v4869_v24  ;;  %v4578_v24 = vmul.f32 %v7166_v53, %v4528_v31  ;;  %v4250_v11 = vmul.f32 %v10371_v10, %v10371_v10  ;;  %v4580_v6 = vmul.f32 %v7168_v44, %v4530_v33 }
 0x577   :  { %v4696_v50 = vpop.permute.xlu0 %4695  ;;  %v4099_v33 = vmul.f32 0.020408163, %v10288_v55 }
 0x578   :  { %v5269_v32 = vmax.f32 %v5219_v14, 0.0  ;;  %v4871_v15 = vmul.f32 %v4696_v50, %v11001_v29  ;;  %v4431_v14 = vadd.f32 1e-05, %v4381_v43  ;;  %v4383_v50 = vmul.f32 0.020408163, %v10304_v42  ;;  %v11004_v29 = vld [vmem:[#allocation63_spill] sm:$0xff] }
 0x579   :  { %v11009_v43 = vld [vmem:[#allocation62_spill] sm:$0xff] }
 0x57a   :  { %5319 = vst [vmem:[%s10705_s5 + $0x80] sm:$0xff] %v5269_v32  ;;  %v5221_v63 = vadd.f32 %v11003_v57, %v4871_v15  ;;  %7169 = vrsqrt.f32 %v4431_v14  ;;  %v4433_v9 = vadd.f32 1e-05, %v4383_v50 }
 0x57c   :  { %v5271_v52 = vmax.f32 %v5221_v63, 0.0  ;;  %7171 = vrsqrt.f32 %v4433_v9  ;;  %v4149_v9 = vsub.f32 %v10089_v30, %v4099_v33 }
 0x57e   :  { %5321 = vst [vmem:[%s10705_s5 + $0x90] sm:$0xff] %v5271_v52 }
 0x57f   :  { %4333 = vadd.xlane.f32.xlu1 %v4243_v60  ;;  %v11007_v60 = vld [vmem:[#allocation6_spill] sm:$0xff] }
 0x583   :  { %4337 = vadd.xlane.f32.xlu1 %v4245_v34 }
 0x584   :  { %v7170_v1 = vpop.eup %7169 }
 0x585   :  { %v4581_v40 = vmul.f32 %v7170_v1, %v4531_v54 }
 0x586   :  { %v7172_v38 = vpop.eup %7171 }
 0x587   :  { %v4583_v53 = vmul.f32 %v7172_v38, %v4533_v51 }
 0x58e   :  { %v10368_v13 = vpop.xlane.xlu1 %4049 }
 0x591   :  { %4343 = vadd.xlane.f32.xlu0 %v4248_v37  ;;  %v4097_v37 = vmul.f32 0.020408163, %v10284_v19 }
 0x592   :  { %v10378_v0 = vpop.xlane.xlu1 %4317 }
 0x594   :  { %4730 = vperm.xlu1 %7112, %v4578_v24   ;;  %v11008_v24 = vld [vmem:[#allocation9_spill] sm:$0xff] }
 0x595   :  { %4347 = vadd.xlane.f32.xlu0 %v4250_v11  ;;  %v4147_v11 = vsub.f32 %v10078_v5, %v4097_v37  ;;  %v11011_v5 = vld [vmem:[#allocation19_spill] sm:$0xff] }
 0x596   :  { %v10386_v28 = vpop.xlane.xlu1 %4321 }
 0x598   :  { %4740 = vperm.xlu1 %7112, %v4580_v6  }
 0x59a   :  { %v4691_v32 = vpop.permute.xlu1 %4690 }
 0x59b   :  { %v4870_v15 = vmul.f32 %v4691_v32, %v11004_v29  ;;  %v11010_v32 = vld [vmem:[#allocation24_spill] sm:$0xff] }
 0x59d   :  { %v5220_v57 = vadd.f32 %v11005_v58, %v4870_v15  ;;  %v10418_v15 = vld [vmem:[%s10702_s2] ss:$0 sm:$0xff] }
 0x59e   :  { %v4701_v63 = vpop.permute.xlu1 %4700  ;;  %v10421_v19 = vmul.f32 %v10418_v15, %v4147_v11 }
 0x59f   :  { %v5270_v52 = vmax.f32 %v5220_v57, 0.0  ;;  %v4872_v17 = vmul.f32 %v4701_v63, %v11006_v7  ;;  %v4382_v57 = vmul.f32 0.020408163, %v10247_v25  ;;  %v10430_v63 = vmul.f32 %v10418_v15, %v4149_v9  ;;  %v4939_v9 = vld [vmem:[%s10703_s4 + $0x120] sm:$0xff] }
 0x5a0   :  { %v4384_v7 = vmul.f32 0.020408163, %v10252_v12  ;;  %v4532_v12 = vld [vmem:[%s10704_s3 + $0xe8] sm:$0xff] }
 0x5a1   :  { %5320 = vst [vmem:[%s10705_s5 + $0x88] sm:$0xff] %v5270_v52  ;;  %v5222_v48 = vadd.f32 %v11007_v60, %v4872_v17  ;;  %v4247_v52 = vmul.f32 %v10421_v19, %v10421_v19  ;;  %v4432_v30 = vadd.f32 1e-05, %v4382_v57  ;;  %v4249_v17 = vmul.f32 %v10430_v63, %v10430_v63 }
 0x5a2   :  { %v4102_v60 = vmul.f32 0.020408163, %v10320_v46  ;;  %v4434_v25 = vadd.f32 1e-05, %v4384_v7  ;;  %v4943_v7 = vld [vmem:[%s10703_s4 + $0x140] sm:$0xff] }
 0x5a3   :  { %v5272_v42 = vmax.f32 %v5222_v48, 0.0  ;;  %7173 = vrsqrt.f32 %v4432_v30 }
 0x5a4   :  { %v10399_v34 = vpop.xlane.xlu0 %4327  ;;  %v4152_v48 = vsub.f32 %v10131_v8, %v4102_v60  ;;  %7175 = vrsqrt.f32 %v4434_v25  ;;  %v4534_v8 = vld [vmem:[%s10704_s3 + $0xf8] sm:$0xff] }
 0x5a5   :  { %5322 = vst [vmem:[%s10705_s5 + $0x98] sm:$0xff] %v5272_v42 }
 0x5a6   :  { %v10443_v42 = vmul.f32 %v10418_v15, %v4152_v48  ;;  %v4945_v48 = vld [vmem:[%s10703_s4 + $0x150] sm:$0xff] }
 0x5a8   :  { %v10407_v26 = vpop.xlane.xlu0 %4331  ;;  %v4252_v54 = vmul.f32 %v10443_v42, %v10443_v42 }
 0x5ab   :  { %4745 = vperm.xlu0 %7111, %v4581_v40  }
 0x5ad   :  { %v7174_v1 = vpop.eup %7173 }
 0x5ae   :  { %v4582_v46 = vmul.f32 %v7174_v1, %v4532_v12  ;;  %v7176_v38 = vpop.eup %7175  ;;  %v11016_v1 = vld [vmem:[#allocation14_spill] sm:$0xff]  ;;  %v11017_v12 = vld [vmem:[#allocation35_spill] sm:$0xff] }
 0x5af   :  { %4755 = vperm.xlu0 %7111, %v4583_v53   ;;  %v4584_v53 = vmul.f32 %v7176_v38, %v4534_v8 }
 0x5b0   :  { %v4706_v31 = vpop.permute.xlu0 %4705 }
 0x5b1   :  { %v4873_v44 = vmul.f32 %v4706_v31, %v11008_v24  ;;  %v11012_v31 = vld [vmem:[#allocation10_spill] sm:$0xff] }
 0x5b3   :  { %v5223_v6 = vadd.f32 %v11009_v43, %v4873_v44  ;;  %v11013_v44 = vld [vmem:[#allocation8_spill] sm:$0xff] }
 0x5b4   :  { %v4716_v14 = vpop.permute.xlu0 %4715 }
 0x5b5   :  { %v5273_v50 = vmax.f32 %v5223_v6, 0.0  ;;  %v4875_v29 = vmul.f32 %v4716_v14, %v11010_v32  ;;  %v11014_v6 = vld [vmem:[#allocation37_spill] sm:$0xff] }
 0x5b7   :  { %5323 = vst [vmem:[%s10705_s5 + $0xa0] sm:$0xff] %v5273_v50  ;;  %v5225_v55 = vadd.f32 %v11011_v5, %v4875_v29  ;;  %v11015_v50 = vld [vmem:[#allocation7_spill] sm:$0xff] }
 0x5b9   :  { %v5275_v58 = vmax.f32 %v5225_v55, 0.0  ;;  %v4385_v55 = vmul.f32 0.020408163, %v10378_v0 }
 0x5bb   :  { %5325 = vst [vmem:[%s10705_s5 + $0xb0] sm:$0xff] %v5275_v58  ;;  %v4941_v58 = vld [vmem:[%s10703_s4 + $0x130] sm:$0xff]  ;;  %v4435_v57 = vadd.f32 1e-05, %v4385_v55 }
 0x5bc   :  { %4341 = vadd.xlane.f32.xlu1 %v4247_v52  ;;  %v4387_v52 = vmul.f32 0.020408163, %v10386_v28 }
 0x5bd   :  { %7177 = vrsqrt.f32 %v4435_v57 }
 0x5be   :  { %v4437_v60 = vadd.f32 1e-05, %v4387_v52  ;;  %v4940_v52 = vld [vmem:[%s10703_s4 + $0x128] sm:$0xff] }
 0x5c0   :  { %4345 = vadd.xlane.f32.xlu1 %v4249_v17  ;;  %v4101_v17 = vmul.f32 0.020408163, %v10368_v13  ;;  %7179 = vrsqrt.f32 %v4437_v60 }
 0x5c2   :  { %v4151_v28 = vsub.f32 %v10182_v20, %v4101_v17  ;;  %v11018_v20 = vld [vmem:[#allocation48_spill] sm:$0xff]  ;;  %v4942_v17 = vld [vmem:[%s10703_s4 + $0x138] sm:$0xff] }
 0x5ce   :  { %4351 = vadd.xlane.f32.xlu0 %v4252_v54 }
 0x5cf   :  { %v4326_v40 = vpop.xlane.xlu1 %4325 }
 0x5d0   :  { %v4389_v0 = vmul.f32 0.020408163, %v4326_v40  ;;  %v4947_v40 = vld [vmem:[%s10703_s4 + $0x160] sm:$0xff] }
 0x5d1   :  { %4750 = vperm.xlu1 %7112, %v4582_v46  }
 0x5d2   :  { %v4439_v38 = vadd.f32 1e-05, %v4389_v0 }
 0x5d3   :  { %v4330_v51 = vpop.xlane.xlu1 %4329 }
 0x5d4   :  { %v4391_v8 = vmul.f32 0.020408163, %v4330_v51  ;;  %7181 = vrsqrt.f32 %v4439_v38 }
 0x5d5   :  { %4760 = vperm.xlu1 %7112, %v4584_v53  }
 0x5d6   :  { %v4441_v51 = vadd.f32 1e-05, %v4391_v8 }
 0x5d7   :  { %v4711_v37 = vpop.permute.xlu1 %4710 }
 0x5d8   :  { %v4874_v24 = vmul.f32 %v4711_v37, %v11012_v31  ;;  %v10490_v31 = vmul.f32 %v10418_v15, %v4151_v28  ;;  %v4535_v15 = vld [vmem:[%s10704_s3 + $0x100] sm:$0xff]  ;;  %7183 = vrsqrt.f32 %v4441_v51 }
 0x5da   :  { %v5224_v11 = vadd.f32 %v11013_v44, %v4874_v24  ;;  %v4949_v44 = vld [vmem:[%s10703_s4 + $0x170] sm:$0xff] }
 0x5db   :  { %v4721_v33 = vpop.permute.xlu1 %4720 }
 0x5dc   :  { %v5274_v43 = vmax.f32 %v5224_v11, 0.0  ;;  %v4876_v14 = vmul.f32 %v4721_v33, %v11014_v6  ;;  %v7178_v33 = vpop.eup %7177 }
 0x5dd   :  { %v7180_v6 = vpop.eup %7179 }
 0x5de   :  { %5324 = vst [vmem:[%s10705_s5 + $0xa8] sm:$0xff] %v5274_v43  ;;  %v5226_v32 = vadd.f32 %v11015_v50, %v4876_v14  ;;  %v4585_v43 = vmul.f32 %v7178_v33, %v4535_v15  ;;  %v4537_v14 = vld [vmem:[%s10704_s3 + $0x110] sm:$0xff] }
 0x5df   :  { %v4587_v50 = vmul.f32 %v7180_v6, %v4537_v14  ;;  %v11022_v6 = vld [vmem:[#allocation34_spill] sm:$0xff] }
 0x5e0   :  { %v5276_v29 = vmax.f32 %v5226_v32, 0.0  ;;  %v7182_v32 = vpop.eup %7181 }
 0x5e1   :  { %v10466_v5 = vpop.xlane.xlu0 %4335 }
 0x5e2   :  { %5326 = vst [vmem:[%s10705_s5 + $0xb8] sm:$0xff] %v5276_v29  ;;  %v4539_v29 = vld [vmem:[%s10704_s3 + $0x120] sm:$0xff]  ;;  %v7184_v55 = vpop.eup %7183 }
 0x5e4   :  { %5135 = vperm.xlu0 %7111, %v4939_v9   ;;  %v4589_v9 = vmul.f32 %v7182_v32, %v4539_v29 }
 0x5e5   :  { %v10473_v30 = vpop.xlane.xlu0 %4339 }
 0x5e8   :  { %5145 = vperm.xlu0 %7111, %v4941_v58   ;;  %v4541_v58 = vld [vmem:[%s10704_s3 + $0x130] sm:$0xff] }
 0x5e9   :  { %v4591_v57 = vmul.f32 %v7184_v55, %v4541_v58  ;;  %v4536_v55 = vld [vmem:[%s10704_s3 + $0x108] sm:$0xff] }
 0x5ec   :  { %5155 = vperm.xlu0 %7111, %v4943_v7   ;;  %v4386_v7 = vmul.f32 0.020408163, %v10325_v2  ;;  %v4390_v2 = vmul.f32 0.020408163, %v10399_v34  ;;  %v4948_v34 = vld [vmem:[%s10703_s4 + $0x168] sm:$0xff] }
 0x5ed   :  { %v4726_v25 = vpop.permute.xlu0 %4725 }
 0x5ee   :  { %v4877_v54 = vmul.f32 %v4726_v25, %v11016_v1  ;;  %v4388_v25 = vmul.f32 0.020408163, %v10333_v41  ;;  %v4946_v41 = vld [vmem:[%s10703_s4 + $0x158] sm:$0xff] }
 0x5f0   :  { %v5227_v46 = vadd.f32 %v11017_v12, %v4877_v54  ;;  %5165 = vperm.xlu0 %7111, %v4945_v48   ;;  %v4436_v48 = vadd.f32 1e-05, %v4386_v7  ;;  %v4944_v54 = vld [vmem:[%s10703_s4 + $0x148] sm:$0xff]  ;;  %v4396_v7 = vmul.f32 0.020408163, %v10473_v30 }
 0x5f1   :  { %v4736_v13 = vpop.permute.xlu0 %4735  ;;  %v4540_v30 = vld [vmem:[%s10704_s3 + $0x128] sm:$0xff] }
 0x5f2   :  { %v5277_v53 = vmax.f32 %v5227_v46, 0.0  ;;  %v4879_v37 = vmul.f32 %v4736_v13, %v9996_v3  ;;  %v4251_v3 = vmul.f32 %v10490_v31, %v10490_v31  ;;  %v4438_v46 = vadd.f32 1e-05, %v4388_v25  ;;  %v11019_v13 = vld [vmem:[#allocation39_spill] sm:$0xff]  ;;  %v4538_v25 = vld [vmem:[%s10704_s3 + $0x118] sm:$0xff] }
 0x5f4   :  { %5327 = vst [vmem:[%s10705_s5 + $0xc0] sm:$0xff] %v5277_v53  ;;  %v5229_v24 = vadd.f32 %v11018_v20, %v4879_v37  ;;  %5175 = vperm.xlu0 %7111, %v4947_v40   ;;  %v4440_v53 = vadd.f32 1e-05, %v4390_v2  ;;  %v4392_v37 = vmul.f32 0.020408163, %v10407_v26  ;;  %v11020_v20 = vld [vmem:[#allocation22_spill] sm:$0xff] }
 0x5f5   :  { %v4394_v26 = vmul.f32 0.020408163, %v10466_v5  ;;  %v4545_v5 = vld [vmem:[%s10704_s3 + $0x150] sm:$0xff] }
 0x5f6   :  { %v5279_v11 = vmax.f32 %v5229_v24, 0.0 }
 0x5f8   :  { %5329 = vst [vmem:[%s10705_s5 + $0xd0] sm:$0xff] %v5279_v11  ;;  %5185 = vperm.xlu0 %7111, %v4949_v44   ;;  %v11021_v11 = vld [vmem:[#allocation38_spill] sm:$0xff] }
 0x5f9   :  { %4349 = vadd.xlane.f32.xlu1 %v4251_v3  ;;  %v4543_v3 = vld [vmem:[%s10704_s3 + $0x140] sm:$0xff] }
 0x5fc   :  { %4765 = vperm.xlu0 %7111, %v4585_v43   ;;  %v4442_v43 = vadd.f32 1e-05, %v4392_v37 }
 0x600   :  { %4775 = vperm.xlu0 %7111, %v4587_v50   ;;  %v4950_v50 = vld [vmem:[%s10703_s4 + $0x178] sm:$0xff] }
 0x604   :  { %4785 = vperm.xlu0 %7111, %v4589_v9  }
 0x608   :  { %4795 = vperm.xlu0 %7111, %v4591_v57  }
 0x60a   :  { %5140 = vperm.xlu1 %7112, %v4940_v52   ;;  %v4444_v52 = vadd.f32 1e-05, %v4394_v26  ;;  %v4546_v26 = vld [vmem:[%s10704_s3 + $0x158] sm:$0xff] }
 0x60c   :  { %v4334_v60 = vpop.xlane.xlu1 %4333 }
 0x60d   :  { %v4393_v0 = vmul.f32 0.020408163, %v4334_v60 }
 0x60e   :  { %5150 = vperm.xlu1 %7112, %v4942_v17  }
 0x60f   :  { %v4443_v1 = vadd.f32 1e-05, %v4393_v0 }
 0x610   :  { %v4338_v28 = vpop.xlane.xlu1 %4337 }
 0x611   :  { %7185 = vrsqrt.f32 %v4443_v1  ;;  %v4395_v12 = vmul.f32 0.020408163, %v4338_v28 }
 0x612   :  { %5160 = vperm.xlu1 %7112, %v4944_v54   ;;  %7187 = vrsqrt.f32 %v4436_v48  ;;  %v4446_v48 = vadd.f32 1e-05, %v4396_v7 }
 0x613   :  { %v4445_v38 = vadd.f32 1e-05, %v4395_v12 }
 0x614   :  { %v4731_v8 = vpop.permute.xlu1 %4730 }
 0x615   :  { %7189 = vrsqrt.f32 %v4445_v38  ;;  %v4878_v40 = vmul.f32 %v4731_v8, %v11019_v13  ;;  %v4542_v8 = vld [vmem:[%s10704_s3 + $0x138] sm:$0xff] }
 0x616   :  { %5170 = vperm.xlu1 %7112, %v4946_v41   ;;  %7191 = vrsqrt.f32 %v4438_v46 }
 0x617   :  { %v5228_v24 = vadd.f32 %v11020_v20, %v4878_v40  ;;  %7193 = vrsqrt.f32 %v4440_v53 }
 0x618   :  { %v4741_v51 = vpop.permute.xlu1 %4740  ;;  %7195 = vrsqrt.f32 %v4442_v43 }
 0x619   :  { %v5278_v44 = vmax.f32 %v5228_v24, 0.0  ;;  %v4880_v33 = vmul.f32 %v4741_v51, %v11021_v11  ;;  %7197 = vrsqrt.f32 %v4444_v52  ;;  %v11023_v24 = vld [vmem:[#allocation65_spill] sm:$0xff]  ;;  %v4544_v51 = vld [vmem:[%s10704_s3 + $0x148] sm:$0xff] }
 0x61a   :  { %5180 = vperm.xlu1 %7112, %v4948_v34   ;;  %7199 = vrsqrt.f32 %v4446_v48 }
 0x61b   :  { %v7186_v15 = vpop.eup %7185  ;;  %5328 = vst [vmem:[%s10705_s5 + $0xc8] sm:$0xff] %v5278_v44  ;;  %v5230_v14 = vadd.f32 %v11022_v6, %v4880_v33 }
 0x61c   :  { %v4593_v32 = vmul.f32 %v7186_v15, %v4543_v3  ;;  %v7188_v29 = vpop.eup %7187 }
 0x61d   :  { %v5280_v9 = vmax.f32 %v5230_v14, 0.0  ;;  %v4586_v17 = vmul.f32 %v7188_v29, %v4536_v55 }
 0x61e   :  { %v4344_v58 = vpop.xlane.xlu0 %4343  ;;  %5190 = vperm.xlu1 %7112, %v4950_v50   ;;  %4805 = vperm.xlu0 %7111, %v4593_v32  }
 0x61f   :  { %v7190_v57 = vpop.eup %7189  ;;  %5330 = vst [vmem:[%s10705_s5 + $0xd8] sm:$0xff] %v5280_v9  ;;  %v4398_v1 = vmul.f32 0.020408163, %v4344_v58  ;;  %v4550_v9 = vld [vmem:[%s10704_s3 + $0x178] sm:$0xff] }
 0x620   :  { %v4595_v60 = vmul.f32 %v7190_v57, %v4545_v5  ;;  %v7192_v0 = vpop.eup %7191 }
 0x621   :  { %v4588_v28 = vmul.f32 %v7192_v0, %v4538_v25  ;;  %v7194_v12 = vpop.eup %7193  ;;  %v4448_v46 = vadd.f32 1e-05, %v4398_v1  ;;  %v11025_v25 = vld [vmem:[#allocation51_spill] sm:$0xff] }
 0x622   :  { %4770 = vperm.xlu1 %7112, %v4586_v17   ;;  %4815 = vperm.xlu0 %7111, %v4595_v60   ;;  %v4348_v54 = vpop.xlane.xlu0 %4347  ;;  %v4590_v38 = vmul.f32 %v7194_v12, %v4540_v30  ;;  %v7196_v41 = vpop.eup %7195  ;;  %v4547_v12 = vld [vmem:[%s10704_s3 + $0x160] sm:$0xff] }
 0x623   :  { %v4400_v2 = vmul.f32 0.020408163, %v4348_v54  ;;  %7201 = vrsqrt.f32 %v4448_v46  ;;  %v4592_v37 = vmul.f32 %v7196_v41, %v4542_v8  ;;  %v7198_v20 = vpop.eup %7197  ;;  %v11026_v46 = vld [vmem:[#allocation66_spill] sm:$0xff] }
 0x624   :  { %v4594_v3 = vmul.f32 %v7198_v20, %v4544_v51  ;;  %v7200_v15 = vpop.eup %7199 }
 0x625   :  { %v4450_v40 = vadd.f32 1e-05, %v4400_v2  ;;  %v4596_v14 = vmul.f32 %v7200_v15, %v4546_v26  ;;  %v11027_v26 = vld [vmem:[#allocation11_spill] sm:$0xff] }
 0x626   :  { %4780 = vperm.xlu1 %7112, %v4588_v28  }
 0x627   :  { %7203 = vrsqrt.f32 %v4450_v40 }
 0x62a   :  { %v4746_v13 = vpop.permute.xlu0 %4745  ;;  %4790 = vperm.xlu1 %7112, %v4590_v38  }
 0x62b   :  { %v4881_v53 = vmul.f32 %v4746_v13, %v10084_v4  ;;  %v11024_v4 = vld [vmem:[#allocation53_spill] sm:$0xff] }
 0x62d   :  { %v5231_v34 = vadd.f32 %v11023_v24, %v4881_v53  ;;  %v7202_v50 = vpop.eup %7201  ;;  %v4552_v24 = vld [vmem:[%s10704_s3 + $0x188] sm:$0xff] }
 0x62e   :  { %v4756_v44 = vpop.permute.xlu0 %4755  ;;  %4800 = vperm.xlu1 %7112, %v4592_v37  }
 0x62f   :  { %v5281_v11 = vmax.f32 %v5231_v34, 0.0  ;;  %v4883_v33 = vmul.f32 %v4756_v44, %v10095_v39  ;;  %v4548_v39 = vld [vmem:[%s10704_s3 + $0x168] sm:$0xff] }
 0x630   :  { %v4598_v32 = vmul.f32 %v7202_v50, %v4548_v39 }
 0x631   :  { %5331 = vst [vmem:[%s10705_s5 + $0xe0] sm:$0xff] %v5281_v11  ;;  %v5233_v43 = vadd.f32 %v11024_v4, %v4883_v33  ;;  %v7204_v29 = vpop.eup %7203  ;;  %v4952_v11 = vld [vmem:[%s10703_s4 + $0x188] sm:$0xff] }
 0x632   :  { %4810 = vperm.xlu1 %7112, %v4594_v3   ;;  %v4600_v55 = vmul.f32 %v7204_v29, %v4550_v9 }
 0x633   :  { %v5283_v6 = vmax.f32 %v5233_v43, 0.0 }
 0x635   :  { %5333 = vst [vmem:[%s10705_s5 + $0xf0] sm:$0xff] %v5283_v6 }
 0x636   :  { %4820 = vperm.xlu1 %7112, %v4596_v14  }
 0x63a   :  { %4830 = vperm.xlu1 %7112, %v4598_v32   ;;  %v11028_v32 = vld [vmem:[#allocation26_spill] sm:$0xff] }
 0x63e   :  { %4840 = vperm.xlu1 %7112, %v4600_v55  }
 0x649   :  { %v4342_v5 = vpop.xlane.xlu1 %4341 }
 0x64a   :  { %v4397_v58 = vmul.f32 0.020408163, %v4342_v5 }
 0x64c   :  { %v4447_v57 = vadd.f32 1e-05, %v4397_v58 }
 0x64d   :  { %v4346_v52 = vpop.xlane.xlu1 %4345 }
 0x64e   :  { %7205 = vrsqrt.f32 %v4447_v57  ;;  %v4399_v7 = vmul.f32 0.020408163, %v4346_v52 }
 0x650   :  { %v4449_v17 = vadd.f32 1e-05, %v4399_v7 }
 0x651   :  { %v4751_v60 = vpop.permute.xlu1 %4750 }
 0x652   :  { %7207 = vrsqrt.f32 %v4449_v17  ;;  %v4882_v0 = vmul.f32 %v4751_v60, %v10047_v22  ;;  %v4549_v22 = vld [vmem:[%s10704_s3 + $0x170] sm:$0xff] }
 0x654   :  { %v5232_v48 = vadd.f32 %v11025_v25, %v4882_v0 }
 0x655   :  { %v4761_v1 = vpop.permute.xlu1 %4760 }
 0x656   :  { %v5282_v54 = vmax.f32 %v5232_v48, 0.0  ;;  %v4884_v28 = vmul.f32 %v4761_v1, %v10055_v18  ;;  %v4551_v1 = vld [vmem:[%s10704_s3 + $0x180] sm:$0xff] }
 0x658   :  { %v7206_v30 = vpop.eup %7205  ;;  %5332 = vst [vmem:[%s10705_s5 + $0xe8] sm:$0xff] %v5282_v54  ;;  %v5234_v2 = vadd.f32 %v11026_v46, %v4884_v28 }
 0x659   :  { %v4597_v38 = vmul.f32 %v7206_v30, %v4547_v12  ;;  %v4951_v12 = vld [vmem:[%s10703_s4 + $0x180] sm:$0xff] }
 0x65a   :  { %v5284_v41 = vmax.f32 %v5234_v2, 0.0 }
 0x65b   :  { %v4352_v8 = vpop.xlane.xlu0 %4351  ;;  %4825 = vperm.xlu0 %7111, %v4597_v38  }
 0x65c   :  { %v7208_v18 = vpop.eup %7207  ;;  %5334 = vst [vmem:[%s10705_s5 + $0xf8] sm:$0xff] %v5284_v41  ;;  %v4402_v13 = vmul.f32 0.020408163, %v4352_v8 }
 0x65d   :  { %v4599_v40 = vmul.f32 %v7208_v18, %v4549_v22 }
 0x65e   :  { %v4452_v53 = vadd.f32 1e-05, %v4402_v13 }
 0x65f   :  { %4835 = vperm.xlu0 %7111, %v4599_v40  }
 0x660   :  { %7209 = vrsqrt.f32 %v4452_v53 }
 0x663   :  { %v5136_v37 = vpop.permute.xlu0 %5135 }
 0x667   :  { %v5146_v20 = vpop.permute.xlu0 %5145 }
 0x66a   :  { %v7210_v34 = vpop.eup %7209 }
 0x66b   :  { %v5156_v51 = vpop.permute.xlu0 %5155  ;;  %v4602_v44 = vmul.f32 %v7210_v34, %v4552_v24 }
 0x66d   :  { %4850 = vperm.xlu1 %7112, %v4602_v44  }
 0x66f   :  { %v5166_v33 = vpop.permute.xlu0 %5165 }
 0x671   :  { %5200 = vperm.xlu1 %7112, %v4952_v11  }
 0x673   :  { %v10612_v3 = vpop.permute.xlu0 %5175 }
 0x677   :  { %v10614_v15 = vpop.permute.xlu0 %5185 }
 0x67b   :  { %v4766_v4 = vpop.permute.xlu0 %4765 }
 0x67c   :  { %v4885_v43 = vmul.f32 %v4766_v4, %v10185_v45 }
 0x67e   :  { %v5235_v6 = vadd.f32 %v11027_v26, %v4885_v43 }
 0x67f   :  { %v4776_v14 = vpop.permute.xlu0 %4775 }
 0x680   :  { %v5285_v50 = vmax.f32 %v5235_v6, 0.0  ;;  %v4887_v39 = vmul.f32 %v4776_v14, %v10192_v56 }
 0x682   :  { %5335 = vst [vmem:[%s10705_s5 + $0x100] sm:$0xff] %v5285_v50  ;;  %v5237_v29 = vadd.f32 %v11028_v32, %v4887_v39 }
 0x683   :  { %v4786_v9 = vpop.permute.xlu0 %4785 }
 0x684   :  { %v5287_v55 = vmax.f32 %v5237_v29, 0.0  ;;  %v4889_v5 = vmul.f32 %v4786_v9, %v10268_v27 }
 0x686   :  { %5337 = vst [vmem:[%s10705_s5 + $0x110] sm:$0xff] %v5287_v55  ;;  %v5239_v45 = vadd.f32 %v5136_v37, %v4889_v5  ;;  %v4350_v58 = vpop.xlane.xlu1 %4349  ;;  %v11029_v37 = vld [vmem:[#allocation12_spill] sm:$0xff] }
 0x687   :  { %v4796_v57 = vpop.permute.xlu0 %4795  ;;  %v4401_v52 = vmul.f32 0.020408163, %v4350_v58 }
 0x688   :  { %v5289_v7 = vmax.f32 %v5239_v45, 0.0  ;;  %v4891_v56 = vmul.f32 %v4796_v57, %v10275_v59 }
 0x689   :  { %v4451_v17 = vadd.f32 1e-05, %v4401_v52 }
 0x68a   :  { %5339 = vst [vmem:[%s10705_s5 + $0x120] sm:$0xff] %v5289_v7  ;;  %v5241_v60 = vadd.f32 %v5146_v20, %v4891_v56  ;;  %v5141_v0 = vpop.permute.xlu1 %5140 }
 0x68b   :  { %7211 = vrsqrt.f32 %v4451_v17 }
 0x68c   :  { %v5291_v27 = vmax.f32 %v5241_v60, 0.0 }
 0x68e   :  { %5341 = vst [vmem:[%s10705_s5 + $0x130] sm:$0xff] %v5291_v27  ;;  %v5151_v25 = vpop.permute.xlu1 %5150 }
 0x692   :  { %v5161_v48 = vpop.permute.xlu1 %5160 }
 0x695   :  { %v7212_v59 = vpop.eup %7211 }
 0x696   :  { %v5171_v54 = vpop.permute.xlu1 %5170  ;;  %v4601_v28 = vmul.f32 %v7212_v59, %v4551_v1 }
 0x698   :  { %4845 = vperm.xlu0 %7111, %v4601_v28  }
 0x69a   :  { %v5181_v30 = vpop.permute.xlu1 %5180 }
 0x69c   :  { %5195 = vperm.xlu0 %7111, %v4951_v12  }
 0x69d   :  { %v4806_v46 = vpop.permute.xlu0 %4805 }
 0x69e   :  { %v4893_v2 = vmul.f32 %v4806_v46, %v10342_v49  ;;  %v5191_v38 = vpop.permute.xlu1 %5190 }
 0x6a0   :  { %v5243_v41 = vadd.f32 %v5156_v51, %v4893_v2 }
 0x6a1   :  { %v4816_v22 = vpop.permute.xlu0 %4815 }
 0x6a2   :  { %v5293_v8 = vmax.f32 %v5243_v41, 0.0  ;;  %v4895_v18 = vmul.f32 %v4816_v22, %v10351_v47  ;;  %v4771_v13 = vpop.permute.xlu1 %4770 }
 0x6a3   :  { %v4886_v40 = vmul.f32 %v4771_v13, %v10134_v61  ;;  %v11030_v61 = vld [vmem:[#allocation23_spill] sm:$0xff] }
 0x6a4   :  { %5343 = vst [vmem:[%s10705_s5 + $0x140] sm:$0xff] %v5293_v8  ;;  %v5245_v53 = vadd.f32 %v5166_v33, %v4895_v18 }
 0x6a5   :  { %v5236_v20 = vadd.f32 %v11029_v37, %v4886_v40 }
 0x6a6   :  { %v5295_v24 = vmax.f32 %v5245_v53, 0.0  ;;  %v4781_v34 = vpop.permute.xlu1 %4780 }
 0x6a7   :  { %v5286_v44 = vmax.f32 %v5236_v20, 0.0  ;;  %v4888_v49 = vmul.f32 %v4781_v34, %v10147_v35 }
 0x6a8   :  { %5345 = vst [vmem:[%s10705_s5 + $0x150] sm:$0xff] %v5295_v24 }
 0x6a9   :  { %5336 = vst [vmem:[%s10705_s5 + $0x108] sm:$0xff] %v5286_v44  ;;  %v5238_v47 = vadd.f32 %v11030_v61, %v4888_v49 }
 0x6aa   :  { %v4791_v51 = vpop.permute.xlu1 %4790 }
 0x6ab   :  { %v5288_v11 = vmax.f32 %v5238_v47, 0.0  ;;  %v4890_v33 = vmul.f32 %v4791_v51, %v10210_v36 }
 0x6ad   :  { %5338 = vst [vmem:[%s10705_s5 + $0x118] sm:$0xff] %v5288_v11  ;;  %v5240_v4 = vadd.f32 %v5141_v0, %v4890_v33 }
 0x6ae   :  { %v4801_v35 = vpop.permute.xlu1 %4800 }
 0x6af   :  { %v5290_v43 = vmax.f32 %v5240_v4, 0.0  ;;  %v4892_v26 = vmul.f32 %v4801_v35, %v10216_v62 }
 0x6b1   :  { %5340 = vst [vmem:[%s10705_s5 + $0x128] sm:$0xff] %v5290_v43  ;;  %v5242_v6 = vadd.f32 %v5151_v25, %v4892_v26 }
 0x6b2   :  { %v4811_v14 = vpop.permute.xlu1 %4810 }
 0x6b3   :  { %v5292_v50 = vmax.f32 %v5242_v6, 0.0  ;;  %v4894_v39 = vmul.f32 %v4811_v14, %v10291_v21 }
 0x6b5   :  { %5342 = vst [vmem:[%s10705_s5 + $0x138] sm:$0xff] %v5292_v50  ;;  %v5244_v36 = vadd.f32 %v5161_v48, %v4894_v39 }
 0x6b6   :  { %v4821_v32 = vpop.permute.xlu1 %4820 }
 0x6b7   :  { %v5294_v29 = vmax.f32 %v5244_v36, 0.0  ;;  %v4896_v9 = vmul.f32 %v4821_v32, %v10297_v16 }
 0x6b9   :  { %5344 = vst [vmem:[%s10705_s5 + $0x148] sm:$0xff] %v5294_v29  ;;  %v5246_v62 = vadd.f32 %v5171_v54, %v4896_v9 }
 0x6ba   :  { %v4831_v55 = vpop.permute.xlu1 %4830 }
 0x6bb   :  { %v5296_v5 = vmax.f32 %v5246_v62, 0.0  ;;  %v4898_v45 = vmul.f32 %v4831_v55, %v10365_v23 }
 0x6bd   :  { %5346 = vst [vmem:[%s10705_s5 + $0x158] sm:$0xff] %v5296_v5  ;;  %v5248_v21 = vadd.f32 %v5181_v30, %v4898_v45 }
 0x6be   :  { %v4841_v58 = vpop.permute.xlu1 %4840 }
 0x6bf   :  { %v5298_v57 = vmax.f32 %v5248_v21, 0.0  ;;  %v4900_v52 = vmul.f32 %v4841_v58, %v10371_v10 }
 0x6c1   :  { %5348 = vst [vmem:[%s10705_s5 + $0x168] sm:$0xff] %v5298_v57  ;;  %v5250_v16 = vadd.f32 %v5191_v38, %v4900_v52 }
 0x6c3   :  { %v5300_v7 = vmax.f32 %v5250_v16, 0.0 }
 0x6c5   :  { %5350 = vst [vmem:[%s10705_s5 + $0x178] sm:$0xff] %v5300_v7 }
 0x6da   :  { %v4826_v23 = vpop.permute.xlu0 %4825 }
 0x6db   :  { %v4897_v56 = vmul.f32 %v4826_v23, %v10421_v19 }
 0x6dd   :  { %v5247_v17 = vadd.f32 %v10612_v3, %v4897_v56 }
 0x6de   :  { %v4836_v60 = vpop.permute.xlu0 %4835 }
 0x6df   :  { %v5297_v0 = vmax.f32 %v5247_v17, 0.0  ;;  %v4899_v27 = vmul.f32 %v4836_v60, %v10430_v63 }
 0x6e1   :  { %5347 = vst [vmem:[%s10705_s5 + $0x160] sm:$0xff] %v5297_v0  ;;  %v5249_v10 = vadd.f32 %v10614_v15, %v4899_v27 }
 0x6e3   :  { %v5299_v25 = vmax.f32 %v5249_v10, 0.0 }
 0x6e5   :  { %5349 = vst [vmem:[%s10705_s5 + $0x170] sm:$0xff] %v5299_v25 }
 0x6ec   :  { %v4851_v48 = vpop.permute.xlu1 %4850 }
 0x6ed   :  { %v4902_v19 = vmul.f32 %v4851_v48, %v10443_v42 }
 0x6f0   :  { %v5201_v1 = vpop.permute.xlu1 %5200 }
 0x6f1   :  { %v5252_v3 = vadd.f32 %v5201_v1, %v4902_v19 }
 0x6f3   :  { %v5302_v59 = vmax.f32 %v5252_v3, 0.0 }
 0x6f5   :  { %5352 = vst [vmem:[%s10705_s5 + $0x188] sm:$0xff] %v5302_v59 }
 0x717   :  { %v4846_v63 = vpop.permute.xlu0 %4845 }
 0x718   :  { %v4901_v54 = vmul.f32 %v4846_v63, %v10490_v31 }
 0x71b   :  { %v5196_v28 = vpop.permute.xlu0 %5195 }
 0x71c   :  { %v5251_v15 = vadd.f32 %v5196_v28, %v4901_v54 }
 0x71e   :  { %v5301_v12 = vmax.f32 %v5251_v15, 0.0 }
 0x720   :  { %5351 = vst [vmem:[%s10705_s5 + $0x180] sm:$0xff] %v5301_v12 }

</bundles_post_ra>
